<compile_context>
chip_gen: v5e
topology: v5e:2x2
jax: 0.10.0
libtpu: 0.0.40
codegen_flags: <defaults>
</compile_context>

<pallas_src>
import functools

import jax
import jax.numpy as jnp
from jax.experimental import pallas as pl
from jax.experimental.pallas import tpu as pltpu


def _round_up(v, m):
    return ((v + m - 1) // m) * m


def spatial_attention_kernel(w_ref, mask_ref, x_ref, o_ref, *,
                             k_size, height, width, channels, chunk):
    H, W, C, k, CB = height, width, channels, k_size, chunk
    HW = H * W
    p = (k - 1) // 2
    PAD = p * W + p                          # largest |flat tap offset|
    PAD_AL = _round_up(max(PAD, 1), 128)     # lane-aligned pad width
    TOT = PAD_AL + HW + PAD_AL               # padded flat-map length

    n_full = C // CB                         # full sublane-tile chunks
    rem = C - n_full * CB                    # single masked remainder chunk

    # ---- pass 1: streamed channel reduction (mean & max over C) -----------
    # (CB, HW) running accumulators inside the loop; the sublane (XLU)
    # reduction happens exactly once afterwards.
    if n_full > 0:
        def reduce_body(i, carry):
            s, m = carry
            c0 = pl.multiple_of(i * CB, CB)
            blk = x_ref[pl.ds(c0, CB), :].astype(jnp.float32)    # (CB, HW)
            return s + blk, jnp.maximum(m, blk)

        s0 = jnp.zeros((CB, HW), jnp.float32)
        m0 = jnp.full((CB, HW), -jnp.inf, jnp.float32)
        unroll = n_full if n_full <= 8 else 4
        s_acc, m_acc = jax.lax.fori_loop(0, n_full, reduce_body, (s0, m0),
                                         unroll=unroll)
        ch_sum = jnp.sum(s_acc, axis=0, keepdims=True)
        ch_max = jnp.max(m_acc, axis=0, keepdims=True)
    else:
        ch_sum = jnp.zeros((1, HW), jnp.float32)
        ch_max = jnp.full((1, HW), -jnp.inf, jnp.float32)

    if rem > 0:
        blk = x_ref[n_full * CB:C, :].astype(jnp.float32)        # (rem, HW)
        ch_sum = ch_sum + jnp.sum(blk, axis=0, keepdims=True)
        ch_max = jnp.maximum(ch_max, jnp.max(blk, axis=0, keepdims=True))

    ch_avg = ch_sum * (1.0 / C)

    # ---- pass 2: k x k conv over the (avg, max) maps in flattened form ----
    # Zero-padded flat maps held as a value (no scratch, no scratch zeroing);
    # rows 0/1 = avg/max maps, remaining rows are zeros so the roll operand is
    # a full 8-sublane tile.  Each tap shift uses pltpu.roll + a 128-aligned
    # window slice (no lane-relayout copies).
    maps8 = jnp.concatenate(
        [ch_avg, ch_max, jnp.zeros((6, HW), jnp.float32)], axis=0)   # (8, HW)
    zpad = jnp.zeros((8, PAD_AL), jnp.float32)
    padded = jnp.concatenate([zpad, maps8, zpad], axis=1)            # (8, TOT)

    col_masks = mask_ref[...]                                        # (k, HW)

    att = jnp.zeros((1, HW), jnp.float32)
    for dj in range(k):                      # static unroll: k in {3, 7}
        acc = jnp.zeros((1, HW), jnp.float32)
        for di in range(k):
            tap_off = (di - p) * W + (dj - p)
            if tap_off == 0:
                shifted = padded
            else:
                # shifted[:, j] == padded[:, j + tap_off] (no wrap in window)
                shifted = pltpu.roll(padded, shift=(-tap_off) % TOT, axis=1)
            win = shifted[:, PAD_AL:PAD_AL + HW]          # lane-aligned slice
            acc = acc + w_ref[di * k + dj] * win[0:1, :]
            acc = acc + w_ref[k * k + di * k + dj] * win[1:2, :]
        # column mask zeroes taps that crossed a row boundary (horizontal pad)
        att = att + col_masks[dj:dj + 1, :] * acc

    # Gate cast once, broadcast once (hoisted out of the rescale loop).
    gate = jax.nn.sigmoid(att).astype(o_ref.dtype)                   # (1, HW)
    rows = CB if n_full > 0 else rem
    gate_b = jnp.broadcast_to(gate, (rows, HW))

    # ---- pass 3: streamed channel-wise rescale (lane-dense, unmasked) -----
    if n_full > 0:
        def scale_body(i, _):
            c0 = pl.multiple_of(i * CB, CB)
            o_ref[pl.ds(c0, CB), :] = x_ref[pl.ds(c0, CB), :] * gate_b
            return 0
        unroll = n_full if n_full <= 8 else 4
        jax.lax.fori_loop(0, n_full, scale_body, 0, unroll=unroll)

    if rem > 0:
        o_ref[n_full * CB:C, :] = x_ref[n_full * CB:C, :] * gate_b[:rem, :]


def spatial_attention(x, weight, kernel_size=7):
    """x: (B, C, H, W); weight: (2, k, k) Conv2d(2, 1, k, bias=False) weight."""
    B, C, H, W = x.shape
    k = kernel_size
    p = (k - 1) // 2
    HW = H * W

    x_flat = x.reshape(B, C, HW)                       # lane-dense last dim
    w_flat = weight.reshape(-1).astype(jnp.float32)    # (2*k*k,) for SMEM

    # Per-tap column validity masks (handles horizontal zero padding).
    col = jnp.arange(HW, dtype=jnp.int32) % W
    masks = jnp.stack(
        [((col + (dj - p)) >= 0) & ((col + (dj - p)) < W) for dj in range(k)],
        axis=0).astype(jnp.float32)                    # (k, HW)

    itemsize = jnp.dtype(x.dtype).itemsize
    chunk = (8 * 4) // itemsize                        # 8 f32 / 16 bf16 / 32 i8

    kernel = functools.partial(spatial_attention_kernel, k_size=k,
                               height=H, width=W, channels=C, chunk=chunk)

    # Generation-aware VMEM cap (v7x has 64 MiB per TC; v5e/v6e 128 MiB).
    vmem_cap = 64 * 2 ** 20
    try:
        info = pltpu.get_tpu_info()
        vmem_cap = int(getattr(info, "vmem_capacity_bytes", vmem_cap))
    except Exception:
        pass
    block_bytes = C * HW * itemsize
    vmem_limit = int(min(int(0.85 * vmem_cap),
                         max(32 * 2 ** 20, 4 * block_bytes + (4 << 20))))

    cost = pl.CostEstimate(
        flops=int(B * (3 * C * HW + 4 * k * k * HW + 2 * HW)),
        transcendentals=int(B * HW),
        bytes_accessed=int(2 * B * C * HW * itemsize + k * HW * 4),
    )

    out_flat = pl.pallas_call(
        kernel,
        out_shape=jax.ShapeDtypeStruct((B, C, HW), x.dtype),
        grid_spec=pltpu.PrefetchScalarGridSpec(
            num_scalar_prefetch=0,
            grid=(B,),
            in_specs=[
                pl.BlockSpec(memory_space=pltpu.MemorySpace.SMEM),     # weights
                pl.BlockSpec((k, HW), lambda b: (0, 0)),               # col masks
                pl.BlockSpec((None, C, HW), lambda b: (b, 0, 0)),      # x block
            ],
            out_specs=pl.BlockSpec((None, C, HW), lambda b: (b, 0, 0)),
        ),
        compiler_params=pltpu.CompilerParams(
            dimension_semantics=("parallel",),
            vmem_limit_bytes=vmem_limit),
        cost_estimate=cost,
    )(w_flat, masks, x_flat)

    return out_flat.reshape(B, C, H, W)


def spatial_attention_reference(x, weight, kernel_size=7):
    """Pure-JAX reference matching the PyTorch forward exactly."""
    p = (kernel_size - 1) // 2
    avg = jnp.mean(x, axis=1, keepdims=True)
    mx = jnp.max(x, axis=1, keepdims=True)
    cat = jnp.concatenate([avg, mx], axis=1)           # (B, 2, H, W)
    att = jax.lax.conv_general_dilated(
        cat, weight.reshape(1, 2, kernel_size, kernel_size),
        window_strides=(1, 1), padding=[(p, p), (p, p)],
        dimension_numbers=("NCHW", "OIHW", "NCHW"))
    att = jax.nn.sigmoid(att)
    return x * att


if __name__ == "__main__":
    key = jax.random.PRNGKey(0)
    kx, kw = jax.random.split(key)

    B, C, H, W = 2, 4, 16, 16
    k_size = 7                                          # module default (3 or 7)

    x = jax.random.normal(kx, (B, C, H, W), dtype=jnp.float32)

    # Conv2d(2, 1, k, bias=False) weight: torch shape (1, 2, k, k) -> (2, k, k).
    fan_in = 2 * k_size * k_size
    bound = 1.0 / (fan_in ** 0.5)
    weight = jax.random.uniform(kw, (2, k_size, k_size), dtype=jnp.float32,
                                minval=-bound, maxval=bound)

    out = spatial_attention(x, weight, kernel_size=k_size)
    out = jax.block_until_ready(out)

    ref = spatial_attention_reference(x, weight, kernel_size=k_size)
    assert out.shape == x.shape and out.dtype == x.dtype
    assert jnp.allclose(out, ref, atol=1e-5, rtol=1e-5)

    print("KERNEL_OK")
</pallas_src>

<mosaic_0001>
module attributes {stable_mosaic.version = 11 : i64} {
  func.func @spatial_attention_kernel(%arg0: i32, %arg1: memref<98xf32, #tpu.memory_space<smem>>, %arg2: memref<7x256xf32, #tpu.memory_space<vmem>>, %arg3: memref<1x4x256xf32, #tpu.memory_space<vmem>>, %arg4: memref<1x4x256xf32, #tpu.memory_space<vmem>>) attributes {dimension_semantics = [#tpu.dimension_semantics<parallel>], iteration_bounds = array<i64: 2>, scalar_prefetch = 0 : i64, scratch_operands = 0 : i64, tpu.core_type = #tpu.core_type<tc>, window_params = [{transform_indices = @transform_0, window_bounds = array<i64: 98>}, {pipeline_mode = #tpu.pipeline_mode<synchronous>, transform_indices = @transform_1, window_bounds = array<i64: 7, 256>}, {transform_indices = @transform_2, window_bounds = array<i64: 1, 4, 256>}, {transform_indices = @transform_3, window_bounds = array<i64: 1, 4, 256>}]} {
    %cst = arith.constant 0.000000e+00 : f32
    %0 = vector.broadcast %cst : f32 to vector<1x256xf32>
    %cst_0 = arith.constant 0xFF800000 : f32
    %1 = vector.broadcast %cst_0 : f32 to vector<1x256xf32>
    %c0 = arith.constant 0 : index
    %c0_1 = arith.constant 0 : index
    %c0_2 = arith.constant 0 : index
    %2 = vector.load %arg3[%c0, %c0_1, %c0_2] : memref<1x4x256xf32, #tpu.memory_space<vmem>>, vector<1x4x256xf32>
    %3 = vector.shape_cast %2 : vector<1x4x256xf32> to vector<4x256xf32>
    %cst_3 = arith.constant dense<0.000000e+00> : vector<256xf32>
    %4 = vector.multi_reduction <add>, %3, %cst_3 [0] : vector<4x256xf32> to vector<256xf32>
    %5 = vector.shape_cast %4 : vector<256xf32> to vector<1x256xf32>
    %6 = arith.addf %0, %5 : vector<1x256xf32>
    %cst_4 = arith.constant dense<0xFF800000> : vector<256xf32>
    %7 = vector.multi_reduction <maximumf>, %3, %cst_4 [0] : vector<4x256xf32> to vector<256xf32>
    %8 = vector.shape_cast %7 : vector<256xf32> to vector<1x256xf32>
    %9 = arith.maximumf %1, %8 : vector<1x256xf32>
    %cst_5 = arith.constant 2.500000e-01 : f32
    %10 = vector.broadcast %cst_5 : f32 to vector<1x256xf32>
    %11 = arith.mulf %6, %10 : vector<1x256xf32>
    %cst_6 = arith.constant 0.000000e+00 : f32
    %12 = vector.broadcast %cst_6 : f32 to vector<6x256xf32>
    %13 = tpu.concatenate %11, %9, %12 in 0 : vector<1x256xf32>, vector<1x256xf32>, vector<6x256xf32> -> vector<8x256xf32>
    %cst_7 = arith.constant 0.000000e+00 : f32
    %14 = vector.broadcast %cst_7 : f32 to vector<8x128xf32>
    %15 = tpu.concatenate %14, %13, %14 in 1 : vector<8x128xf32>, vector<8x256xf32>, vector<8x128xf32> -> vector<8x512xf32>
    %c0_8 = arith.constant 0 : index
    %c0_9 = arith.constant 0 : index
    %16 = vector.load %arg2[%c0_8, %c0_9] : memref<7x256xf32, #tpu.memory_space<vmem>>, vector<7x256xf32>
    %cst_10 = arith.constant 0.000000e+00 : f32
    %17 = vector.broadcast %cst_10 : f32 to vector<1x256xf32>
    %cst_11 = arith.constant 0.000000e+00 : f32
    %18 = vector.broadcast %cst_11 : f32 to vector<1x256xf32>
    %c51_i32 = arith.constant 51 : i32
    %19 = tpu.dynamic_rotate %15 by %c51_i32 dim 1 : vector<8x512xf32>, i32 -> vector<8x512xf32>
    %20 = vector.extract_strided_slice %19 {offsets = [0, 128], sizes = [8, 256], strides = [1, 1]} : vector<8x512xf32> to vector<8x256xf32>
    %c0_12 = arith.constant 0 : index
    %21 = memref.load %arg1[%c0_12] : memref<98xf32, #tpu.memory_space<smem>>
    %22 = vector.extract_strided_slice %20 {offsets = [0, 0], sizes = [1, 256], strides = [1, 1]} : vector<8x256xf32> to vector<1x256xf32>
    %23 = vector.broadcast %21 : f32 to vector<1x256xf32>
    %24 = arith.mulf %23, %22 : vector<1x256xf32>
    %25 = arith.addf %18, %24 : vector<1x256xf32>
    %c49 = arith.constant 49 : index
    %26 = memref.load %arg1[%c49] : memref<98xf32, #tpu.memory_space<smem>>
    %27 = vector.extract_strided_slice %20 {offsets = [1, 0], sizes = [1, 256], strides = [1, 1]} : vector<8x256xf32> to vector<1x256xf32>
    %28 = vector.broadcast %26 : f32 to vector<1x256xf32>
    %29 = arith.mulf %28, %27 : vector<1x256xf32>
    %30 = arith.addf %25, %29 : vector<1x256xf32>
    %c35_i32 = arith.constant 35 : i32
    %31 = tpu.dynamic_rotate %15 by %c35_i32 dim 1 : vector<8x512xf32>, i32 -> vector<8x512xf32>
    %32 = vector.extract_strided_slice %31 {offsets = [0, 128], sizes = [8, 256], strides = [1, 1]} : vector<8x512xf32> to vector<8x256xf32>
    %c7 = arith.constant 7 : index
    %33 = memref.load %arg1[%c7] : memref<98xf32, #tpu.memory_space<smem>>
    %34 = vector.extract_strided_slice %32 {offsets = [0, 0], sizes = [1, 256], strides = [1, 1]} : vector<8x256xf32> to vector<1x256xf32>
    %35 = vector.broadcast %33 : f32 to vector<1x256xf32>
    %36 = arith.mulf %35, %34 : vector<1x256xf32>
    %37 = arith.addf %30, %36 : vector<1x256xf32>
    %c56 = arith.constant 56 : index
    %38 = memref.load %arg1[%c56] : memref<98xf32, #tpu.memory_space<smem>>
    %39 = vector.extract_strided_slice %32 {offsets = [1, 0], sizes = [1, 256], strides = [1, 1]} : vector<8x256xf32> to vector<1x256xf32>
    %40 = vector.broadcast %38 : f32 to vector<1x256xf32>
    %41 = arith.mulf %40, %39 : vector<1x256xf32>
    %42 = arith.addf %37, %41 : vector<1x256xf32>
    %c19_i32 = arith.constant 19 : i32
    %43 = tpu.dynamic_rotate %15 by %c19_i32 dim 1 : vector<8x512xf32>, i32 -> vector<8x512xf32>
    %44 = vector.extract_strided_slice %43 {offsets = [0, 128], sizes = [8, 256], strides = [1, 1]} : vector<8x512xf32> to vector<8x256xf32>
    %c14 = arith.constant 14 : index
    %45 = memref.load %arg1[%c14] : memref<98xf32, #tpu.memory_space<smem>>
    %46 = vector.extract_strided_slice %44 {offsets = [0, 0], sizes = [1, 256], strides = [1, 1]} : vector<8x256xf32> to vector<1x256xf32>
    %47 = vector.broadcast %45 : f32 to vector<1x256xf32>
    %48 = arith.mulf %47, %46 : vector<1x256xf32>
    %49 = arith.addf %42, %48 : vector<1x256xf32>
    %c63 = arith.constant 63 : index
    %50 = memref.load %arg1[%c63] : memref<98xf32, #tpu.memory_space<smem>>
    %51 = vector.extract_strided_slice %44 {offsets = [1, 0], sizes = [1, 256], strides = [1, 1]} : vector<8x256xf32> to vector<1x256xf32>
    %52 = vector.broadcast %50 : f32 to vector<1x256xf32>
    %53 = arith.mulf %52, %51 : vector<1x256xf32>
    %54 = arith.addf %49, %53 : vector<1x256xf32>
    %c3_i32 = arith.constant 3 : i32
    %55 = tpu.dynamic_rotate %15 by %c3_i32 dim 1 : vector<8x512xf32>, i32 -> vector<8x512xf32>
    %56 = vector.extract_strided_slice %55 {offsets = [0, 128], sizes = [8, 256], strides = [1, 1]} : vector<8x512xf32> to vector<8x256xf32>
    %c21 = arith.constant 21 : index
    %57 = memref.load %arg1[%c21] : memref<98xf32, #tpu.memory_space<smem>>
    %58 = vector.extract_strided_slice %56 {offsets = [0, 0], sizes = [1, 256], strides = [1, 1]} : vector<8x256xf32> to vector<1x256xf32>
    %59 = vector.broadcast %57 : f32 to vector<1x256xf32>
    %60 = arith.mulf %59, %58 : vector<1x256xf32>
    %61 = arith.addf %54, %60 : vector<1x256xf32>
    %c70 = arith.constant 70 : index
    %62 = memref.load %arg1[%c70] : memref<98xf32, #tpu.memory_space<smem>>
    %63 = vector.extract_strided_slice %56 {offsets = [1, 0], sizes = [1, 256], strides = [1, 1]} : vector<8x256xf32> to vector<1x256xf32>
    %64 = vector.broadcast %62 : f32 to vector<1x256xf32>
    %65 = arith.mulf %64, %63 : vector<1x256xf32>
    %66 = arith.addf %61, %65 : vector<1x256xf32>
    %c499_i32 = arith.constant 499 : i32
    %67 = tpu.dynamic_rotate %15 by %c499_i32 dim 1 : vector<8x512xf32>, i32 -> vector<8x512xf32>
    %68 = vector.extract_strided_slice %67 {offsets = [0, 128], sizes = [8, 256], strides = [1, 1]} : vector<8x512xf32> to vector<8x256xf32>
    %c28 = arith.constant 28 : index
    %69 = memref.load %arg1[%c28] : memref<98xf32, #tpu.memory_space<smem>>
    %70 = vector.extract_strided_slice %68 {offsets = [0, 0], sizes = [1, 256], strides = [1, 1]} : vector<8x256xf32> to vector<1x256xf32>
    %71 = vector.broadcast %69 : f32 to vector<1x256xf32>
    %72 = arith.mulf %71, %70 : vector<1x256xf32>
    %73 = arith.addf %66, %72 : vector<1x256xf32>
    %c77 = arith.constant 77 : index
    %74 = memref.load %arg1[%c77] : memref<98xf32, #tpu.memory_space<smem>>
    %75 = vector.extract_strided_slice %68 {offsets = [1, 0], sizes = [1, 256], strides = [1, 1]} : vector<8x256xf32> to vector<1x256xf32>
    %76 = vector.broadcast %74 : f32 to vector<1x256xf32>
    %77 = arith.mulf %76, %75 : vector<1x256xf32>
    %78 = arith.addf %73, %77 : vector<1x256xf32>
    %c483_i32 = arith.constant 483 : i32
    %79 = tpu.dynamic_rotate %15 by %c483_i32 dim 1 : vector<8x512xf32>, i32 -> vector<8x512xf32>
    %80 = vector.extract_strided_slice %79 {offsets = [0, 128], sizes = [8, 256], strides = [1, 1]} : vector<8x512xf32> to vector<8x256xf32>
    %c35 = arith.constant 35 : index
    %81 = memref.load %arg1[%c35] : memref<98xf32, #tpu.memory_space<smem>>
    %82 = vector.extract_strided_slice %80 {offsets = [0, 0], sizes = [1, 256], strides = [1, 1]} : vector<8x256xf32> to vector<1x256xf32>
    %83 = vector.broadcast %81 : f32 to vector<1x256xf32>
    %84 = arith.mulf %83, %82 : vector<1x256xf32>
    %85 = arith.addf %78, %84 : vector<1x256xf32>
    %c84 = arith.constant 84 : index
    %86 = memref.load %arg1[%c84] : memref<98xf32, #tpu.memory_space<smem>>
    %87 = vector.extract_strided_slice %80 {offsets = [1, 0], sizes = [1, 256], strides = [1, 1]} : vector<8x256xf32> to vector<1x256xf32>
    %88 = vector.broadcast %86 : f32 to vector<1x256xf32>
    %89 = arith.mulf %88, %87 : vector<1x256xf32>
    %90 = arith.addf %85, %89 : vector<1x256xf32>
    %c467_i32 = arith.constant 467 : i32
    %91 = tpu.dynamic_rotate %15 by %c467_i32 dim 1 : vector<8x512xf32>, i32 -> vector<8x512xf32>
    %92 = vector.extract_strided_slice %91 {offsets = [0, 128], sizes = [8, 256], strides = [1, 1]} : vector<8x512xf32> to vector<8x256xf32>
    %c42 = arith.constant 42 : index
    %93 = memref.load %arg1[%c42] : memref<98xf32, #tpu.memory_space<smem>>
    %94 = vector.extract_strided_slice %92 {offsets = [0, 0], sizes = [1, 256], strides = [1, 1]} : vector<8x256xf32> to vector<1x256xf32>
    %95 = vector.broadcast %93 : f32 to vector<1x256xf32>
    %96 = arith.mulf %95, %94 : vector<1x256xf32>
    %97 = arith.addf %90, %96 : vector<1x256xf32>
    %c91 = arith.constant 91 : index
    %98 = memref.load %arg1[%c91] : memref<98xf32, #tpu.memory_space<smem>>
    %99 = vector.extract_strided_slice %92 {offsets = [1, 0], sizes = [1, 256], strides = [1, 1]} : vector<8x256xf32> to vector<1x256xf32>
    %100 = vector.broadcast %98 : f32 to vector<1x256xf32>
    %101 = arith.mulf %100, %99 : vector<1x256xf32>
    %102 = arith.addf %97, %101 : vector<1x256xf32>
    %103 = vector.extract_strided_slice %16 {offsets = [0, 0], sizes = [1, 256], strides = [1, 1]} : vector<7x256xf32> to vector<1x256xf32>
    %104 = arith.mulf %103, %102 : vector<1x256xf32>
    %105 = arith.addf %17, %104 : vector<1x256xf32>
    %cst_13 = arith.constant 0.000000e+00 : f32
    %106 = vector.broadcast %cst_13 : f32 to vector<1x256xf32>
    %c50_i32 = arith.constant 50 : i32
    %107 = tpu.dynamic_rotate %15 by %c50_i32 dim 1 : vector<8x512xf32>, i32 -> vector<8x512xf32>
    %108 = vector.extract_strided_slice %107 {offsets = [0, 128], sizes = [8, 256], strides = [1, 1]} : vector<8x512xf32> to vector<8x256xf32>
    %c1 = arith.constant 1 : index
    %109 = memref.load %arg1[%c1] : memref<98xf32, #tpu.memory_space<smem>>
    %110 = vector.extract_strided_slice %108 {offsets = [0, 0], sizes = [1, 256], strides = [1, 1]} : vector<8x256xf32> to vector<1x256xf32>
    %111 = vector.broadcast %109 : f32 to vector<1x256xf32>
    %112 = arith.mulf %111, %110 : vector<1x256xf32>
    %113 = arith.addf %106, %112 : vector<1x256xf32>
    %c50 = arith.constant 50 : index
    %114 = memref.load %arg1[%c50] : memref<98xf32, #tpu.memory_space<smem>>
    %115 = vector.extract_strided_slice %108 {offsets = [1, 0], sizes = [1, 256], strides = [1, 1]} : vector<8x256xf32> to vector<1x256xf32>
    %116 = vector.broadcast %114 : f32 to vector<1x256xf32>
    %117 = arith.mulf %116, %115 : vector<1x256xf32>
    %118 = arith.addf %113, %117 : vector<1x256xf32>
    %c34_i32 = arith.constant 34 : i32
    %119 = tpu.dynamic_rotate %15 by %c34_i32 dim 1 : vector<8x512xf32>, i32 -> vector<8x512xf32>
    %120 = vector.extract_strided_slice %119 {offsets = [0, 128], sizes = [8, 256], strides = [1, 1]} : vector<8x512xf32> to vector<8x256xf32>
    %c8 = arith.constant 8 : index
    %121 = memref.load %arg1[%c8] : memref<98xf32, #tpu.memory_space<smem>>
    %122 = vector.extract_strided_slice %120 {offsets = [0, 0], sizes = [1, 256], strides = [1, 1]} : vector<8x256xf32> to vector<1x256xf32>
    %123 = vector.broadcast %121 : f32 to vector<1x256xf32>
    %124 = arith.mulf %123, %122 : vector<1x256xf32>
    %125 = arith.addf %118, %124 : vector<1x256xf32>
    %c57 = arith.constant 57 : index
    %126 = memref.load %arg1[%c57] : memref<98xf32, #tpu.memory_space<smem>>
    %127 = vector.extract_strided_slice %120 {offsets = [1, 0], sizes = [1, 256], strides = [1, 1]} : vector<8x256xf32> to vector<1x256xf32>
    %128 = vector.broadcast %126 : f32 to vector<1x256xf32>
    %129 = arith.mulf %128, %127 : vector<1x256xf32>
    %130 = arith.addf %125, %129 : vector<1x256xf32>
    %c18_i32 = arith.constant 18 : i32
    %131 = tpu.dynamic_rotate %15 by %c18_i32 dim 1 : vector<8x512xf32>, i32 -> vector<8x512xf32>
    %132 = vector.extract_strided_slice %131 {offsets = [0, 128], sizes = [8, 256], strides = [1, 1]} : vector<8x512xf32> to vector<8x256xf32>
    %c15 = arith.constant 15 : index
    %133 = memref.load %arg1[%c15] : memref<98xf32, #tpu.memory_space<smem>>
    %134 = vector.extract_strided_slice %132 {offsets = [0, 0], sizes = [1, 256], strides = [1, 1]} : vector<8x256xf32> to vector<1x256xf32>
    %135 = vector.broadcast %133 : f32 to vector<1x256xf32>
    %136 = arith.mulf %135, %134 : vector<1x256xf32>
    %137 = arith.addf %130, %136 : vector<1x256xf32>
    %c64 = arith.constant 64 : index
    %138 = memref.load %arg1[%c64] : memref<98xf32, #tpu.memory_space<smem>>
    %139 = vector.extract_strided_slice %132 {offsets = [1, 0], sizes = [1, 256], strides = [1, 1]} : vector<8x256xf32> to vector<1x256xf32>
    %140 = vector.broadcast %138 : f32 to vector<1x256xf32>
    %141 = arith.mulf %140, %139 : vector<1x256xf32>
    %142 = arith.addf %137, %141 : vector<1x256xf32>
    %c2_i32 = arith.constant 2 : i32
    %143 = tpu.dynamic_rotate %15 by %c2_i32 dim 1 : vector<8x512xf32>, i32 -> vector<8x512xf32>
    %144 = vector.extract_strided_slice %143 {offsets = [0, 128], sizes = [8, 256], strides = [1, 1]} : vector<8x512xf32> to vector<8x256xf32>
    %c22 = arith.constant 22 : index
    %145 = memref.load %arg1[%c22] : memref<98xf32, #tpu.memory_space<smem>>
    %146 = vector.extract_strided_slice %144 {offsets = [0, 0], sizes = [1, 256], strides = [1, 1]} : vector<8x256xf32> to vector<1x256xf32>
    %147 = vector.broadcast %145 : f32 to vector<1x256xf32>
    %148 = arith.mulf %147, %146 : vector<1x256xf32>
    %149 = arith.addf %142, %148 : vector<1x256xf32>
    %c71 = arith.constant 71 : index
    %150 = memref.load %arg1[%c71] : memref<98xf32, #tpu.memory_space<smem>>
    %151 = vector.extract_strided_slice %144 {offsets = [1, 0], sizes = [1, 256], strides = [1, 1]} : vector<8x256xf32> to vector<1x256xf32>
    %152 = vector.broadcast %150 : f32 to vector<1x256xf32>
    %153 = arith.mulf %152, %151 : vector<1x256xf32>
    %154 = arith.addf %149, %153 : vector<1x256xf32>
    %c498_i32 = arith.constant 498 : i32
    %155 = tpu.dynamic_rotate %15 by %c498_i32 dim 1 : vector<8x512xf32>, i32 -> vector<8x512xf32>
    %156 = vector.extract_strided_slice %155 {offsets = [0, 128], sizes = [8, 256], strides = [1, 1]} : vector<8x512xf32> to vector<8x256xf32>
    %c29 = arith.constant 29 : index
    %157 = memref.load %arg1[%c29] : memref<98xf32, #tpu.memory_space<smem>>
    %158 = vector.extract_strided_slice %156 {offsets = [0, 0], sizes = [1, 256], strides = [1, 1]} : vector<8x256xf32> to vector<1x256xf32>
    %159 = vector.broadcast %157 : f32 to vector<1x256xf32>
    %160 = arith.mulf %159, %158 : vector<1x256xf32>
    %161 = arith.addf %154, %160 : vector<1x256xf32>
    %c78 = arith.constant 78 : index
    %162 = memref.load %arg1[%c78] : memref<98xf32, #tpu.memory_space<smem>>
    %163 = vector.extract_strided_slice %156 {offsets = [1, 0], sizes = [1, 256], strides = [1, 1]} : vector<8x256xf32> to vector<1x256xf32>
    %164 = vector.broadcast %162 : f32 to vector<1x256xf32>
    %165 = arith.mulf %164, %163 : vector<1x256xf32>
    %166 = arith.addf %161, %165 : vector<1x256xf32>
    %c482_i32 = arith.constant 482 : i32
    %167 = tpu.dynamic_rotate %15 by %c482_i32 dim 1 : vector<8x512xf32>, i32 -> vector<8x512xf32>
    %168 = vector.extract_strided_slice %167 {offsets = [0, 128], sizes = [8, 256], strides = [1, 1]} : vector<8x512xf32> to vector<8x256xf32>
    %c36 = arith.constant 36 : index
    %169 = memref.load %arg1[%c36] : memref<98xf32, #tpu.memory_space<smem>>
    %170 = vector.extract_strided_slice %168 {offsets = [0, 0], sizes = [1, 256], strides = [1, 1]} : vector<8x256xf32> to vector<1x256xf32>
    %171 = vector.broadcast %169 : f32 to vector<1x256xf32>
    %172 = arith.mulf %171, %170 : vector<1x256xf32>
    %173 = arith.addf %166, %172 : vector<1x256xf32>
    %c85 = arith.constant 85 : index
    %174 = memref.load %arg1[%c85] : memref<98xf32, #tpu.memory_space<smem>>
    %175 = vector.extract_strided_slice %168 {offsets = [1, 0], sizes = [1, 256], strides = [1, 1]} : vector<8x256xf32> to vector<1x256xf32>
    %176 = vector.broadcast %174 : f32 to vector<1x256xf32>
    %177 = arith.mulf %176, %175 : vector<1x256xf32>
    %178 = arith.addf %173, %177 : vector<1x256xf32>
    %c466_i32 = arith.constant 466 : i32
    %179 = tpu.dynamic_rotate %15 by %c466_i32 dim 1 : vector<8x512xf32>, i32 -> vector<8x512xf32>
    %180 = vector.extract_strided_slice %179 {offsets = [0, 128], sizes = [8, 256], strides = [1, 1]} : vector<8x512xf32> to vector<8x256xf32>
    %c43 = arith.constant 43 : index
    %181 = memref.load %arg1[%c43] : memref<98xf32, #tpu.memory_space<smem>>
    %182 = vector.extract_strided_slice %180 {offsets = [0, 0], sizes = [1, 256], strides = [1, 1]} : vector<8x256xf32> to vector<1x256xf32>
    %183 = vector.broadcast %181 : f32 to vector<1x256xf32>
    %184 = arith.mulf %183, %182 : vector<1x256xf32>
    %185 = arith.addf %178, %184 : vector<1x256xf32>
    %c92 = arith.constant 92 : index
    %186 = memref.load %arg1[%c92] : memref<98xf32, #tpu.memory_space<smem>>
    %187 = vector.extract_strided_slice %180 {offsets = [1, 0], sizes = [1, 256], strides = [1, 1]} : vector<8x256xf32> to vector<1x256xf32>
    %188 = vector.broadcast %186 : f32 to vector<1x256xf32>
    %189 = arith.mulf %188, %187 : vector<1x256xf32>
    %190 = arith.addf %185, %189 : vector<1x256xf32>
    %191 = vector.extract_strided_slice %16 {offsets = [1, 0], sizes = [1, 256], strides = [1, 1]} : vector<7x256xf32> to vector<1x256xf32>
    %192 = arith.mulf %191, %190 : vector<1x256xf32>
    %193 = arith.addf %105, %192 : vector<1x256xf32>
    %cst_14 = arith.constant 0.000000e+00 : f32
    %194 = vector.broadcast %cst_14 : f32 to vector<1x256xf32>
    %c49_i32 = arith.constant 49 : i32
    %195 = tpu.dynamic_rotate %15 by %c49_i32 dim 1 : vector<8x512xf32>, i32 -> vector<8x512xf32>
    %196 = vector.extract_strided_slice %195 {offsets = [0, 128], sizes = [8, 256], strides = [1, 1]} : vector<8x512xf32> to vector<8x256xf32>
    %c2 = arith.constant 2 : index
    %197 = memref.load %arg1[%c2] : memref<98xf32, #tpu.memory_space<smem>>
    %198 = vector.extract_strided_slice %196 {offsets = [0, 0], sizes = [1, 256], strides = [1, 1]} : vector<8x256xf32> to vector<1x256xf32>
    %199 = vector.broadcast %197 : f32 to vector<1x256xf32>
    %200 = arith.mulf %199, %198 : vector<1x256xf32>
    %201 = arith.addf %194, %200 : vector<1x256xf32>
    %c51 = arith.constant 51 : index
    %202 = memref.load %arg1[%c51] : memref<98xf32, #tpu.memory_space<smem>>
    %203 = vector.extract_strided_slice %196 {offsets = [1, 0], sizes = [1, 256], strides = [1, 1]} : vector<8x256xf32> to vector<1x256xf32>
    %204 = vector.broadcast %202 : f32 to vector<1x256xf32>
    %205 = arith.mulf %204, %203 : vector<1x256xf32>
    %206 = arith.addf %201, %205 : vector<1x256xf32>
    %c33_i32 = arith.constant 33 : i32
    %207 = tpu.dynamic_rotate %15 by %c33_i32 dim 1 : vector<8x512xf32>, i32 -> vector<8x512xf32>
    %208 = vector.extract_strided_slice %207 {offsets = [0, 128], sizes = [8, 256], strides = [1, 1]} : vector<8x512xf32> to vector<8x256xf32>
    %c9 = arith.constant 9 : index
    %209 = memref.load %arg1[%c9] : memref<98xf32, #tpu.memory_space<smem>>
    %210 = vector.extract_strided_slice %208 {offsets = [0, 0], sizes = [1, 256], strides = [1, 1]} : vector<8x256xf32> to vector<1x256xf32>
    %211 = vector.broadcast %209 : f32 to vector<1x256xf32>
    %212 = arith.mulf %211, %210 : vector<1x256xf32>
    %213 = arith.addf %206, %212 : vector<1x256xf32>
    %c58 = arith.constant 58 : index
    %214 = memref.load %arg1[%c58] : memref<98xf32, #tpu.memory_space<smem>>
    %215 = vector.extract_strided_slice %208 {offsets = [1, 0], sizes = [1, 256], strides = [1, 1]} : vector<8x256xf32> to vector<1x256xf32>
    %216 = vector.broadcast %214 : f32 to vector<1x256xf32>
    %217 = arith.mulf %216, %215 : vector<1x256xf32>
    %218 = arith.addf %213, %217 : vector<1x256xf32>
    %c17_i32 = arith.constant 17 : i32
    %219 = tpu.dynamic_rotate %15 by %c17_i32 dim 1 : vector<8x512xf32>, i32 -> vector<8x512xf32>
    %220 = vector.extract_strided_slice %219 {offsets = [0, 128], sizes = [8, 256], strides = [1, 1]} : vector<8x512xf32> to vector<8x256xf32>
    %c16 = arith.constant 16 : index
    %221 = memref.load %arg1[%c16] : memref<98xf32, #tpu.memory_space<smem>>
    %222 = vector.extract_strided_slice %220 {offsets = [0, 0], sizes = [1, 256], strides = [1, 1]} : vector<8x256xf32> to vector<1x256xf32>
    %223 = vector.broadcast %221 : f32 to vector<1x256xf32>
    %224 = arith.mulf %223, %222 : vector<1x256xf32>
    %225 = arith.addf %218, %224 : vector<1x256xf32>
    %c65 = arith.constant 65 : index
    %226 = memref.load %arg1[%c65] : memref<98xf32, #tpu.memory_space<smem>>
    %227 = vector.extract_strided_slice %220 {offsets = [1, 0], sizes = [1, 256], strides = [1, 1]} : vector<8x256xf32> to vector<1x256xf32>
    %228 = vector.broadcast %226 : f32 to vector<1x256xf32>
    %229 = arith.mulf %228, %227 : vector<1x256xf32>
    %230 = arith.addf %225, %229 : vector<1x256xf32>
    %c1_i32 = arith.constant 1 : i32
    %231 = tpu.dynamic_rotate %15 by %c1_i32 dim 1 : vector<8x512xf32>, i32 -> vector<8x512xf32>
    %232 = vector.extract_strided_slice %231 {offsets = [0, 128], sizes = [8, 256], strides = [1, 1]} : vector<8x512xf32> to vector<8x256xf32>
    %c23 = arith.constant 23 : index
    %233 = memref.load %arg1[%c23] : memref<98xf32, #tpu.memory_space<smem>>
    %234 = vector.extract_strided_slice %232 {offsets = [0, 0], sizes = [1, 256], strides = [1, 1]} : vector<8x256xf32> to vector<1x256xf32>
    %235 = vector.broadcast %233 : f32 to vector<1x256xf32>
    %236 = arith.mulf %235, %234 : vector<1x256xf32>
    %237 = arith.addf %230, %236 : vector<1x256xf32>
    %c72 = arith.constant 72 : index
    %238 = memref.load %arg1[%c72] : memref<98xf32, #tpu.memory_space<smem>>
    %239 = vector.extract_strided_slice %232 {offsets = [1, 0], sizes = [1, 256], strides = [1, 1]} : vector<8x256xf32> to vector<1x256xf32>
    %240 = vector.broadcast %238 : f32 to vector<1x256xf32>
    %241 = arith.mulf %240, %239 : vector<1x256xf32>
    %242 = arith.addf %237, %241 : vector<1x256xf32>
    %c497_i32 = arith.constant 497 : i32
    %243 = tpu.dynamic_rotate %15 by %c497_i32 dim 1 : vector<8x512xf32>, i32 -> vector<8x512xf32>
    %244 = vector.extract_strided_slice %243 {offsets = [0, 128], sizes = [8, 256], strides = [1, 1]} : vector<8x512xf32> to vector<8x256xf32>
    %c30 = arith.constant 30 : index
    %245 = memref.load %arg1[%c30] : memref<98xf32, #tpu.memory_space<smem>>
    %246 = vector.extract_strided_slice %244 {offsets = [0, 0], sizes = [1, 256], strides = [1, 1]} : vector<8x256xf32> to vector<1x256xf32>
    %247 = vector.broadcast %245 : f32 to vector<1x256xf32>
    %248 = arith.mulf %247, %246 : vector<1x256xf32>
    %249 = arith.addf %242, %248 : vector<1x256xf32>
    %c79 = arith.constant 79 : index
    %250 = memref.load %arg1[%c79] : memref<98xf32, #tpu.memory_space<smem>>
    %251 = vector.extract_strided_slice %244 {offsets = [1, 0], sizes = [1, 256], strides = [1, 1]} : vector<8x256xf32> to vector<1x256xf32>
    %252 = vector.broadcast %250 : f32 to vector<1x256xf32>
    %253 = arith.mulf %252, %251 : vector<1x256xf32>
    %254 = arith.addf %249, %253 : vector<1x256xf32>
    %c481_i32 = arith.constant 481 : i32
    %255 = tpu.dynamic_rotate %15 by %c481_i32 dim 1 : vector<8x512xf32>, i32 -> vector<8x512xf32>
    %256 = vector.extract_strided_slice %255 {offsets = [0, 128], sizes = [8, 256], strides = [1, 1]} : vector<8x512xf32> to vector<8x256xf32>
    %c37 = arith.constant 37 : index
    %257 = memref.load %arg1[%c37] : memref<98xf32, #tpu.memory_space<smem>>
    %258 = vector.extract_strided_slice %256 {offsets = [0, 0], sizes = [1, 256], strides = [1, 1]} : vector<8x256xf32> to vector<1x256xf32>
    %259 = vector.broadcast %257 : f32 to vector<1x256xf32>
    %260 = arith.mulf %259, %258 : vector<1x256xf32>
    %261 = arith.addf %254, %260 : vector<1x256xf32>
    %c86 = arith.constant 86 : index
    %262 = memref.load %arg1[%c86] : memref<98xf32, #tpu.memory_space<smem>>
    %263 = vector.extract_strided_slice %256 {offsets = [1, 0], sizes = [1, 256], strides = [1, 1]} : vector<8x256xf32> to vector<1x256xf32>
    %264 = vector.broadcast %262 : f32 to vector<1x256xf32>
    %265 = arith.mulf %264, %263 : vector<1x256xf32>
    %266 = arith.addf %261, %265 : vector<1x256xf32>
    %c465_i32 = arith.constant 465 : i32
    %267 = tpu.dynamic_rotate %15 by %c465_i32 dim 1 : vector<8x512xf32>, i32 -> vector<8x512xf32>
    %268 = vector.extract_strided_slice %267 {offsets = [0, 128], sizes = [8, 256], strides = [1, 1]} : vector<8x512xf32> to vector<8x256xf32>
    %c44 = arith.constant 44 : index
    %269 = memref.load %arg1[%c44] : memref<98xf32, #tpu.memory_space<smem>>
    %270 = vector.extract_strided_slice %268 {offsets = [0, 0], sizes = [1, 256], strides = [1, 1]} : vector<8x256xf32> to vector<1x256xf32>
    %271 = vector.broadcast %269 : f32 to vector<1x256xf32>
    %272 = arith.mulf %271, %270 : vector<1x256xf32>
    %273 = arith.addf %266, %272 : vector<1x256xf32>
    %c93 = arith.constant 93 : index
    %274 = memref.load %arg1[%c93] : memref<98xf32, #tpu.memory_space<smem>>
    %275 = vector.extract_strided_slice %268 {offsets = [1, 0], sizes = [1, 256], strides = [1, 1]} : vector<8x256xf32> to vector<1x256xf32>
    %276 = vector.broadcast %274 : f32 to vector<1x256xf32>
    %277 = arith.mulf %276, %275 : vector<1x256xf32>
    %278 = arith.addf %273, %277 : vector<1x256xf32>
    %279 = vector.extract_strided_slice %16 {offsets = [2, 0], sizes = [1, 256], strides = [1, 1]} : vector<7x256xf32> to vector<1x256xf32>
    %280 = arith.mulf %279, %278 : vector<1x256xf32>
    %281 = arith.addf %193, %280 : vector<1x256xf32>
    %cst_15 = arith.constant 0.000000e+00 : f32
    %282 = vector.broadcast %cst_15 : f32 to vector<1x256xf32>
    %c48_i32 = arith.constant 48 : i32
    %283 = tpu.dynamic_rotate %15 by %c48_i32 dim 1 : vector<8x512xf32>, i32 -> vector<8x512xf32>
    %284 = vector.extract_strided_slice %283 {offsets = [0, 128], sizes = [8, 256], strides = [1, 1]} : vector<8x512xf32> to vector<8x256xf32>
    %c3 = arith.constant 3 : index
    %285 = memref.load %arg1[%c3] : memref<98xf32, #tpu.memory_space<smem>>
    %286 = vector.extract_strided_slice %284 {offsets = [0, 0], sizes = [1, 256], strides = [1, 1]} : vector<8x256xf32> to vector<1x256xf32>
    %287 = vector.broadcast %285 : f32 to vector<1x256xf32>
    %288 = arith.mulf %287, %286 : vector<1x256xf32>
    %289 = arith.addf %282, %288 : vector<1x256xf32>
    %c52 = arith.constant 52 : index
    %290 = memref.load %arg1[%c52] : memref<98xf32, #tpu.memory_space<smem>>
    %291 = vector.extract_strided_slice %284 {offsets = [1, 0], sizes = [1, 256], strides = [1, 1]} : vector<8x256xf32> to vector<1x256xf32>
    %292 = vector.broadcast %290 : f32 to vector<1x256xf32>
    %293 = arith.mulf %292, %291 : vector<1x256xf32>
    %294 = arith.addf %289, %293 : vector<1x256xf32>
    %c32_i32 = arith.constant 32 : i32
    %295 = tpu.dynamic_rotate %15 by %c32_i32 dim 1 : vector<8x512xf32>, i32 -> vector<8x512xf32>
    %296 = vector.extract_strided_slice %295 {offsets = [0, 128], sizes = [8, 256], strides = [1, 1]} : vector<8x512xf32> to vector<8x256xf32>
    %c10 = arith.constant 10 : index
    %297 = memref.load %arg1[%c10] : memref<98xf32, #tpu.memory_space<smem>>
    %298 = vector.extract_strided_slice %296 {offsets = [0, 0], sizes = [1, 256], strides = [1, 1]} : vector<8x256xf32> to vector<1x256xf32>
    %299 = vector.broadcast %297 : f32 to vector<1x256xf32>
    %300 = arith.mulf %299, %298 : vector<1x256xf32>
    %301 = arith.addf %294, %300 : vector<1x256xf32>
    %c59 = arith.constant 59 : index
    %302 = memref.load %arg1[%c59] : memref<98xf32, #tpu.memory_space<smem>>
    %303 = vector.extract_strided_slice %296 {offsets = [1, 0], sizes = [1, 256], strides = [1, 1]} : vector<8x256xf32> to vector<1x256xf32>
    %304 = vector.broadcast %302 : f32 to vector<1x256xf32>
    %305 = arith.mulf %304, %303 : vector<1x256xf32>
    %306 = arith.addf %301, %305 : vector<1x256xf32>
    %c16_i32 = arith.constant 16 : i32
    %307 = tpu.dynamic_rotate %15 by %c16_i32 dim 1 : vector<8x512xf32>, i32 -> vector<8x512xf32>
    %308 = vector.extract_strided_slice %307 {offsets = [0, 128], sizes = [8, 256], strides = [1, 1]} : vector<8x512xf32> to vector<8x256xf32>
    %c17 = arith.constant 17 : index
    %309 = memref.load %arg1[%c17] : memref<98xf32, #tpu.memory_space<smem>>
    %310 = vector.extract_strided_slice %308 {offsets = [0, 0], sizes = [1, 256], strides = [1, 1]} : vector<8x256xf32> to vector<1x256xf32>
    %311 = vector.broadcast %309 : f32 to vector<1x256xf32>
    %312 = arith.mulf %311, %310 : vector<1x256xf32>
    %313 = arith.addf %306, %312 : vector<1x256xf32>
    %c66 = arith.constant 66 : index
    %314 = memref.load %arg1[%c66] : memref<98xf32, #tpu.memory_space<smem>>
    %315 = vector.extract_strided_slice %308 {offsets = [1, 0], sizes = [1, 256], strides = [1, 1]} : vector<8x256xf32> to vector<1x256xf32>
    %316 = vector.broadcast %314 : f32 to vector<1x256xf32>
    %317 = arith.mulf %316, %315 : vector<1x256xf32>
    %318 = arith.addf %313, %317 : vector<1x256xf32>
    %319 = vector.extract_strided_slice %15 {offsets = [0, 128], sizes = [8, 256], strides = [1, 1]} : vector<8x512xf32> to vector<8x256xf32>
    %c24 = arith.constant 24 : index
    %320 = memref.load %arg1[%c24] : memref<98xf32, #tpu.memory_space<smem>>
    %321 = vector.extract_strided_slice %319 {offsets = [0, 0], sizes = [1, 256], strides = [1, 1]} : vector<8x256xf32> to vector<1x256xf32>
    %322 = vector.broadcast %320 : f32 to vector<1x256xf32>
    %323 = arith.mulf %322, %321 : vector<1x256xf32>
    %324 = arith.addf %318, %323 : vector<1x256xf32>
    %c73 = arith.constant 73 : index
    %325 = memref.load %arg1[%c73] : memref<98xf32, #tpu.memory_space<smem>>
    %326 = vector.extract_strided_slice %319 {offsets = [1, 0], sizes = [1, 256], strides = [1, 1]} : vector<8x256xf32> to vector<1x256xf32>
    %327 = vector.broadcast %325 : f32 to vector<1x256xf32>
    %328 = arith.mulf %327, %326 : vector<1x256xf32>
    %329 = arith.addf %324, %328 : vector<1x256xf32>
    %c496_i32 = arith.constant 496 : i32
    %330 = tpu.dynamic_rotate %15 by %c496_i32 dim 1 : vector<8x512xf32>, i32 -> vector<8x512xf32>
    %331 = vector.extract_strided_slice %330 {offsets = [0, 128], sizes = [8, 256], strides = [1, 1]} : vector<8x512xf32> to vector<8x256xf32>
    %c31 = arith.constant 31 : index
    %332 = memref.load %arg1[%c31] : memref<98xf32, #tpu.memory_space<smem>>
    %333 = vector.extract_strided_slice %331 {offsets = [0, 0], sizes = [1, 256], strides = [1, 1]} : vector<8x256xf32> to vector<1x256xf32>
    %334 = vector.broadcast %332 : f32 to vector<1x256xf32>
    %335 = arith.mulf %334, %333 : vector<1x256xf32>
    %336 = arith.addf %329, %335 : vector<1x256xf32>
    %c80 = arith.constant 80 : index
    %337 = memref.load %arg1[%c80] : memref<98xf32, #tpu.memory_space<smem>>
    %338 = vector.extract_strided_slice %331 {offsets = [1, 0], sizes = [1, 256], strides = [1, 1]} : vector<8x256xf32> to vector<1x256xf32>
    %339 = vector.broadcast %337 : f32 to vector<1x256xf32>
    %340 = arith.mulf %339, %338 : vector<1x256xf32>
    %341 = arith.addf %336, %340 : vector<1x256xf32>
    %c480_i32 = arith.constant 480 : i32
    %342 = tpu.dynamic_rotate %15 by %c480_i32 dim 1 : vector<8x512xf32>, i32 -> vector<8x512xf32>
    %343 = vector.extract_strided_slice %342 {offsets = [0, 128], sizes = [8, 256], strides = [1, 1]} : vector<8x512xf32> to vector<8x256xf32>
    %c38 = arith.constant 38 : index
    %344 = memref.load %arg1[%c38] : memref<98xf32, #tpu.memory_space<smem>>
    %345 = vector.extract_strided_slice %343 {offsets = [0, 0], sizes = [1, 256], strides = [1, 1]} : vector<8x256xf32> to vector<1x256xf32>
    %346 = vector.broadcast %344 : f32 to vector<1x256xf32>
    %347 = arith.mulf %346, %345 : vector<1x256xf32>
    %348 = arith.addf %341, %347 : vector<1x256xf32>
    %c87 = arith.constant 87 : index
    %349 = memref.load %arg1[%c87] : memref<98xf32, #tpu.memory_space<smem>>
    %350 = vector.extract_strided_slice %343 {offsets = [1, 0], sizes = [1, 256], strides = [1, 1]} : vector<8x256xf32> to vector<1x256xf32>
    %351 = vector.broadcast %349 : f32 to vector<1x256xf32>
    %352 = arith.mulf %351, %350 : vector<1x256xf32>
    %353 = arith.addf %348, %352 : vector<1x256xf32>
    %c464_i32 = arith.constant 464 : i32
    %354 = tpu.dynamic_rotate %15 by %c464_i32 dim 1 : vector<8x512xf32>, i32 -> vector<8x512xf32>
    %355 = vector.extract_strided_slice %354 {offsets = [0, 128], sizes = [8, 256], strides = [1, 1]} : vector<8x512xf32> to vector<8x256xf32>
    %c45 = arith.constant 45 : index
    %356 = memref.load %arg1[%c45] : memref<98xf32, #tpu.memory_space<smem>>
    %357 = vector.extract_strided_slice %355 {offsets = [0, 0], sizes = [1, 256], strides = [1, 1]} : vector<8x256xf32> to vector<1x256xf32>
    %358 = vector.broadcast %356 : f32 to vector<1x256xf32>
    %359 = arith.mulf %358, %357 : vector<1x256xf32>
    %360 = arith.addf %353, %359 : vector<1x256xf32>
    %c94 = arith.constant 94 : index
    %361 = memref.load %arg1[%c94] : memref<98xf32, #tpu.memory_space<smem>>
    %362 = vector.extract_strided_slice %355 {offsets = [1, 0], sizes = [1, 256], strides = [1, 1]} : vector<8x256xf32> to vector<1x256xf32>
    %363 = vector.broadcast %361 : f32 to vector<1x256xf32>
    %364 = arith.mulf %363, %362 : vector<1x256xf32>
    %365 = arith.addf %360, %364 : vector<1x256xf32>
    %366 = vector.extract_strided_slice %16 {offsets = [3, 0], sizes = [1, 256], strides = [1, 1]} : vector<7x256xf32> to vector<1x256xf32>
    %367 = arith.mulf %366, %365 : vector<1x256xf32>
    %368 = arith.addf %281, %367 : vector<1x256xf32>
    %cst_16 = arith.constant 0.000000e+00 : f32
    %369 = vector.broadcast %cst_16 : f32 to vector<1x256xf32>
    %c47_i32 = arith.constant 47 : i32
    %370 = tpu.dynamic_rotate %15 by %c47_i32 dim 1 : vector<8x512xf32>, i32 -> vector<8x512xf32>
    %371 = vector.extract_strided_slice %370 {offsets = [0, 128], sizes = [8, 256], strides = [1, 1]} : vector<8x512xf32> to vector<8x256xf32>
    %c4 = arith.constant 4 : index
    %372 = memref.load %arg1[%c4] : memref<98xf32, #tpu.memory_space<smem>>
    %373 = vector.extract_strided_slice %371 {offsets = [0, 0], sizes = [1, 256], strides = [1, 1]} : vector<8x256xf32> to vector<1x256xf32>
    %374 = vector.broadcast %372 : f32 to vector<1x256xf32>
    %375 = arith.mulf %374, %373 : vector<1x256xf32>
    %376 = arith.addf %369, %375 : vector<1x256xf32>
    %c53 = arith.constant 53 : index
    %377 = memref.load %arg1[%c53] : memref<98xf32, #tpu.memory_space<smem>>
    %378 = vector.extract_strided_slice %371 {offsets = [1, 0], sizes = [1, 256], strides = [1, 1]} : vector<8x256xf32> to vector<1x256xf32>
    %379 = vector.broadcast %377 : f32 to vector<1x256xf32>
    %380 = arith.mulf %379, %378 : vector<1x256xf32>
    %381 = arith.addf %376, %380 : vector<1x256xf32>
    %c31_i32 = arith.constant 31 : i32
    %382 = tpu.dynamic_rotate %15 by %c31_i32 dim 1 : vector<8x512xf32>, i32 -> vector<8x512xf32>
    %383 = vector.extract_strided_slice %382 {offsets = [0, 128], sizes = [8, 256], strides = [1, 1]} : vector<8x512xf32> to vector<8x256xf32>
    %c11 = arith.constant 11 : index
    %384 = memref.load %arg1[%c11] : memref<98xf32, #tpu.memory_space<smem>>
    %385 = vector.extract_strided_slice %383 {offsets = [0, 0], sizes = [1, 256], strides = [1, 1]} : vector<8x256xf32> to vector<1x256xf32>
    %386 = vector.broadcast %384 : f32 to vector<1x256xf32>
    %387 = arith.mulf %386, %385 : vector<1x256xf32>
    %388 = arith.addf %381, %387 : vector<1x256xf32>
    %c60 = arith.constant 60 : index
    %389 = memref.load %arg1[%c60] : memref<98xf32, #tpu.memory_space<smem>>
    %390 = vector.extract_strided_slice %383 {offsets = [1, 0], sizes = [1, 256], strides = [1, 1]} : vector<8x256xf32> to vector<1x256xf32>
    %391 = vector.broadcast %389 : f32 to vector<1x256xf32>
    %392 = arith.mulf %391, %390 : vector<1x256xf32>
    %393 = arith.addf %388, %392 : vector<1x256xf32>
    %c15_i32 = arith.constant 15 : i32
    %394 = tpu.dynamic_rotate %15 by %c15_i32 dim 1 : vector<8x512xf32>, i32 -> vector<8x512xf32>
    %395 = vector.extract_strided_slice %394 {offsets = [0, 128], sizes = [8, 256], strides = [1, 1]} : vector<8x512xf32> to vector<8x256xf32>
    %c18 = arith.constant 18 : index
    %396 = memref.load %arg1[%c18] : memref<98xf32, #tpu.memory_space<smem>>
    %397 = vector.extract_strided_slice %395 {offsets = [0, 0], sizes = [1, 256], strides = [1, 1]} : vector<8x256xf32> to vector<1x256xf32>
    %398 = vector.broadcast %396 : f32 to vector<1x256xf32>
    %399 = arith.mulf %398, %397 : vector<1x256xf32>
    %400 = arith.addf %393, %399 : vector<1x256xf32>
    %c67 = arith.constant 67 : index
    %401 = memref.load %arg1[%c67] : memref<98xf32, #tpu.memory_space<smem>>
    %402 = vector.extract_strided_slice %395 {offsets = [1, 0], sizes = [1, 256], strides = [1, 1]} : vector<8x256xf32> to vector<1x256xf32>
    %403 = vector.broadcast %401 : f32 to vector<1x256xf32>
    %404 = arith.mulf %403, %402 : vector<1x256xf32>
    %405 = arith.addf %400, %404 : vector<1x256xf32>
    %c511_i32 = arith.constant 511 : i32
    %406 = tpu.dynamic_rotate %15 by %c511_i32 dim 1 : vector<8x512xf32>, i32 -> vector<8x512xf32>
    %407 = vector.extract_strided_slice %406 {offsets = [0, 128], sizes = [8, 256], strides = [1, 1]} : vector<8x512xf32> to vector<8x256xf32>
    %c25 = arith.constant 25 : index
    %408 = memref.load %arg1[%c25] : memref<98xf32, #tpu.memory_space<smem>>
    %409 = vector.extract_strided_slice %407 {offsets = [0, 0], sizes = [1, 256], strides = [1, 1]} : vector<8x256xf32> to vector<1x256xf32>
    %410 = vector.broadcast %408 : f32 to vector<1x256xf32>
    %411 = arith.mulf %410, %409 : vector<1x256xf32>
    %412 = arith.addf %405, %411 : vector<1x256xf32>
    %c74 = arith.constant 74 : index
    %413 = memref.load %arg1[%c74] : memref<98xf32, #tpu.memory_space<smem>>
    %414 = vector.extract_strided_slice %407 {offsets = [1, 0], sizes = [1, 256], strides = [1, 1]} : vector<8x256xf32> to vector<1x256xf32>
    %415 = vector.broadcast %413 : f32 to vector<1x256xf32>
    %416 = arith.mulf %415, %414 : vector<1x256xf32>
    %417 = arith.addf %412, %416 : vector<1x256xf32>
    %c495_i32 = arith.constant 495 : i32
    %418 = tpu.dynamic_rotate %15 by %c495_i32 dim 1 : vector<8x512xf32>, i32 -> vector<8x512xf32>
    %419 = vector.extract_strided_slice %418 {offsets = [0, 128], sizes = [8, 256], strides = [1, 1]} : vector<8x512xf32> to vector<8x256xf32>
    %c32 = arith.constant 32 : index
    %420 = memref.load %arg1[%c32] : memref<98xf32, #tpu.memory_space<smem>>
    %421 = vector.extract_strided_slice %419 {offsets = [0, 0], sizes = [1, 256], strides = [1, 1]} : vector<8x256xf32> to vector<1x256xf32>
    %422 = vector.broadcast %420 : f32 to vector<1x256xf32>
    %423 = arith.mulf %422, %421 : vector<1x256xf32>
    %424 = arith.addf %417, %423 : vector<1x256xf32>
    %c81 = arith.constant 81 : index
    %425 = memref.load %arg1[%c81] : memref<98xf32, #tpu.memory_space<smem>>
    %426 = vector.extract_strided_slice %419 {offsets = [1, 0], sizes = [1, 256], strides = [1, 1]} : vector<8x256xf32> to vector<1x256xf32>
    %427 = vector.broadcast %425 : f32 to vector<1x256xf32>
    %428 = arith.mulf %427, %426 : vector<1x256xf32>
    %429 = arith.addf %424, %428 : vector<1x256xf32>
    %c479_i32 = arith.constant 479 : i32
    %430 = tpu.dynamic_rotate %15 by %c479_i32 dim 1 : vector<8x512xf32>, i32 -> vector<8x512xf32>
    %431 = vector.extract_strided_slice %430 {offsets = [0, 128], sizes = [8, 256], strides = [1, 1]} : vector<8x512xf32> to vector<8x256xf32>
    %c39 = arith.constant 39 : index
    %432 = memref.load %arg1[%c39] : memref<98xf32, #tpu.memory_space<smem>>
    %433 = vector.extract_strided_slice %431 {offsets = [0, 0], sizes = [1, 256], strides = [1, 1]} : vector<8x256xf32> to vector<1x256xf32>
    %434 = vector.broadcast %432 : f32 to vector<1x256xf32>
    %435 = arith.mulf %434, %433 : vector<1x256xf32>
    %436 = arith.addf %429, %435 : vector<1x256xf32>
    %c88 = arith.constant 88 : index
    %437 = memref.load %arg1[%c88] : memref<98xf32, #tpu.memory_space<smem>>
    %438 = vector.extract_strided_slice %431 {offsets = [1, 0], sizes = [1, 256], strides = [1, 1]} : vector<8x256xf32> to vector<1x256xf32>
    %439 = vector.broadcast %437 : f32 to vector<1x256xf32>
    %440 = arith.mulf %439, %438 : vector<1x256xf32>
    %441 = arith.addf %436, %440 : vector<1x256xf32>
    %c463_i32 = arith.constant 463 : i32
    %442 = tpu.dynamic_rotate %15 by %c463_i32 dim 1 : vector<8x512xf32>, i32 -> vector<8x512xf32>
    %443 = vector.extract_strided_slice %442 {offsets = [0, 128], sizes = [8, 256], strides = [1, 1]} : vector<8x512xf32> to vector<8x256xf32>
    %c46 = arith.constant 46 : index
    %444 = memref.load %arg1[%c46] : memref<98xf32, #tpu.memory_space<smem>>
    %445 = vector.extract_strided_slice %443 {offsets = [0, 0], sizes = [1, 256], strides = [1, 1]} : vector<8x256xf32> to vector<1x256xf32>
    %446 = vector.broadcast %444 : f32 to vector<1x256xf32>
    %447 = arith.mulf %446, %445 : vector<1x256xf32>
    %448 = arith.addf %441, %447 : vector<1x256xf32>
    %c95 = arith.constant 95 : index
    %449 = memref.load %arg1[%c95] : memref<98xf32, #tpu.memory_space<smem>>
    %450 = vector.extract_strided_slice %443 {offsets = [1, 0], sizes = [1, 256], strides = [1, 1]} : vector<8x256xf32> to vector<1x256xf32>
    %451 = vector.broadcast %449 : f32 to vector<1x256xf32>
    %452 = arith.mulf %451, %450 : vector<1x256xf32>
    %453 = arith.addf %448, %452 : vector<1x256xf32>
    %454 = vector.extract_strided_slice %16 {offsets = [4, 0], sizes = [1, 256], strides = [1, 1]} : vector<7x256xf32> to vector<1x256xf32>
    %455 = arith.mulf %454, %453 : vector<1x256xf32>
    %456 = arith.addf %368, %455 : vector<1x256xf32>
    %cst_17 = arith.constant 0.000000e+00 : f32
    %457 = vector.broadcast %cst_17 : f32 to vector<1x256xf32>
    %c46_i32 = arith.constant 46 : i32
    %458 = tpu.dynamic_rotate %15 by %c46_i32 dim 1 : vector<8x512xf32>, i32 -> vector<8x512xf32>
    %459 = vector.extract_strided_slice %458 {offsets = [0, 128], sizes = [8, 256], strides = [1, 1]} : vector<8x512xf32> to vector<8x256xf32>
    %c5 = arith.constant 5 : index
    %460 = memref.load %arg1[%c5] : memref<98xf32, #tpu.memory_space<smem>>
    %461 = vector.extract_strided_slice %459 {offsets = [0, 0], sizes = [1, 256], strides = [1, 1]} : vector<8x256xf32> to vector<1x256xf32>
    %462 = vector.broadcast %460 : f32 to vector<1x256xf32>
    %463 = arith.mulf %462, %461 : vector<1x256xf32>
    %464 = arith.addf %457, %463 : vector<1x256xf32>
    %c54 = arith.constant 54 : index
    %465 = memref.load %arg1[%c54] : memref<98xf32, #tpu.memory_space<smem>>
    %466 = vector.extract_strided_slice %459 {offsets = [1, 0], sizes = [1, 256], strides = [1, 1]} : vector<8x256xf32> to vector<1x256xf32>
    %467 = vector.broadcast %465 : f32 to vector<1x256xf32>
    %468 = arith.mulf %467, %466 : vector<1x256xf32>
    %469 = arith.addf %464, %468 : vector<1x256xf32>
    %c30_i32 = arith.constant 30 : i32
    %470 = tpu.dynamic_rotate %15 by %c30_i32 dim 1 : vector<8x512xf32>, i32 -> vector<8x512xf32>
    %471 = vector.extract_strided_slice %470 {offsets = [0, 128], sizes = [8, 256], strides = [1, 1]} : vector<8x512xf32> to vector<8x256xf32>
    %c12 = arith.constant 12 : index
    %472 = memref.load %arg1[%c12] : memref<98xf32, #tpu.memory_space<smem>>
    %473 = vector.extract_strided_slice %471 {offsets = [0, 0], sizes = [1, 256], strides = [1, 1]} : vector<8x256xf32> to vector<1x256xf32>
    %474 = vector.broadcast %472 : f32 to vector<1x256xf32>
    %475 = arith.mulf %474, %473 : vector<1x256xf32>
    %476 = arith.addf %469, %475 : vector<1x256xf32>
    %c61 = arith.constant 61 : index
    %477 = memref.load %arg1[%c61] : memref<98xf32, #tpu.memory_space<smem>>
    %478 = vector.extract_strided_slice %471 {offsets = [1, 0], sizes = [1, 256], strides = [1, 1]} : vector<8x256xf32> to vector<1x256xf32>
    %479 = vector.broadcast %477 : f32 to vector<1x256xf32>
    %480 = arith.mulf %479, %478 : vector<1x256xf32>
    %481 = arith.addf %476, %480 : vector<1x256xf32>
    %c14_i32 = arith.constant 14 : i32
    %482 = tpu.dynamic_rotate %15 by %c14_i32 dim 1 : vector<8x512xf32>, i32 -> vector<8x512xf32>
    %483 = vector.extract_strided_slice %482 {offsets = [0, 128], sizes = [8, 256], strides = [1, 1]} : vector<8x512xf32> to vector<8x256xf32>
    %c19 = arith.constant 19 : index
    %484 = memref.load %arg1[%c19] : memref<98xf32, #tpu.memory_space<smem>>
    %485 = vector.extract_strided_slice %483 {offsets = [0, 0], sizes = [1, 256], strides = [1, 1]} : vector<8x256xf32> to vector<1x256xf32>
    %486 = vector.broadcast %484 : f32 to vector<1x256xf32>
    %487 = arith.mulf %486, %485 : vector<1x256xf32>
    %488 = arith.addf %481, %487 : vector<1x256xf32>
    %c68 = arith.constant 68 : index
    %489 = memref.load %arg1[%c68] : memref<98xf32, #tpu.memory_space<smem>>
    %490 = vector.extract_strided_slice %483 {offsets = [1, 0], sizes = [1, 256], strides = [1, 1]} : vector<8x256xf32> to vector<1x256xf32>
    %491 = vector.broadcast %489 : f32 to vector<1x256xf32>
    %492 = arith.mulf %491, %490 : vector<1x256xf32>
    %493 = arith.addf %488, %492 : vector<1x256xf32>
    %c510_i32 = arith.constant 510 : i32
    %494 = tpu.dynamic_rotate %15 by %c510_i32 dim 1 : vector<8x512xf32>, i32 -> vector<8x512xf32>
    %495 = vector.extract_strided_slice %494 {offsets = [0, 128], sizes = [8, 256], strides = [1, 1]} : vector<8x512xf32> to vector<8x256xf32>
    %c26 = arith.constant 26 : index
    %496 = memref.load %arg1[%c26] : memref<98xf32, #tpu.memory_space<smem>>
    %497 = vector.extract_strided_slice %495 {offsets = [0, 0], sizes = [1, 256], strides = [1, 1]} : vector<8x256xf32> to vector<1x256xf32>
    %498 = vector.broadcast %496 : f32 to vector<1x256xf32>
    %499 = arith.mulf %498, %497 : vector<1x256xf32>
    %500 = arith.addf %493, %499 : vector<1x256xf32>
    %c75 = arith.constant 75 : index
    %501 = memref.load %arg1[%c75] : memref<98xf32, #tpu.memory_space<smem>>
    %502 = vector.extract_strided_slice %495 {offsets = [1, 0], sizes = [1, 256], strides = [1, 1]} : vector<8x256xf32> to vector<1x256xf32>
    %503 = vector.broadcast %501 : f32 to vector<1x256xf32>
    %504 = arith.mulf %503, %502 : vector<1x256xf32>
    %505 = arith.addf %500, %504 : vector<1x256xf32>
    %c494_i32 = arith.constant 494 : i32
    %506 = tpu.dynamic_rotate %15 by %c494_i32 dim 1 : vector<8x512xf32>, i32 -> vector<8x512xf32>
    %507 = vector.extract_strided_slice %506 {offsets = [0, 128], sizes = [8, 256], strides = [1, 1]} : vector<8x512xf32> to vector<8x256xf32>
    %c33 = arith.constant 33 : index
    %508 = memref.load %arg1[%c33] : memref<98xf32, #tpu.memory_space<smem>>
    %509 = vector.extract_strided_slice %507 {offsets = [0, 0], sizes = [1, 256], strides = [1, 1]} : vector<8x256xf32> to vector<1x256xf32>
    %510 = vector.broadcast %508 : f32 to vector<1x256xf32>
    %511 = arith.mulf %510, %509 : vector<1x256xf32>
    %512 = arith.addf %505, %511 : vector<1x256xf32>
    %c82 = arith.constant 82 : index
    %513 = memref.load %arg1[%c82] : memref<98xf32, #tpu.memory_space<smem>>
    %514 = vector.extract_strided_slice %507 {offsets = [1, 0], sizes = [1, 256], strides = [1, 1]} : vector<8x256xf32> to vector<1x256xf32>
    %515 = vector.broadcast %513 : f32 to vector<1x256xf32>
    %516 = arith.mulf %515, %514 : vector<1x256xf32>
    %517 = arith.addf %512, %516 : vector<1x256xf32>
    %c478_i32 = arith.constant 478 : i32
    %518 = tpu.dynamic_rotate %15 by %c478_i32 dim 1 : vector<8x512xf32>, i32 -> vector<8x512xf32>
    %519 = vector.extract_strided_slice %518 {offsets = [0, 128], sizes = [8, 256], strides = [1, 1]} : vector<8x512xf32> to vector<8x256xf32>
    %c40 = arith.constant 40 : index
    %520 = memref.load %arg1[%c40] : memref<98xf32, #tpu.memory_space<smem>>
    %521 = vector.extract_strided_slice %519 {offsets = [0, 0], sizes = [1, 256], strides = [1, 1]} : vector<8x256xf32> to vector<1x256xf32>
    %522 = vector.broadcast %520 : f32 to vector<1x256xf32>
    %523 = arith.mulf %522, %521 : vector<1x256xf32>
    %524 = arith.addf %517, %523 : vector<1x256xf32>
    %c89 = arith.constant 89 : index
    %525 = memref.load %arg1[%c89] : memref<98xf32, #tpu.memory_space<smem>>
    %526 = vector.extract_strided_slice %519 {offsets = [1, 0], sizes = [1, 256], strides = [1, 1]} : vector<8x256xf32> to vector<1x256xf32>
    %527 = vector.broadcast %525 : f32 to vector<1x256xf32>
    %528 = arith.mulf %527, %526 : vector<1x256xf32>
    %529 = arith.addf %524, %528 : vector<1x256xf32>
    %c462_i32 = arith.constant 462 : i32
    %530 = tpu.dynamic_rotate %15 by %c462_i32 dim 1 : vector<8x512xf32>, i32 -> vector<8x512xf32>
    %531 = vector.extract_strided_slice %530 {offsets = [0, 128], sizes = [8, 256], strides = [1, 1]} : vector<8x512xf32> to vector<8x256xf32>
    %c47 = arith.constant 47 : index
    %532 = memref.load %arg1[%c47] : memref<98xf32, #tpu.memory_space<smem>>
    %533 = vector.extract_strided_slice %531 {offsets = [0, 0], sizes = [1, 256], strides = [1, 1]} : vector<8x256xf32> to vector<1x256xf32>
    %534 = vector.broadcast %532 : f32 to vector<1x256xf32>
    %535 = arith.mulf %534, %533 : vector<1x256xf32>
    %536 = arith.addf %529, %535 : vector<1x256xf32>
    %c96 = arith.constant 96 : index
    %537 = memref.load %arg1[%c96] : memref<98xf32, #tpu.memory_space<smem>>
    %538 = vector.extract_strided_slice %531 {offsets = [1, 0], sizes = [1, 256], strides = [1, 1]} : vector<8x256xf32> to vector<1x256xf32>
    %539 = vector.broadcast %537 : f32 to vector<1x256xf32>
    %540 = arith.mulf %539, %538 : vector<1x256xf32>
    %541 = arith.addf %536, %540 : vector<1x256xf32>
    %542 = vector.extract_strided_slice %16 {offsets = [5, 0], sizes = [1, 256], strides = [1, 1]} : vector<7x256xf32> to vector<1x256xf32>
    %543 = arith.mulf %542, %541 : vector<1x256xf32>
    %544 = arith.addf %456, %543 : vector<1x256xf32>
    %cst_18 = arith.constant 0.000000e+00 : f32
    %545 = vector.broadcast %cst_18 : f32 to vector<1x256xf32>
    %c45_i32 = arith.constant 45 : i32
    %546 = tpu.dynamic_rotate %15 by %c45_i32 dim 1 : vector<8x512xf32>, i32 -> vector<8x512xf32>
    %547 = vector.extract_strided_slice %546 {offsets = [0, 128], sizes = [8, 256], strides = [1, 1]} : vector<8x512xf32> to vector<8x256xf32>
    %c6 = arith.constant 6 : index
    %548 = memref.load %arg1[%c6] : memref<98xf32, #tpu.memory_space<smem>>
    %549 = vector.extract_strided_slice %547 {offsets = [0, 0], sizes = [1, 256], strides = [1, 1]} : vector<8x256xf32> to vector<1x256xf32>
    %550 = vector.broadcast %548 : f32 to vector<1x256xf32>
    %551 = arith.mulf %550, %549 : vector<1x256xf32>
    %552 = arith.addf %545, %551 : vector<1x256xf32>
    %c55 = arith.constant 55 : index
    %553 = memref.load %arg1[%c55] : memref<98xf32, #tpu.memory_space<smem>>
    %554 = vector.extract_strided_slice %547 {offsets = [1, 0], sizes = [1, 256], strides = [1, 1]} : vector<8x256xf32> to vector<1x256xf32>
    %555 = vector.broadcast %553 : f32 to vector<1x256xf32>
    %556 = arith.mulf %555, %554 : vector<1x256xf32>
    %557 = arith.addf %552, %556 : vector<1x256xf32>
    %c29_i32 = arith.constant 29 : i32
    %558 = tpu.dynamic_rotate %15 by %c29_i32 dim 1 : vector<8x512xf32>, i32 -> vector<8x512xf32>
    %559 = vector.extract_strided_slice %558 {offsets = [0, 128], sizes = [8, 256], strides = [1, 1]} : vector<8x512xf32> to vector<8x256xf32>
    %c13 = arith.constant 13 : index
    %560 = memref.load %arg1[%c13] : memref<98xf32, #tpu.memory_space<smem>>
    %561 = vector.extract_strided_slice %559 {offsets = [0, 0], sizes = [1, 256], strides = [1, 1]} : vector<8x256xf32> to vector<1x256xf32>
    %562 = vector.broadcast %560 : f32 to vector<1x256xf32>
    %563 = arith.mulf %562, %561 : vector<1x256xf32>
    %564 = arith.addf %557, %563 : vector<1x256xf32>
    %c62 = arith.constant 62 : index
    %565 = memref.load %arg1[%c62] : memref<98xf32, #tpu.memory_space<smem>>
    %566 = vector.extract_strided_slice %559 {offsets = [1, 0], sizes = [1, 256], strides = [1, 1]} : vector<8x256xf32> to vector<1x256xf32>
    %567 = vector.broadcast %565 : f32 to vector<1x256xf32>
    %568 = arith.mulf %567, %566 : vector<1x256xf32>
    %569 = arith.addf %564, %568 : vector<1x256xf32>
    %c13_i32 = arith.constant 13 : i32
    %570 = tpu.dynamic_rotate %15 by %c13_i32 dim 1 : vector<8x512xf32>, i32 -> vector<8x512xf32>
    %571 = vector.extract_strided_slice %570 {offsets = [0, 128], sizes = [8, 256], strides = [1, 1]} : vector<8x512xf32> to vector<8x256xf32>
    %c20 = arith.constant 20 : index
    %572 = memref.load %arg1[%c20] : memref<98xf32, #tpu.memory_space<smem>>
    %573 = vector.extract_strided_slice %571 {offsets = [0, 0], sizes = [1, 256], strides = [1, 1]} : vector<8x256xf32> to vector<1x256xf32>
    %574 = vector.broadcast %572 : f32 to vector<1x256xf32>
    %575 = arith.mulf %574, %573 : vector<1x256xf32>
    %576 = arith.addf %569, %575 : vector<1x256xf32>
    %c69 = arith.constant 69 : index
    %577 = memref.load %arg1[%c69] : memref<98xf32, #tpu.memory_space<smem>>
    %578 = vector.extract_strided_slice %571 {offsets = [1, 0], sizes = [1, 256], strides = [1, 1]} : vector<8x256xf32> to vector<1x256xf32>
    %579 = vector.broadcast %577 : f32 to vector<1x256xf32>
    %580 = arith.mulf %579, %578 : vector<1x256xf32>
    %581 = arith.addf %576, %580 : vector<1x256xf32>
    %c509_i32 = arith.constant 509 : i32
    %582 = tpu.dynamic_rotate %15 by %c509_i32 dim 1 : vector<8x512xf32>, i32 -> vector<8x512xf32>
    %583 = vector.extract_strided_slice %582 {offsets = [0, 128], sizes = [8, 256], strides = [1, 1]} : vector<8x512xf32> to vector<8x256xf32>
    %c27 = arith.constant 27 : index
    %584 = memref.load %arg1[%c27] : memref<98xf32, #tpu.memory_space<smem>>
    %585 = vector.extract_strided_slice %583 {offsets = [0, 0], sizes = [1, 256], strides = [1, 1]} : vector<8x256xf32> to vector<1x256xf32>
    %586 = vector.broadcast %584 : f32 to vector<1x256xf32>
    %587 = arith.mulf %586, %585 : vector<1x256xf32>
    %588 = arith.addf %581, %587 : vector<1x256xf32>
    %c76 = arith.constant 76 : index
    %589 = memref.load %arg1[%c76] : memref<98xf32, #tpu.memory_space<smem>>
    %590 = vector.extract_strided_slice %583 {offsets = [1, 0], sizes = [1, 256], strides = [1, 1]} : vector<8x256xf32> to vector<1x256xf32>
    %591 = vector.broadcast %589 : f32 to vector<1x256xf32>
    %592 = arith.mulf %591, %590 : vector<1x256xf32>
    %593 = arith.addf %588, %592 : vector<1x256xf32>
    %c493_i32 = arith.constant 493 : i32
    %594 = tpu.dynamic_rotate %15 by %c493_i32 dim 1 : vector<8x512xf32>, i32 -> vector<8x512xf32>
    %595 = vector.extract_strided_slice %594 {offsets = [0, 128], sizes = [8, 256], strides = [1, 1]} : vector<8x512xf32> to vector<8x256xf32>
    %c34 = arith.constant 34 : index
    %596 = memref.load %arg1[%c34] : memref<98xf32, #tpu.memory_space<smem>>
    %597 = vector.extract_strided_slice %595 {offsets = [0, 0], sizes = [1, 256], strides = [1, 1]} : vector<8x256xf32> to vector<1x256xf32>
    %598 = vector.broadcast %596 : f32 to vector<1x256xf32>
    %599 = arith.mulf %598, %597 : vector<1x256xf32>
    %600 = arith.addf %593, %599 : vector<1x256xf32>
    %c83 = arith.constant 83 : index
    %601 = memref.load %arg1[%c83] : memref<98xf32, #tpu.memory_space<smem>>
    %602 = vector.extract_strided_slice %595 {offsets = [1, 0], sizes = [1, 256], strides = [1, 1]} : vector<8x256xf32> to vector<1x256xf32>
    %603 = vector.broadcast %601 : f32 to vector<1x256xf32>
    %604 = arith.mulf %603, %602 : vector<1x256xf32>
    %605 = arith.addf %600, %604 : vector<1x256xf32>
    %c477_i32 = arith.constant 477 : i32
    %606 = tpu.dynamic_rotate %15 by %c477_i32 dim 1 : vector<8x512xf32>, i32 -> vector<8x512xf32>
    %607 = vector.extract_strided_slice %606 {offsets = [0, 128], sizes = [8, 256], strides = [1, 1]} : vector<8x512xf32> to vector<8x256xf32>
    %c41 = arith.constant 41 : index
    %608 = memref.load %arg1[%c41] : memref<98xf32, #tpu.memory_space<smem>>
    %609 = vector.extract_strided_slice %607 {offsets = [0, 0], sizes = [1, 256], strides = [1, 1]} : vector<8x256xf32> to vector<1x256xf32>
    %610 = vector.broadcast %608 : f32 to vector<1x256xf32>
    %611 = arith.mulf %610, %609 : vector<1x256xf32>
    %612 = arith.addf %605, %611 : vector<1x256xf32>
    %c90 = arith.constant 90 : index
    %613 = memref.load %arg1[%c90] : memref<98xf32, #tpu.memory_space<smem>>
    %614 = vector.extract_strided_slice %607 {offsets = [1, 0], sizes = [1, 256], strides = [1, 1]} : vector<8x256xf32> to vector<1x256xf32>
    %615 = vector.broadcast %613 : f32 to vector<1x256xf32>
    %616 = arith.mulf %615, %614 : vector<1x256xf32>
    %617 = arith.addf %612, %616 : vector<1x256xf32>
    %c461_i32 = arith.constant 461 : i32
    %618 = tpu.dynamic_rotate %15 by %c461_i32 dim 1 : vector<8x512xf32>, i32 -> vector<8x512xf32>
    %619 = vector.extract_strided_slice %618 {offsets = [0, 128], sizes = [8, 256], strides = [1, 1]} : vector<8x512xf32> to vector<8x256xf32>
    %c48 = arith.constant 48 : index
    %620 = memref.load %arg1[%c48] : memref<98xf32, #tpu.memory_space<smem>>
    %621 = vector.extract_strided_slice %619 {offsets = [0, 0], sizes = [1, 256], strides = [1, 1]} : vector<8x256xf32> to vector<1x256xf32>
    %622 = vector.broadcast %620 : f32 to vector<1x256xf32>
    %623 = arith.mulf %622, %621 : vector<1x256xf32>
    %624 = arith.addf %617, %623 : vector<1x256xf32>
    %c97 = arith.constant 97 : index
    %625 = memref.load %arg1[%c97] : memref<98xf32, #tpu.memory_space<smem>>
    %626 = vector.extract_strided_slice %619 {offsets = [1, 0], sizes = [1, 256], strides = [1, 1]} : vector<8x256xf32> to vector<1x256xf32>
    %627 = vector.broadcast %625 : f32 to vector<1x256xf32>
    %628 = arith.mulf %627, %626 : vector<1x256xf32>
    %629 = arith.addf %624, %628 : vector<1x256xf32>
    %630 = vector.extract_strided_slice %16 {offsets = [6, 0], sizes = [1, 256], strides = [1, 1]} : vector<7x256xf32> to vector<1x256xf32>
    %631 = arith.mulf %630, %629 : vector<1x256xf32>
    %632 = arith.addf %544, %631 : vector<1x256xf32>
    %633 = arith.negf %632 : vector<1x256xf32>
    %634 = math.exp %633 : vector<1x256xf32>
    %cst_19 = arith.constant 1.000000e+00 : f32
    %635 = vector.broadcast %cst_19 : f32 to vector<1x256xf32>
    %636 = arith.addf %635, %634 : vector<1x256xf32>
    %637 = arith.divf %635, %636 : vector<1x256xf32>
    %638 = vector.shape_cast %637 : vector<1x256xf32> to vector<1x256xf32>
    %639 = vector.broadcast %638 : vector<1x256xf32> to vector<4x256xf32>
    %c0_20 = arith.constant 0 : index
    %c0_21 = arith.constant 0 : index
    %c0_22 = arith.constant 0 : index
    %640 = vector.load %arg3[%c0_20, %c0_21, %c0_22] : memref<1x4x256xf32, #tpu.memory_space<vmem>>, vector<1x4x256xf32>
    %641 = vector.shape_cast %640 : vector<1x4x256xf32> to vector<4x256xf32>
    %642 = arith.mulf %641, %639 : vector<4x256xf32>
    %c0_23 = arith.constant 0 : index
    %c0_24 = arith.constant 0 : index
    %c0_25 = arith.constant 0 : index
    %643 = vector.load %arg4[%c0_23, %c0_24, %c0_25] : memref<1x4x256xf32, #tpu.memory_space<vmem>>, vector<1x4x256xf32>
    %644 = vector.shape_cast %643 : vector<1x4x256xf32> to vector<4x256xf32>
    %645 = vector.shape_cast %642 : vector<4x256xf32> to vector<1x4x256xf32>
    tpu.vector_store %arg4[%c0_23, %c0_24, %c0_25], %645 {strides = array<i32>} : memref<1x4x256xf32, #tpu.memory_space<vmem>>, vector<1x4x256xf32>,
    return
  }
  func.func @transform_0(%arg0: i32) -> i32 {
    %c0_i32 = arith.constant 0 : i32
    %c0_i32_0 = arith.constant 0 : i32
    return %c0_i32 : i32
  }
  func.func @transform_1(%arg0: i32) -> (i32, i32) {
    %c0_i32 = arith.constant 0 : i32
    %c0_i32_0 = arith.constant 0 : i32
    %c0_i32_1 = arith.constant 0 : i32
    return %c0_i32, %c0_i32_0 : i32, i32
  }
  func.func @transform_2(%arg0: i32) -> (i32, i32, i32) {
    %c0_i32 = arith.constant 0 : i32
    %c0_i32_0 = arith.constant 0 : i32
    %c0_i32_1 = arith.constant 0 : i32
    return %arg0, %c0_i32, %c0_i32_0 : i32, i32, i32
  }
  func.func @transform_3(%arg0: i32) -> (i32, i32, i32) {
    %c0_i32 = arith.constant 0 : i32
    %c0_i32_0 = arith.constant 0 : i32
    %c0_i32_1 = arith.constant 0 : i32
    return %arg0, %c0_i32, %c0_i32_0 : i32, i32, i32
  }
}

</mosaic_0001>

<bundles_post_ra>
// kernel: tpu_custom_call.1
= control target key start
LH: loop header
LB: loop body
LE: loop exit
PB: predicated region body
PF: predicated region fallthrough
CT: control target
= control target key end

     0   :  { %8 = vsyncpa [#allocation5], 0  ;;  %s3342_s0 = inlined_call_operand.hbm [shape: f32[98], index: 0, kind: input, shape index: {}]   ;;  %s3343_s1 = inlined_call_operand.hbm [shape: f32[7,256], index: 1, kind: input, shape index: {}]   ;;  %s3344_s2 = inlined_call_operand.hbm [shape: f32[2,4,256], index: 2, kind: input, shape index: {}]   ;;  %s3345_s3 = inlined_call_operand.hbm [shape: f32[2,4,256], index: 3, kind: output, shape index: {}]  }
   0x1   :  { %9 = vsyncpa [#allocation3], 0 }
   0x2   :  { %10 = vsyncpa [#allocation8], 0 }
   0x3   :  { %12 = vsyncpa [#allocation8 + $0x1], 0 }
   0x4   :  { %13 = vsyncpa [#allocation4], 0 }
   0x5   :  { %15 = vsyncpa [#allocation4 + $0x1], 0  ;;  %s2312_s12 = smov 0   ;;  %s2314_s13 = smov 0  }
   0x6   :  { %s2316_s14 = smov 0   ;;  %s2318_s15 = smov 0  }
   0x7 LB: > { %s2333_s16 = sadd.s32 4294967295, %s2239_s15   ;;  %s1845_s17 = sadd.s32 4294967294, %s2239_s15   ;;  %s2239_s15 = sphi %s2318_s15, %s3355_s15   ;;  %s2235_s14 = sphi %s2316_s14, %s3354_s14   ;;  %s2231_s13 = sphi %s2314_s13, %s3353_s13   ;;  %s2227_s12 = sphi %s2312_s12, %s3352_s12  }
   0x8   : > { %p83_p0 = scmp.ne.s32.totalorder %s2231_s13, %s2227_s12  ;;  %p84_p1 = scmp.eq.s32.totalorder %s2333_s16, 0 }
   0x9   : > { %p107_p2 = scmp.eq.s32.totalorder %s2333_s16, 1  ;;  %p113_p3 = scmp.eq.s32.totalorder %s1845_s17, 1 }
   0xa   : > { %p2342_p4 = por %p84_p1, %p83_p0  ;;  %p1846_p5 = scmp.ge.s32.totalorder %s2239_s15, 1 }
   0xb   : > { %p2347_p6 = por %p113_p3, %p83_p0  ;;  %p120_p7 = scmp.lt.s32.totalorder %s2239_s15, 3 }
   0xc   : > { %s132_s22 = sshll.u32 %s3342_s0, 4  ;;  %s142_s26 = sshll.u32 %s3343_s1, 4  ;;  %s133_s22 = int_to_ptr.hbm [resolvable:$true] %s132_s22  ;;  %s143_s26 = int_to_ptr.hbm [resolvable:$true] %s142_s26 }
   0xd   : > { %p2355_p8 = pnand %p1846_p5, %p120_p7  ;;  %s2241_s27 = smov [#allocation6]  }
   0xe   : > { %s144_s28 = sshll.u32 %s2241_s27, 4  ;;  %s2242_s29 = smov [#allocation2]   ;;  %s145_s28 = int_to_ptr.vmem [resolvable:$true] %s144_s28 }
   0xf   : > { %p1976_p10 = pneg %p2355_p8  ;;  %s2368_s30 = sadd.s32 1, %s2239_s15  }
  0x10   : > { %s70_s4 = sadd.s32 1, %s2235_s14  ;;  %s67_s5 = ssub.s32 %s2239_s15, %s2368_s30 }
  0x11   : > { %p1977_p11 = pnand %p1976_p10, %p84_p1  ;;  %p77_p12 = scmp.ne.s32.totalorder %s2235_s14, %s2231_s13 }
  0x12   : > { %p68_p13 = scmp.eq.s32.totalorder %s67_s5, 0  ;;  %p78_p0 = scmp.eq.s32.totalorder %s2239_s15, 0 }
  0x13   : > { %1979 = dma.hbm_to_smem (!%p1977_p11), %s133_s22, 16, %s2242_s29, [#allocation5]  }
  0x14   : > { %1982 = dma.hbm_to_vmem [thread:$0]  (!%p1977_p11), %s143_s26, 256, %s145_s28, [#allocation3]  }
  0x15   : > { %p2378_p3 = por %p107_p2, %p77_p12  ;;  %p1993_p5 = scmp.lt.s32.totalorder %s2239_s15, 2 }
  0x16   : > { %s2384_s7 = scalar_select %p68_p13, %s2235_s14, %s70_s4  }
  0x17   : > { %p79_p7 = por %p78_p0, %p77_p12  ;;  %s155_s8 = sand.u32 1, %s2235_s14  }
  0x18   : > { %s1850_s9 = sshll.u32 %s155_s8, 3  ;;  %s1962_s10 = sshll.u32 %s2239_s15, 3 }
  0x19   : > { %s164_s20 = scalar_lea.hbm %s3344_s2, %s1962_s10  ;;  %s159_s21 = scalar_lea.vmem [#allocation7], %s1850_s9 }
  0x1a   : > { %s168_s22 = sshll.u32 %s159_s21, 4  ;;  %s166_s24 = sshll.u32 %s164_s20, 4  ;;  %s169_s22 = int_to_ptr.vmem [resolvable:$true] %s168_s22  ;;  %s167_s24 = int_to_ptr.hbm [resolvable:$true] %s166_s24 }
  0x1b   : > { %p2391_p2 = pnand %p1993_p5, %p79_p7  ;;  %s156_s26 = scalar_lea.sflag [#allocation8], %s155_s8 }
  0x1c   : > { %s2135_s27 = sshra.s32 %s167_s24, 4  ;;  %s2142_s5 = scalar_lea.hbm %s3344_s2, 16  ;;  %s2136_s27 = int_to_ptr.hbm [resolvable:$true] %s2135_s27 }
  0x1d   : > { %s2137_s28 = scalar_lea.hbm %s2136_s27, 8  ;;  %p2139_p11 = pneg %p2391_p2 }
  0x1e   : > { %p2138_p10 = scmp.ne.s32.totalorder %s2136_s27, %s2137_s28  ;;  %p2143_p0 = scmp.lt.s32.totalorder %s2136_s27, %s3344_s2 }
  0x1f   : > { %p2144_p5 = scmp.lt.s32.totalorder %s2142_s5, %s2137_s28 }
  0x20   : > { %p2140_p12 = pnand %p2139_p11, %p2138_p10 }
  0x21   : > { %p2145_p7 = por %p2144_p5, %p2143_p0 }
  0x22   : > { %p2141_p13 = pneg %p2140_p12 }
  0x24   : > { %p2146_p9 = pnand %p2145_p7, %p2141_p13 }
  0x26   : > { %2149 = shalt.err (!%p2146_p9)
}
  0x27   : > { %1986 = dma.hbm_to_vmem [thread:$0]  (!%p2391_p2), %s167_s24, 128, %s169_s22, %s156_s26  }
  0x28   : > { %177 = sbr.rel (%p2355_p8) target bundleno = 622 (0x26e), region = 32 }
  0x2d   : > { %2210 = dma.done.wait (%p84_p1), [#allocation5], 16  }
  0x2e   : > { %2212 = vsyncadd (%p84_p1), [#allocation5], 4294967280 }
  0x2f   : > { %2214 = dma.done.wait (%p84_p1), [#allocation3], 256  }
  0x30   : > { %2216 = vsyncadd (%p84_p1), [#allocation3], 4294967040  ;;  %s2416_s8 = sand.u32 1, %s2231_s13  }
  0x31   : > { %s1856_s23 = sshll.u32 %s2416_s8, 3  ;;  %s190_s11 = scalar_lea.sflag [#allocation8], %s2416_s8 }
  0x32   : > { %s193_s17 = scalar_lea.vmem [#allocation7], %s1856_s23 }
  0x33   : > { %2218 = dma.done.wait (%p2342_p4), %s190_s11, 128  }
  0x34   : > { %2220 = vsyncadd (%p2342_p4), %s190_s11, 4294967168 }
  0x35   : > { %199 = sfence }
  0x36   : > { %v2426_v0 = vld [vmem:[%s193_s17] sm:$0xff]  ;;  %v2243_v1 = vmov 0.0   ;;  %s2244_s20 = smov 51   ;;  %s2245_s21 = smov 115   ;;  %vm225_vm0 = vcmask 1043456   ;;  %vm263_vm1 = vcmask 1040384   ;;  %v277_v41 = vlaneseq }
  0x37   : > { %271 = vrot.lane.b32.xlu0 %v2243_v1, %s2244_s20  ;;  %220 = vst [vmem:[#allocation1] ss:$2 sm:$0xff] %v2426_v0  ;;  %385 = vrot.lane.b32.xlu2 %v2243_v1, %s2245_s21  ;;  %s2246_s22 = smov 35   ;;  %s2247_s18 = smov 19   ;;  %vm266_vm2 = vcmask 1041408  }
  0x38   : > { %300 = vrot.lane.b32.xlu1 %v2243_v1, %s2246_s22  ;;  %s2248_s24 = smov 3   ;;  %s2249_s25 = smov 99   ;;  %v2493_v42 = vand.u32 127, %v277_v41 }
  0x39   : > { %s2250_s26 = smov 83   ;;  %s2251_s27 = smov 50  }
  0x3a   : > { %s2252_s28 = smov 34   ;;  %s2253_s29 = smov 18   ;;  %vm306_vm3 = vcmp.lt.s32.totalorder %v2493_v42, 35  ;;  %vm279_vm4 = vcmp.lt.s32.totalorder %v2493_v42, 51  ;;  %vm333_vm5 = vcmp.lt.s32.totalorder %v2493_v42, 19  ;;  %vm360_vm6 = vcmp.lt.s32.totalorder %v2493_v42, 3 }
  0x3b   : > { %s2254_s4 = smov 2   ;;  %s2255_s5 = smov 114   ;;  %vm387_vm7 = vcmp.lt.s32.totalorder %v2493_v42, 115  ;;  %vm414_vm8 = vcmp.lt.s32.totalorder %v2493_v42, 99  ;;  %vm441_vm9 = vcmp.lt.s32.totalorder %v2493_v42, 83  ;;  %vm472_vm10 = vcmp.lt.s32.totalorder %v2493_v42, 50 }
  0x3c   : > { %s2256_s9 = smov 98   ;;  %s2257_s10 = smov 82   ;;  %vm499_vm11 = vcmp.lt.s32.totalorder %v2493_v42, 34  ;;  %vm526_vm12 = vcmp.lt.s32.totalorder %v2493_v42, 18  ;;  %vm553_vm13 = vcmp.lt.s32.totalorder %v2493_v42, 2  ;;  %vm580_vm14 = vcmp.lt.s32.totalorder %v2493_v42, 114 }
  0x3d   : > { %s2258_s11 = smov 49   ;;  %s2259_s17 = smov 33   ;;  %vm607_vm15 = vcmp.lt.s32.totalorder %v2493_v42, 98 }
  0x3e   : > { %v221_v2 = vld.sshfl [vmem:[#allocation1] sm:$0xff pattern:$0x75316420]  ;;  %v222_v3 = vld.sshfl [vmem:[#allocation1 + $0x8] sm:$0xff pattern:$0x75316420] }
  0x3f   : > { %327 = vrot.lane.b32.xlu0 %v2243_v1, %s2247_s18  ;;  %v233_v4 = vsel %vm225_vm0, %v222_v3, 0.0  ;;  %242 = vst [vmem:[#allocation1] ss:$2 sm:$0xff] %v2426_v0  ;;  %v226_v5 = vsel %vm225_vm0, %v221_v2, 0.0 }
  0x40   : > { %v234_v6 = vrot.slane %v233_v4, 4  ;;  %v227_v7 = vrot.slane %v226_v5, 4 }
  0x42   : > { %v235_v8 = vadd.f32 %v234_v6, %v233_v4  ;;  %v228_v9 = vadd.f32 %v227_v7, %v226_v5 }
  0x44   : > { %v236_v10 = vrot.slane %v235_v8, 2  ;;  %v229_v11 = vrot.slane %v228_v9, 2 }
  0x46   : > { %v237_v12 = vadd.f32 %v236_v10, %v235_v8  ;;  %v244_v13 = vld.sshfl [vmem:[#allocation1 + $0x8] sm:$0xff pattern:$0x75316420]  ;;  %v230_v14 = vadd.f32 %v229_v11, %v228_v9  ;;  %v243_v15 = vld.sshfl [vmem:[#allocation1] sm:$0xff pattern:$0x75316420] }
  0x47   : > { %354 = vrot.lane.b32.xlu0 %v2243_v1, %s2248_s24  ;;  %v254_v16 = vsel %vm225_vm0, %v244_v13, -inf  ;;  %v247_v17 = vsel %vm225_vm0, %v243_v15, -inf }
  0x48   : > { %v238_v18 = vrot.slane %v237_v12, 1  ;;  %v255_v19 = vrot.slane %v254_v16, 4  ;;  %v231_v20 = vrot.slane %v230_v14, 1  ;;  %v248_v21 = vrot.slane %v247_v17, 4 }
  0x4a   : > { %v256_v22 = vmax.f32 %v254_v16, %v255_v19  ;;  %v249_v23 = vmax.f32 %v247_v17, %v248_v21  ;;  %v239_v24 = vadd.f32 %v238_v18, %v237_v12  ;;  %v232_v26 = vadd.f32 %v231_v20, %v230_v14 }
  0x4c   : > { %v257_v25 = vrot.slane %v256_v22, 2  ;;  %v250_v27 = vrot.slane %v249_v23, 2  ;;  %v262_v31 = vmul.f32 0.25, %v239_v24  ;;  %v261_v33 = vmul.f32 0.25, %v232_v26 }
  0x4e   : > { %v258_v28 = vmax.f32 %v256_v22, %v257_v25  ;;  %v251_v29 = vmax.f32 %v249_v23, %v250_v27 }
  0x50   : > { %v259_v30 = vrot.slane %v258_v28, 1  ;;  %v252_v32 = vrot.slane %v251_v29, 1 }
  0x52   : > { %v260_v34 = vmax.f32 %v258_v28, %v259_v30  ;;  %v253_v35 = vmax.f32 %v251_v29, %v252_v32 }
  0x54   : > { %v265_v36 = vsel %vm263_vm1, %v262_v31, %v260_v34  ;;  %v264_v37 = vsel %vm263_vm1, %v261_v33, %v253_v35  ;;  %vm634_vm1 = vcmp.lt.s32.totalorder %v2493_v42, 82 }
  0x55   : > { %v2444_v38 = vsel %vm266_vm2, %v265_v36, 0.0  ;;  %v2446_v39 = vsel %vm266_vm2, %v264_v37, 0.0  ;;  %vm677_vm2 = vcmp.lt.s32.totalorder %v2493_v42, 49 }
  0x56   : > { %275 = vrot.lane.b32.xlu1 %v2444_v38, %s2244_s20  ;;  %302 = vrot.lane.b32.xlu2 %v2446_v39, %s2246_s22 }
  0x57   : > { %273 = vrot.lane.b32.xlu0 %v2446_v39, %s2244_s20  ;;  %s2260_s20 = smov 17  }
  0x5e   : > { %329 = vrot.lane.b32.xlu1 %v2446_v39, %s2247_s18  ;;  %304 = vrot.lane.b32.xlu2 %v2444_v38, %s2246_s22  ;;  %s1860_s22 = sld [smem:[#allocation2 + $0x38]] }
  0x5f   : > { %381 = vrot.lane.b32.xlu0 %v2446_v39, %s2245_s21 }
  0x64   : > { %v316_v55 = vstv %s1860_s22  ;;  %s2265_s22 = smov 48  }
  0x66   : > { %356 = vrot.lane.b32.xlu1 %v2446_v39, %s2248_s24  ;;  %331 = vrot.lane.b32.xlu2 %v2444_v38, %s2247_s18  ;;  %s282_s18 = sld [smem:[#allocation2]] }
  0x67   : > { %408 = vrot.lane.b32.xlu0 %v2446_v39, %s2249_s25 }
  0x6c   : > { %v283_v57 = vstv %s282_s18  ;;  %s2582_s18 = sld [smem:[#allocation2 + $0x5b]] }
  0x6e   : > { %383 = vrot.lane.b32.xlu1 %v2444_v38, %s2245_s21  ;;  %358 = vrot.lane.b32.xlu2 %v2444_v38, %s2248_s24  ;;  %s1858_s21 = sld [smem:[#allocation2 + $0x31]] }
  0x6f   : > { %435 = vrot.lane.b32.xlu0 %v2446_v39, %s2250_s26  ;;  %s2508_s24 = sld [smem:[#allocation2 + $0x7]] }
  0x74   : > { %v289_v54 = vstv %s1858_s21  ;;  %s2576_s21 = sld [smem:[#allocation2 + $0x2a]] }
  0x75   : > { %v310_v62 = vstv %s2508_s24  ;;  %s2266_s24 = smov 32  }
  0x76   : > { %410 = vrot.lane.b32.xlu1 %v2444_v38, %s2249_s25  ;;  %412 = vrot.lane.b32.xlu2 %v2243_v1, %s2249_s25  ;;  %s2510_s25 = sld [smem:[#allocation2 + $0xe]] }
  0x77   : > { %466 = vrot.lane.b32.xlu0 %v2243_v1, %s2251_s27 }
  0x7c   : > { %v337_v7 = vstv %s2510_s25  ;;  %s2596_s25 = sld [smem:[#allocation2 + $0x32]] }
  0x7e   : > { %437 = vrot.lane.b32.xlu1 %v2444_v38, %s2250_s26  ;;  %439 = vrot.lane.b32.xlu2 %v2243_v1, %s2250_s26  ;;  %s2514_s26 = sld [smem:[#allocation2 + $0x3f]] }
  0x7f   : > { %493 = vrot.lane.b32.xlu0 %v2243_v1, %s2252_s28 }
  0x84   : > { %v343_v8 = vstv %s2514_s26  ;;  %s1871_s26 = sld [smem:[#allocation2 + $0x1]] }
  0x86   : > { %468 = vrot.lane.b32.xlu1 %v2446_v39, %s2251_s27  ;;  %470 = vrot.lane.b32.xlu2 %v2444_v38, %s2251_s27  ;;  %s2261_s27 = smov 1  }
  0x87   : > { %520 = vrot.lane.b32.xlu0 %v2243_v1, %s2253_s29 }
  0x8e   : > { %495 = vrot.lane.b32.xlu1 %v2446_v39, %s2252_s28  ;;  %497 = vrot.lane.b32.xlu2 %v2444_v38, %s2252_s28  ;;  %s2527_s28 = sld [smem:[#allocation2 + $0x15]] }
  0x8f   : > { %547 = vrot.lane.b32.xlu0 %v2243_v1, %s2254_s4 }
  0x91   : > { %v2490_v40 = vpop.permute.xlu2 %385 }
  0x94   : > { %v364_v34 = vstv %s2527_s28  ;;  %s2267_s28 = smov 16  }
  0x96   : > { %522 = vrot.lane.b32.xlu1 %v2446_v39, %s2253_s29  ;;  %524 = vrot.lane.b32.xlu2 %v2444_v38, %s2253_s29  ;;  %s2262_s29 = smov 113  }
  0x97   : > { %574 = vrot.lane.b32.xlu0 %v2446_v39, %s2255_s5 }
  0x9e   : > { %549 = vrot.lane.b32.xlu1 %v2446_v39, %s2254_s4  ;;  %551 = vrot.lane.b32.xlu2 %v2444_v38, %s2254_s4  ;;  %s2531_s4 = sld [smem:[#allocation2 + $0x46]] }
  0x9f   : > { %601 = vrot.lane.b32.xlu0 %v2446_v39, %s2256_s9 }
  0xa4   : > { %v370_v35 = vstv %s2531_s4  ;;  %s2625_s4 = sld [smem:[#allocation2 + $0xf]] }
  0xa6   : > { %576 = vrot.lane.b32.xlu1 %v2444_v38, %s2255_s5  ;;  %578 = vrot.lane.b32.xlu2 %v2243_v1, %s2255_s5  ;;  %s2544_s5 = sld [smem:[#allocation2 + $0x1c]] }
  0xa7   : > { %628 = vrot.lane.b32.xlu0 %v2446_v39, %s2257_s10 }
  0xa9   : > { %v272_v43 = vpop.permute.xlu0 %271 }
  0xaa   : > { %v301_v44 = vpop.permute.xlu1 %300 }
  0xae   : > { %603 = vrot.lane.b32.xlu1 %v2444_v38, %s2256_s9  ;;  %605 = vrot.lane.b32.xlu2 %v2243_v1, %s2256_s9  ;;  %s2263_s9 = smov 97  }
  0xaf   : > { %671 = vrot.lane.b32.xlu0 %v2243_v1, %s2258_s11 }
  0xb0   : > { %v303_v45 = vpop.permute.xlu2 %302 }
  0xb1   : > { %v308_v46 = vsel %vm306_vm3, %v301_v44, %v303_v45  ;;  %v328_v47 = vpop.permute.xlu0 %327 }
  0xb2   : > { %v317_v2 = vmul.f32 %v316_v55, %v308_v46  ;;  %v311_v10 = vmul.f32 %v310_v62, %v308_v46 }
  0xb4   : > { %v321_v14 = vrot.slane %v317_v2, 1 }
  0xb6   : > { %630 = vrot.lane.b32.xlu1 %v2444_v38, %s2257_s10  ;;  %632 = vrot.lane.b32.xlu2 %v2243_v1, %s2257_s10  ;;  %s2550_s10 = sld [smem:[#allocation2 + $0x4d]] }
  0xb7   : > { %698 = vrot.lane.b32.xlu0 %v2243_v1, %s2259_s17 }
  0xb8   : > { %v305_v48 = vpop.permute.xlu2 %304 }
  0xb9   : > { %v307_v49 = vsel %vm306_vm3, %v303_v45, %v305_v48  ;;  %v2506_v50 = vpop.permute.xlu0 %354  ;;  %vm704_vm3 = vcmp.lt.s32.totalorder %v2493_v42, 33 }
  0xba   : > { %v318_v63 = vmul.f32 %v316_v55, %v307_v49  ;;  %v312_v9 = vmul.f32 %v310_v62, %v307_v49 }
  0xbc   : > { %v322_v13 = vrot.slane %v318_v63, 1 }
  0xbe   : > { %673 = vrot.lane.b32.xlu1 %v2446_v39, %s2258_s11  ;;  %675 = vrot.lane.b32.xlu2 %v2444_v38, %s2258_s11  ;;  %s2560_s11 = sld [smem:[#allocation2 + $0x23]] }
  0xbf   : > { %725 = vrot.lane.b32.xlu0 %v2243_v1, %s2260_s20 }
  0xc0   : > { %v332_v51 = vpop.permute.xlu2 %331 }
  0xc6   : > { %700 = vrot.lane.b32.xlu1 %v2446_v39, %s2259_s17  ;;  %702 = vrot.lane.b32.xlu2 %v2444_v38, %s2259_s17  ;;  %s2264_s17 = smov 81  }
  0xc7   : > { %752 = vrot.lane.b32.xlu0 %v2243_v1, %s2261_s27 }
  0xc8   : > { %v276_v52 = vpop.permute.xlu1 %275  ;;  %v359_v53 = vpop.permute.xlu2 %358 }
  0xc9   : > { %v274_v56 = vpop.permute.xlu0 %273 }
  0xca   : > { %v280_v58 = vsel %vm279_vm4, %v274_v56, %v276_v52  ;;  %v281_v59 = vsel %vm279_vm4, %v272_v43, %v274_v56  ;;  %vm731_vm4 = vcmp.lt.s32.totalorder %v2493_v42, 17 }
  0xcb   : > { %v290_v60 = vmul.f32 %v289_v54, %v281_v59  ;;  %v291_v61 = vmul.f32 %v289_v54, %v280_v58  ;;  %v284_v3 = vmul.f32 %v283_v57, %v281_v59  ;;  %v285_v4 = vmul.f32 %v283_v57, %v280_v58 }
  0xcd   : > { %v294_v5 = vrot.slane %v290_v60, 1  ;;  %v295_v6 = vrot.slane %v291_v61, 1 }
  0xce   : > { %727 = vrot.lane.b32.xlu1 %v2446_v39, %s2260_s20  ;;  %729 = vrot.lane.b32.xlu2 %v2444_v38, %s2260_s20  ;;  %s2566_s20 = sld [smem:[#allocation2 + $0x54]] }
  0xcf   : > { %v298_v11 = vadd.f32 %v294_v5, %v284_v3  ;;  %v299_v12 = vadd.f32 %v295_v6, %v285_v4  ;;  %779 = vrot.lane.b32.xlu0 %v2446_v39, %s2262_s29 }
  0xd0   : > { %v330_v15 = vpop.permute.xlu1 %329  ;;  %v2533_v16 = vpop.permute.xlu2 %412 }
  0xd1   : > { %v313_v17 = vadd.f32 %v311_v10, %v298_v11  ;;  %v314_v18 = vadd.f32 %v312_v9, %v299_v12  ;;  %v334_v19 = vsel %vm333_vm5, %v330_v15, %v332_v51  ;;  %v335_v20 = vsel %vm333_vm5, %v328_v47, %v330_v15  ;;  %v382_v21 = vpop.permute.xlu0 %381 }
  0xd2   : > { %v338_v22 = vmul.f32 %v337_v7, %v335_v20  ;;  %v339_v23 = vmul.f32 %v337_v7, %v334_v19  ;;  %v344_v24 = vmul.f32 %v343_v8, %v335_v20  ;;  %v345_v25 = vmul.f32 %v343_v8, %v334_v19 }
  0xd3   : > { %v325_v26 = vadd.f32 %v321_v14, %v313_v17  ;;  %v326_v27 = vadd.f32 %v322_v13, %v314_v18  ;;  %vm758_vm5 = vcmp.lt.s32.totalorder %v2493_v42, 1 }
  0xd4   : > { %v348_v28 = vrot.slane %v344_v24, 1  ;;  %v349_v29 = vrot.slane %v345_v25, 1  ;;  %v424_v10 = vstv %s2566_s20  ;;  %s2657_s20 = sld [smem:[#allocation2 + $0x1d]] }
  0xd5   : > { %v340_v30 = vadd.f32 %v338_v22, %v325_v26  ;;  %v341_v31 = vadd.f32 %v339_v23, %v326_v27  ;;  %v451_v27 = vstv %s2582_s18  ;;  %s2673_s18 = sld [smem:[#allocation2 + $0x24]] }
  0xd6   : > { %754 = vrot.lane.b32.xlu1 %v2446_v39, %s2261_s27  ;;  %756 = vrot.lane.b32.xlu2 %v2444_v38, %s2261_s27  ;;  %s2610_s27 = sld [smem:[#allocation2 + $0x8]] }
  0xd7   : > { %v352_v32 = vadd.f32 %v348_v28, %v340_v30  ;;  %v353_v33 = vadd.f32 %v349_v29, %v341_v31  ;;  %806 = vrot.lane.b32.xlu0 %v2446_v39, %s2263_s9 }
  0xd8   : > { %v357_v36 = vpop.permute.xlu1 %356  ;;  %v2552_v37 = vpop.permute.xlu2 %439 }
  0xd9   : > { %v361_v41 = vsel %vm360_vm6, %v357_v36, %v359_v53  ;;  %v362_v43 = vsel %vm360_vm6, %v2506_v50, %v357_v36  ;;  %v409_v44 = vpop.permute.xlu0 %408  ;;  %v391_v50 = vstv %s2544_s5  ;;  %v397_v53 = vstv %s2550_s10  ;;  %s2268_s5 = smov 112   ;;  %s2641_s10 = sld [smem:[#allocation2 + $0x16]] }
  0xda   : > { %v365_v45 = vmul.f32 %v364_v34, %v362_v43  ;;  %v366_v46 = vmul.f32 %v364_v34, %v361_v41  ;;  %v371_v47 = vmul.f32 %v370_v35, %v362_v43  ;;  %v372_v48 = vmul.f32 %v370_v35, %v361_v41 }
  0xdb   : > { %vm785_vm6 = vcmp.lt.s32.totalorder %v2493_v42, 113 }
  0xdc   : > { %v367_v49 = vadd.f32 %v365_v45, %v352_v32  ;;  %v368_v51 = vadd.f32 %v366_v46, %v353_v33  ;;  %v375_v52 = vrot.slane %v371_v47, 1  ;;  %v376_v54 = vrot.slane %v372_v48, 1 }
  0xde   : > { %v379_v55 = vadd.f32 %v375_v52, %v367_v49  ;;  %v380_v56 = vadd.f32 %v376_v54, %v368_v51  ;;  %781 = vrot.lane.b32.xlu1 %v2444_v38, %s2262_s29  ;;  %783 = vrot.lane.b32.xlu2 %v2243_v1, %s2262_s29  ;;  %s2615_s29 = sld [smem:[#allocation2 + $0x39]] }
  0xdf   : > { %833 = vrot.lane.b32.xlu0 %v2446_v39, %s2264_s17 }
  0xe0   : > { %v384_v57 = vpop.permute.xlu1 %383  ;;  %v2568_v58 = vpop.permute.xlu2 %470 }
  0xe1   : > { %v388_v59 = vsel %vm387_vm7, %v384_v57, %v2490_v40  ;;  %v389_v60 = vsel %vm387_vm7, %v382_v21, %v384_v57  ;;  %v436_v61 = vpop.permute.xlu0 %435  ;;  %v418_v40 = vstv %s2560_s11  ;;  %s2269_s11 = smov 96   ;;  %vm812_vm7 = vcmp.lt.s32.totalorder %v2493_v42, 97 }
  0xe2   : > { %v392_v62 = vmul.f32 %v391_v50, %v389_v60  ;;  %v393_v63 = vmul.f32 %v391_v50, %v388_v59  ;;  %v398_v2 = vmul.f32 %v397_v53, %v389_v60  ;;  %v399_v3 = vmul.f32 %v397_v53, %v388_v59 }
  0xe3   : > { %v476_v50 = vstv %s1871_s26  ;;  %v503_v60 = vstv %s2610_s27  ;;  %s2689_s26 = sld [smem:[#allocation2 + $0x2b]]  ;;  %s2272_s27 = smov 31  }
  0xe4   : > { %v394_v4 = vadd.f32 %v392_v62, %v379_v55  ;;  %v395_v5 = vadd.f32 %v393_v63, %v380_v56  ;;  %v402_v6 = vrot.slane %v398_v2, 1  ;;  %v403_v7 = vrot.slane %v399_v3, 1 }
  0xe6   : > { %v406_v8 = vadd.f32 %v402_v6, %v394_v4  ;;  %v407_v9 = vadd.f32 %v403_v7, %v395_v5  ;;  %808 = vrot.lane.b32.xlu1 %v2444_v38, %s2263_s9  ;;  %810 = vrot.lane.b32.xlu2 %v2243_v1, %s2263_s9  ;;  %s2631_s9 = sld [smem:[#allocation2 + $0x40]] }
  0xe7   : > { %876 = vrot.lane.b32.xlu0 %v2243_v1, %s2265_s22 }
  0xe8   : > { %v411_v11 = vpop.permute.xlu1 %410  ;;  %v2584_v12 = vpop.permute.xlu2 %497 }
  0xe9   : > { %v415_v13 = vsel %vm414_vm8, %v411_v11, %v2533_v16  ;;  %v416_v14 = vsel %vm414_vm8, %v409_v44, %v411_v11  ;;  %v467_v15 = vpop.permute.xlu0 %466  ;;  %v445_v16 = vstv %s2576_s21  ;;  %s2270_s21 = smov 80   ;;  %vm839_vm8 = vcmp.lt.s32.totalorder %v2493_v42, 81 }
  0xea   : > { %v419_v17 = vmul.f32 %v418_v40, %v416_v14  ;;  %v420_v18 = vmul.f32 %v418_v40, %v415_v13  ;;  %v425_v19 = vmul.f32 %v424_v10, %v416_v14  ;;  %v426_v20 = vmul.f32 %v424_v10, %v415_v13 }
  0xec   : > { %v421_v21 = vadd.f32 %v419_v17, %v406_v8  ;;  %v422_v22 = vadd.f32 %v420_v18, %v407_v9  ;;  %v429_v23 = vrot.slane %v425_v19, 1  ;;  %v430_v24 = vrot.slane %v426_v20, 1 }
  0xed   : > { %v536_v18 = vstv %s2631_s9  ;;  %s2721_s9 = sld [smem:[#allocation2 + $0x9]] }
  0xee   : > { %v433_v25 = vadd.f32 %v429_v23, %v421_v21  ;;  %v434_v26 = vadd.f32 %v430_v24, %v422_v22  ;;  %835 = vrot.lane.b32.xlu1 %v2444_v38, %s2264_s17  ;;  %837 = vrot.lane.b32.xlu2 %v2243_v1, %s2264_s17  ;;  %s2647_s17 = sld [smem:[#allocation2 + $0x47]] }
  0xef   : > { %903 = vrot.lane.b32.xlu0 %v2243_v1, %s2266_s24 }
  0xf0   : > { %v438_v28 = vpop.permute.xlu1 %437  ;;  %v2598_v29 = vpop.permute.xlu2 %524 }
  0xf1   : > { %v442_v30 = vsel %vm441_vm9, %v438_v28, %v2552_v37  ;;  %v443_v31 = vsel %vm441_vm9, %v436_v61, %v438_v28  ;;  %v494_v32 = vpop.permute.xlu0 %493  ;;  %v482_v37 = vstv %s2596_s25  ;;  %v509_v61 = vstv %s2615_s29  ;;  %s2679_s25 = sld [smem:[#allocation2 + $0x55]]  ;;  %s2273_s29 = smov 15  }
  0xf2   : > { %v446_v33 = vmul.f32 %v445_v16, %v443_v31  ;;  %v447_v34 = vmul.f32 %v445_v16, %v442_v30  ;;  %v452_v35 = vmul.f32 %v451_v27, %v443_v31  ;;  %v453_v36 = vmul.f32 %v451_v27, %v442_v30 }
  0xf3   : > { %vm882_vm9 = vcmp.lt.s32.totalorder %v2493_v42, 48 }
  0xf4   : > { %v448_v41 = vadd.f32 %v446_v33, %v433_v25  ;;  %v449_v43 = vadd.f32 %v447_v34, %v434_v26  ;;  %v456_v44 = vrot.slane %v452_v35, 1  ;;  %v457_v45 = vrot.slane %v453_v36, 1 }
  0xf5   : > { %v563_v34 = vstv %s2647_s17  ;;  %s2751_s17 = sld [smem:[#allocation2 + $0x10]] }
  0xf6   : > { %v2601_v46 = vadd.f32 %v456_v44, %v448_v41  ;;  %v2603_v47 = vadd.f32 %v457_v45, %v449_v43  ;;  %878 = vrot.lane.b32.xlu1 %v2446_v39, %s2265_s22  ;;  %880 = vrot.lane.b32.xlu2 %v2444_v38, %s2265_s22  ;;  %s2663_s22 = sld [smem:[#allocation2 + $0x4e]] }
  0xf7   : > { %930 = vrot.lane.b32.xlu0 %v2243_v1, %s2267_s28 }
  0xf8   : > { %v469_v48 = vpop.permute.xlu1 %468  ;;  %v2617_v49 = vpop.permute.xlu2 %551 }
  0xf9   : > { %v473_v51 = vsel %vm472_vm10, %v469_v48, %v2568_v58  ;;  %v474_v52 = vsel %vm472_vm10, %v467_v15, %v469_v48  ;;  %v521_v54 = vpop.permute.xlu0 %520  ;;  %vm909_vm10 = vcmp.lt.s32.totalorder %v2493_v42, 32 }
  0xfa   : > { %v483_v55 = vmul.f32 %v482_v37, %v474_v52  ;;  %v484_v56 = vmul.f32 %v482_v37, %v473_v51  ;;  %v477_v58 = vmul.f32 %v476_v50, %v474_v52  ;;  %v478_v59 = vmul.f32 %v476_v50, %v473_v51 }
  0xfc   : > { %v487_v53 = vrot.slane %v483_v55, 1  ;;  %v488_v57 = vrot.slane %v484_v56, 1 }
  0xfe   : > { %905 = vrot.lane.b32.xlu1 %v2446_v39, %s2266_s24  ;;  %907 = vrot.lane.b32.xlu2 %v2444_v38, %s2266_s24  ;;  %v491_v2 = vadd.f32 %v487_v53, %v477_v58  ;;  %v492_v3 = vadd.f32 %v488_v57, %v478_v59  ;;  %s2271_s24 = smov 47   ;;  %v590_v57 = vstv %s2663_s22  ;;  %s2767_s22 = sld [smem:[#allocation2 + $0x17]] }
  0xff   : > { %975 = vrot.lane.b32.xlu0 %v2446_v39, %s2268_s5 }
 0x100   : > { %v496_v62 = vpop.permute.xlu1 %495  ;;  %v2633_v63 = vpop.permute.xlu2 %578 }
 0x101   : > { %v500_v4 = vsel %vm499_vm11, %v496_v62, %v2584_v12  ;;  %v501_v5 = vsel %vm499_vm11, %v494_v32, %v496_v62  ;;  %v548_v6 = vpop.permute.xlu0 %547  ;;  %v530_v12 = vstv %s2625_s4  ;;  %s2711_s4 = sld [smem:[#allocation2 + $0x33]]  ;;  %vm936_vm11 = vcmp.lt.s32.totalorder %v2493_v42, 16 }
 0x102   : > { %v504_v7 = vmul.f32 %v503_v60, %v501_v5  ;;  %v505_v8 = vmul.f32 %v503_v60, %v500_v4  ;;  %v510_v9 = vmul.f32 %v509_v61, %v501_v5  ;;  %v511_v40 = vmul.f32 %v509_v61, %v500_v4 }
 0x104   : > { %v506_v10 = vadd.f32 %v504_v7, %v491_v2  ;;  %v507_v11 = vadd.f32 %v505_v8, %v492_v3  ;;  %v514_v13 = vrot.slane %v510_v9, 1  ;;  %v515_v14 = vrot.slane %v511_v40, 1 }
 0x106   : > { %v518_v15 = vadd.f32 %v514_v13, %v506_v10  ;;  %v519_v17 = vadd.f32 %v515_v14, %v507_v11  ;;  %932 = vrot.lane.b32.xlu1 %v2446_v39, %s2267_s28  ;;  %934 = vrot.lane.b32.xlu2 %v2444_v38, %s2267_s28  ;;  %v617_v11 = vstv %s2679_s25  ;;  %s2695_s28 = sld [smem:[#allocation2 + $0x5c]] }
 0x107   : > { %1002 = vrot.lane.b32.xlu0 %v2446_v39, %s2269_s11  ;;  %s2783_s25 = sld [smem:[#allocation2 + $0x1e]] }
 0x108   : > { %v523_v19 = vpop.permute.xlu1 %522  ;;  %v2649_v20 = vpop.permute.xlu2 %605 }
 0x109   : > { %v527_v21 = vsel %vm526_vm12, %v523_v19, %v2598_v29  ;;  %v528_v22 = vsel %vm526_vm12, %v521_v54, %v523_v19  ;;  %v575_v23 = vpop.permute.xlu0 %574  ;;  %v557_v29 = vstv %s2641_s10  ;;  %s2274_s10 = smov 127   ;;  %vm981_vm12 = vcmp.lt.s32.totalorder %v2493_v42, 112 }
 0x10a   : > { %v531_v24 = vmul.f32 %v530_v12, %v528_v22  ;;  %v532_v25 = vmul.f32 %v530_v12, %v527_v21  ;;  %v537_v26 = vmul.f32 %v536_v18, %v528_v22  ;;  %v538_v16 = vmul.f32 %v536_v18, %v527_v21 }
 0x10c   : > { %v533_v27 = vadd.f32 %v531_v24, %v518_v15  ;;  %v534_v28 = vadd.f32 %v532_v25, %v519_v17  ;;  %v541_v30 = vrot.slane %v537_v26, 1  ;;  %v542_v31 = vrot.slane %v538_v16, 1 }
 0x10e   : > { %v545_v32 = vadd.f32 %v541_v30, %v533_v27  ;;  %v546_v33 = vadd.f32 %v542_v31, %v534_v28  ;;  %977 = vrot.lane.b32.xlu1 %v2444_v38, %s2268_s5  ;;  %979 = vrot.lane.b32.xlu2 %v2243_v1, %s2268_s5  ;;  %v644_v28 = vstv %s2695_s28  ;;  %s2714_s5 = sld [smem:[#allocation2 + $0x2]] }
 0x10f   : > { %1029 = vrot.lane.b32.xlu0 %v2446_v39, %s2270_s21  ;;  %s2799_s28 = sld [smem:[#allocation2 + $0x25]] }
 0x110   : > { %v550_v35 = vpop.permute.xlu1 %549  ;;  %v2665_v36 = vpop.permute.xlu2 %632 }
 0x111   : > { %v554_v41 = vsel %vm553_vm13, %v550_v35, %v2617_v49  ;;  %v555_v43 = vsel %vm553_vm13, %v548_v6, %v550_v35  ;;  %v602_v44 = vpop.permute.xlu0 %601  ;;  %v584_v49 = vstv %s2657_s20  ;;  %s2275_s20 = smov 111   ;;  %vm1008_vm13 = vcmp.lt.s32.totalorder %v2493_v42, 96 }
 0x112   : > { %v558_v45 = vmul.f32 %v557_v29, %v555_v43  ;;  %v559_v37 = vmul.f32 %v557_v29, %v554_v41  ;;  %v564_v48 = vmul.f32 %v563_v34, %v555_v43  ;;  %v565_v51 = vmul.f32 %v563_v34, %v554_v41 }
 0x114   : > { %v560_v52 = vadd.f32 %v558_v45, %v545_v32  ;;  %v561_v54 = vadd.f32 %v559_v37, %v546_v33  ;;  %v568_v55 = vrot.slane %v564_v48, 1  ;;  %v569_v56 = vrot.slane %v565_v51, 1 }
 0x116   : > { %v572_v50 = vadd.f32 %v568_v55, %v560_v52  ;;  %v573_v53 = vadd.f32 %v569_v56, %v561_v54  ;;  %1004 = vrot.lane.b32.xlu1 %v2444_v38, %s2269_s11  ;;  %1006 = vrot.lane.b32.xlu2 %v2243_v1, %s2269_s11  ;;  %s2725_s11 = sld [smem:[#allocation2 + $0x3a]]  ;;  %v687_v56 = vstv %s2711_s4 }
 0x117   : > { %1072 = vrot.lane.b32.xlu0 %v2243_v1, %s2271_s24  ;;  %s2805_s4 = sld [smem:[#allocation2 + $0x56]] }
 0x118   : > { %v577_v58 = vpop.permute.xlu1 %576  ;;  %v2681_v59 = vpop.permute.xlu2 %675 }
 0x119   : > { %v581_v60 = vsel %vm580_vm14, %v577_v58, %v2633_v63  ;;  %v582_v61 = vsel %vm580_vm14, %v575_v23, %v577_v58  ;;  %v629_v62 = vpop.permute.xlu0 %628  ;;  %v611_v63 = vstv %s2673_s18  ;;  %s2276_s18 = smov 95   ;;  %vm1035_vm14 = vcmp.lt.s32.totalorder %v2493_v42, 80 }
 0x11a   : > { %v585_v2 = vmul.f32 %v584_v49, %v582_v61  ;;  %v586_v3 = vmul.f32 %v584_v49, %v581_v60  ;;  %v591_v4 = vmul.f32 %v590_v57, %v582_v61  ;;  %v592_v5 = vmul.f32 %v590_v57, %v581_v60  ;;  %v2732_v49 = vld [vmem:[#allocation6 + $0x8] sm:$0x7f] }
 0x11c   : > { %v587_v6 = vadd.f32 %v585_v2, %v572_v50  ;;  %v588_v7 = vadd.f32 %v586_v3, %v573_v53  ;;  %v595_v8 = vrot.slane %v591_v4, 1  ;;  %v596_v9 = vrot.slane %v592_v5, 1 }
 0x11d   : > { %v463_v5 = vmul.f32 %v2603_v47, %v2732_v49 }
 0x11e   : > { %v599_v40 = vadd.f32 %v595_v8, %v587_v6  ;;  %v600_v10 = vadd.f32 %v596_v9, %v588_v7  ;;  %1031 = vrot.lane.b32.xlu1 %v2444_v38, %s2270_s21  ;;  %1033 = vrot.lane.b32.xlu2 %v2243_v1, %s2270_s21  ;;  %v681_v8 = vstv %s2714_s5  ;;  %s2757_s21 = sld [smem:[#allocation2 + $0x41]] }
 0x11f   : > { %1099 = vrot.lane.b32.xlu0 %v2243_v1, %s2272_s27  ;;  %s2815_s5 = sld [smem:[#allocation2 + $0x2c]] }
 0x120   : > { %v604_v13 = vpop.permute.xlu1 %603  ;;  %v2697_v14 = vpop.permute.xlu2 %702 }
 0x121   : > { %v608_v15 = vsel %vm607_vm15, %v604_v13, %v2649_v20  ;;  %v609_v17 = vsel %vm607_vm15, %v602_v44, %v604_v13  ;;  %v672_v12 = vpop.permute.xlu0 %671  ;;  %v638_v20 = vstv %s2689_s26  ;;  %s2277_s26 = smov 79   ;;  %vm1078_vm15 = vcmp.lt.s32.totalorder %v2493_v42, 47 }
 0x122   : > { %v612_v18 = vmul.f32 %v611_v63, %v609_v17  ;;  %v613_v19 = vmul.f32 %v611_v63, %v608_v15  ;;  %v618_v21 = vmul.f32 %v617_v11, %v609_v17  ;;  %v619_v22 = vmul.f32 %v617_v11, %v608_v15 }
 0x123   : > { %v708_v63 = vstv %s2721_s9  ;;  %v714_v11 = vstv %s2725_s11  ;;  %s2279_s9 = smov 30   ;;  %s2837_s11 = sld [smem:[#allocation2 + $0x34]] }
 0x124   : > { %v614_v23 = vadd.f32 %v612_v18, %v599_v40  ;;  %v615_v24 = vadd.f32 %v613_v19, %v600_v10  ;;  %v622_v25 = vrot.slane %v618_v21, 1  ;;  %v623_v26 = vrot.slane %v619_v22, 1 }
 0x126   : > { %v626_v16 = vadd.f32 %v622_v25, %v614_v23  ;;  %v627_v27 = vadd.f32 %v623_v26, %v615_v24  ;;  %1074 = vrot.lane.b32.xlu1 %v2446_v39, %s2271_s24  ;;  %1076 = vrot.lane.b32.xlu2 %v2444_v38, %s2271_s24  ;;  %s2773_s24 = sld [smem:[#allocation2 + $0x48]] }
 0x127   : > { %1126 = vrot.lane.b32.xlu0 %v2243_v1, %s2273_s29 }
 0x128   : > { %v631_v30 = vpop.permute.xlu1 %630  ;;  %v2709_v31 = vpop.permute.xlu2 %729 }
 0x129   : > { %v635_v32 = vsel %vm634_vm1, %v631_v30, %v2665_v36  ;;  %v636_v33 = vsel %vm634_vm1, %v629_v62, %v631_v30  ;;  %v699_v29 = vpop.permute.xlu0 %698  ;;  %v2727_v36 = vld [vmem:[#allocation6] sm:$0x7f]  ;;  %vm1105_vm1 = vcmp.lt.s32.totalorder %v2493_v42, 31 }
 0x12a   : > { %v639_v34 = vmul.f32 %v638_v20, %v636_v33  ;;  %v640_v35 = vmul.f32 %v638_v20, %v635_v32  ;;  %v645_v41 = vmul.f32 %v644_v28, %v636_v33  ;;  %v646_v43 = vmul.f32 %v644_v28, %v635_v32 }
 0x12b   : > { %v462_v2 = vmul.f32 %v2601_v46, %v2727_v36  ;;  %v741_v32 = vstv %s2757_s21  ;;  %s2845_s21 = sld [smem:[#allocation2 + $0xa]] }
 0x12c   : > { %v641_v44 = vadd.f32 %v639_v34, %v626_v16  ;;  %v642_v45 = vadd.f32 %v640_v35, %v627_v27  ;;  %v649_v37 = vrot.slane %v645_v41, 1  ;;  %v650_v48 = vrot.slane %v646_v43, 1 }
 0x12e   : > { %v653_v51 = vadd.f32 %v649_v37, %v641_v44  ;;  %v654_v52 = vadd.f32 %v650_v48, %v642_v45  ;;  %1101 = vrot.lane.b32.xlu1 %v2446_v39, %s2272_s27  ;;  %1103 = vrot.lane.b32.xlu2 %v2444_v38, %s2272_s27  ;;  %s2789_s27 = sld [smem:[#allocation2 + $0x4f]] }
 0x12f   : > { %1153 = vrot.lane.b32.xlu0 %v2446_v39, %s2274_s10 }
 0x130   : > { %v657_v54 = vrot.slane %v653_v51, 7  ;;  %v658_v55 = vrot.slane %v654_v52, 7  ;;  %v674_v50 = vpop.permute.xlu1 %673  ;;  %v2730_v53 = vpop.permute.xlu2 %756 }
 0x131   : > { %v678_v57 = vsel %vm677_vm2, %v674_v50, %v2681_v59  ;;  %v679_v58 = vsel %vm677_vm2, %v672_v12, %v674_v50  ;;  %v726_v60 = vpop.permute.xlu0 %725  ;;  %v768_v50 = vstv %s2773_s24  ;;  %s2858_s24 = sld [smem:[#allocation2 + $0x11]]  ;;  %vm1132_vm2 = vcmp.lt.s32.totalorder %v2493_v42, 15 }
 0x132   : > { %v661_v61 = vmul.f32 %v657_v54, %v2727_v36  ;;  %v662_v62 = vmul.f32 %v658_v55, %v2732_v49  ;;  %v688_v3 = vmul.f32 %v687_v56, %v679_v58  ;;  %v689_v4 = vmul.f32 %v687_v56, %v678_v57 }
 0x133   : > { %v682_v46 = vmul.f32 %v681_v8, %v679_v58  ;;  %v683_v47 = vmul.f32 %v681_v8, %v678_v57 }
 0x134   : > { %v665_v6 = vrot.slane %v661_v61, 1  ;;  %v666_v7 = vrot.slane %v662_v62, 1  ;;  %v692_v59 = vrot.slane %v688_v3, 1  ;;  %v693_v9 = vrot.slane %v689_v4, 1 }
 0x136   : > { %v2742_v40 = vadd.f32 %v665_v6, %v462_v2  ;;  %v2744_v10 = vadd.f32 %v666_v7, %v463_v5  ;;  %1128 = vrot.lane.b32.xlu1 %v2446_v39, %s2273_s29  ;;  %1130 = vrot.lane.b32.xlu2 %v2444_v38, %s2273_s29  ;;  %v696_v17 = vadd.f32 %v692_v59, %v682_v46  ;;  %s2278_s29 = smov 46  }
 0x137   : > { %1180 = vrot.lane.b32.xlu0 %v2446_v39, %s2275_s20  ;;  %v697_v12 = vadd.f32 %v693_v9, %v683_v47  ;;  %v795_v47 = vstv %s2789_s27  ;;  %s2876_s27 = sld [smem:[#allocation2 + $0x42]] }
 0x138   : > { %v701_v13 = vpop.permute.xlu1 %700  ;;  %v2759_v15 = vpop.permute.xlu2 %783 }
 0x139   : > { %v705_v18 = vsel %vm704_vm3, %v701_v13, %v2697_v14  ;;  %v706_v19 = vsel %vm704_vm3, %v699_v29, %v701_v13  ;;  %v753_v21 = vpop.permute.xlu0 %752  ;;  %v735_v14 = vstv %s2751_s17  ;;  %s2840_s17 = sld [smem:[#allocation2 + $0x3]]  ;;  %vm1159_vm3 = vcmp.lt.s32.totalorder %v2493_v42, 127 }
 0x13a   : > { %v709_v22 = vmul.f32 %v708_v63, %v706_v19  ;;  %v710_v23 = vmul.f32 %v708_v63, %v705_v18  ;;  %v715_v24 = vmul.f32 %v714_v11, %v706_v19  ;;  %v716_v25 = vmul.f32 %v714_v11, %v705_v18 }
 0x13c   : > { %v711_v26 = vadd.f32 %v709_v22, %v696_v17  ;;  %v712_v16 = vadd.f32 %v710_v23, %v697_v12  ;;  %v719_v27 = vrot.slane %v715_v24, 1  ;;  %v720_v20 = vrot.slane %v716_v25, 1 }
 0x13e   : > { %v723_v28 = vadd.f32 %v719_v27, %v711_v26  ;;  %v724_v30 = vadd.f32 %v720_v20, %v712_v16  ;;  %1155 = vrot.lane.b32.xlu1 %v2444_v38, %s2274_s10  ;;  %1157 = vrot.lane.b32.xlu2 %v2243_v1, %s2274_s10  ;;  %v822_v20 = vstv %s2805_s4  ;;  %s2821_s10 = sld [smem:[#allocation2 + $0x5d]] }
 0x13f   : > { %1207 = vrot.lane.b32.xlu0 %v2446_v39, %s2276_s18  ;;  %s2893_s4 = sld [smem:[#allocation2 + $0x1f]] }
 0x140   : > { %v728_v33 = vpop.permute.xlu1 %727  ;;  %v2775_v29 = vpop.permute.xlu2 %810 }
 0x141   : > { %v732_v34 = vsel %vm731_vm4, %v728_v33, %v2709_v31  ;;  %v733_v35 = vsel %vm731_vm4, %v726_v60, %v728_v33  ;;  %v780_v41 = vpop.permute.xlu0 %779  ;;  %v762_v31 = vstv %s2767_s22  ;;  %s2281_s22 = smov 29   ;;  %vm1186_vm4 = vcmp.lt.s32.totalorder %v2493_v42, 111 }
 0x142   : > { %v736_v43 = vmul.f32 %v735_v14, %v733_v35  ;;  %v737_v44 = vmul.f32 %v735_v14, %v732_v34  ;;  %v742_v45 = vmul.f32 %v741_v32, %v733_v35  ;;  %v743_v37 = vmul.f32 %v741_v32, %v732_v34 }
 0x144   : > { %v738_v48 = vadd.f32 %v736_v43, %v723_v28  ;;  %v739_v51 = vadd.f32 %v737_v44, %v724_v30  ;;  %v746_v52 = vrot.slane %v742_v45, 1  ;;  %v747_v54 = vrot.slane %v743_v37, 1 }
 0x146   : > { %v750_v55 = vadd.f32 %v746_v52, %v738_v48  ;;  %v751_v56 = vadd.f32 %v747_v54, %v739_v51  ;;  %1182 = vrot.lane.b32.xlu1 %v2444_v38, %s2275_s20  ;;  %1184 = vrot.lane.b32.xlu2 %v2243_v1, %s2275_s20  ;;  %v849_v54 = vstv %s2821_s10  ;;  %s2280_s20 = smov 45   ;;  %s2284_s10 = smov 126  }
 0x147   : > { %1234 = vrot.lane.b32.xlu0 %v2446_v39, %s2277_s26 }
 0x148   : > { %v755_v57 = vpop.permute.xlu1 %754  ;;  %v2791_v58 = vpop.permute.xlu2 %837 }
 0x149   : > { %v759_v60 = vsel %vm758_vm5, %v755_v57, %v2730_v53  ;;  %v760_v61 = vsel %vm758_vm5, %v753_v21, %v755_v57  ;;  %v807_v62 = vpop.permute.xlu0 %806  ;;  %v789_v53 = vstv %s2783_s25  ;;  %s2870_s25 = sld [smem:[#allocation2 + $0x49]]  ;;  %vm1213_vm5 = vcmp.lt.s32.totalorder %v2493_v42, 95 }
 0x14a   : > { %v763_v2 = vmul.f32 %v762_v31, %v760_v61  ;;  %v764_v3 = vmul.f32 %v762_v31, %v759_v60  ;;  %v769_v4 = vmul.f32 %v768_v50, %v760_v61  ;;  %v770_v5 = vmul.f32 %v768_v50, %v759_v60 }
 0x14c   : > { %v765_v6 = vadd.f32 %v763_v2, %v750_v55  ;;  %v766_v7 = vadd.f32 %v764_v3, %v751_v56  ;;  %v773_v8 = vrot.slane %v769_v4, 1  ;;  %v774_v59 = vrot.slane %v770_v5, 1 }
 0x14e   : > { %v777_v9 = vadd.f32 %v773_v8, %v765_v6  ;;  %v778_v46 = vadd.f32 %v774_v59, %v766_v7  ;;  %1209 = vrot.lane.b32.xlu1 %v2444_v38, %s2276_s18  ;;  %1211 = vrot.lane.b32.xlu2 %v2243_v1, %s2276_s18  ;;  %s2849_s18 = sld [smem:[#allocation2 + $0x3b]] }
 0x14f   : > { %1277 = vrot.lane.b32.xlu0 %v2243_v1, %s2278_s29 }
 0x150   : > { %v782_v63 = vpop.permute.xlu1 %781  ;;  %v2807_v11 = vpop.permute.xlu2 %880 }
 0x151   : > { %v786_v13 = vsel %vm785_vm6, %v782_v63, %v2759_v15  ;;  %v787_v17 = vsel %vm785_vm6, %v780_v41, %v782_v63  ;;  %v834_v12 = vpop.permute.xlu0 %833  ;;  %v816_v15 = vstv %s2799_s28  ;;  %s2880_s28 = sld [smem:[#allocation2 + $0x18]]  ;;  %vm1240_vm6 = vcmp.lt.s32.totalorder %v2493_v42, 79 }
 0x152   : > { %v790_v18 = vmul.f32 %v789_v53, %v787_v17  ;;  %v791_v19 = vmul.f32 %v789_v53, %v786_v13  ;;  %v796_v21 = vmul.f32 %v795_v47, %v787_v17  ;;  %v797_v22 = vmul.f32 %v795_v47, %v786_v13 }
 0x154   : > { %v792_v23 = vadd.f32 %v790_v18, %v777_v9  ;;  %v793_v24 = vadd.f32 %v791_v19, %v778_v46  ;;  %v800_v25 = vrot.slane %v796_v21, 1  ;;  %v801_v26 = vrot.slane %v797_v22, 1 }
 0x155   : > { %v892_v9 = vstv %s2837_s11  ;;  %s2915_s11 = sld [smem:[#allocation2 + $0x57]] }
 0x156   : > { %v804_v16 = vadd.f32 %v800_v25, %v792_v23  ;;  %v805_v27 = vadd.f32 %v801_v26, %v793_v24  ;;  %1236 = vrot.lane.b32.xlu1 %v2444_v38, %s2277_s26  ;;  %1238 = vrot.lane.b32.xlu2 %v2243_v1, %s2277_s26  ;;  %v886_v23 = vstv %s2840_s17  ;;  %s2282_s26 = smov 14   ;;  %s2930_s17 = sld [smem:[#allocation2 + $0x2d]] }
 0x157   : > { %1304 = vrot.lane.b32.xlu0 %v2243_v1, %s2279_s9 }
 0x158   : > { %v809_v28 = vpop.permute.xlu1 %808  ;;  %v2823_v30 = vpop.permute.xlu2 %907 }
 0x159   : > { %v813_v14 = vsel %vm812_vm7, %v809_v28, %v2775_v29  ;;  %v814_v32 = vsel %vm812_vm7, %v807_v62, %v809_v28  ;;  %v877_v33 = vpop.permute.xlu0 %876  ;;  %v843_v29 = vstv %s2815_s5  ;;  %s2898_s5 = sld [smem:[#allocation2 + $0x50]]  ;;  %vm1283_vm7 = vcmp.lt.s32.totalorder %v2493_v42, 46 }
 0x15a   : > { %v817_v34 = vmul.f32 %v816_v15, %v814_v32  ;;  %v818_v35 = vmul.f32 %v816_v15, %v813_v14  ;;  %v823_v41 = vmul.f32 %v822_v20, %v814_v32  ;;  %v824_v43 = vmul.f32 %v822_v20, %v813_v14 }
 0x15b   : > { %v919_v15 = vstv %s2849_s18  ;;  %s2952_s18 = sld [smem:[#allocation2 + $0x35]] }
 0x15c   : > { %v819_v44 = vadd.f32 %v817_v34, %v804_v16  ;;  %v820_v45 = vadd.f32 %v818_v35, %v805_v27  ;;  %v827_v37 = vrot.slane %v823_v41, 1  ;;  %v828_v48 = vrot.slane %v824_v43, 1 }
 0x15e   : > { %v831_v51 = vadd.f32 %v827_v37, %v819_v44  ;;  %v832_v52 = vadd.f32 %v828_v48, %v820_v45  ;;  %1279 = vrot.lane.b32.xlu1 %v2446_v39, %s2278_s29  ;;  %1281 = vrot.lane.b32.xlu2 %v2444_v38, %s2278_s29  ;;  %s2283_s29 = smov 13  }
 0x15f   : > { %1306 = vrot.lane.b32.xlu0 %v2446_v39, %s2279_s9 }
 0x160   : > { %v836_v55 = vpop.permute.xlu1 %835  ;;  %v2835_v56 = vpop.permute.xlu2 %934 }
 0x161   : > { %v840_v31 = vsel %vm839_vm8, %v836_v55, %v2791_v58  ;;  %v841_v50 = vsel %vm839_vm8, %v834_v12, %v836_v55  ;;  %v904_v57 = vpop.permute.xlu0 %903  ;;  %v946_v55 = vstv %s2876_s27  ;;  %s2966_s27 = sld [smem:[#allocation2 + $0x3c]]  ;;  %vm1310_vm8 = vcmp.lt.s32.totalorder %v2493_v42, 30 }
 0x162   : > { %v844_v60 = vmul.f32 %v843_v29, %v841_v50  ;;  %v845_v61 = vmul.f32 %v843_v29, %v840_v31  ;;  %v850_v62 = vmul.f32 %v849_v54, %v841_v50  ;;  %v851_v2 = vmul.f32 %v849_v54, %v840_v31 }
 0x163   : > { %v940_v54 = vstv %s2858_s24  ;;  %v958_v31 = vstv %s2880_s28  ;;  %s2955_s24 = sld [smem:[#allocation2 + $0x4]] }
 0x164   : > { %v846_v3 = vadd.f32 %v844_v60, %v831_v51  ;;  %v847_v4 = vadd.f32 %v845_v61, %v832_v52  ;;  %v854_v5 = vrot.slane %v850_v62, 1  ;;  %v855_v6 = vrot.slane %v851_v2, 1  ;;  %s2986_s28 = sld [smem:[#allocation2 + $0x12]] }
 0x166   : > { %v858_v7 = vadd.f32 %v854_v5, %v846_v3  ;;  %v859_v8 = vadd.f32 %v855_v6, %v847_v4  ;;  %1484 = vrot.lane.b32.xlu1 %v2446_v39, %s2280_s20  ;;  %1486 = vrot.lane.b32.xlu2 %v2444_v38, %s2280_s20 }
 0x167   : > { %1511 = vrot.lane.b32.xlu0 %v2446_v39, %s2281_s22 }
 0x168   : > { %v862_v58 = vrot.slane %v858_v7, 6  ;;  %v863_v59 = vrot.slane %v859_v8, 6  ;;  %v879_v46 = vpop.permute.xlu1 %878  ;;  %v2852_v53 = vpop.permute.xlu2 %979  ;;  %v960_v8 = vmul.f32 %v958_v31, %v2444_v38 }
 0x169   : > { %v883_v47 = vsel %vm882_vm9, %v879_v46, %v2807_v11  ;;  %v884_v63 = vsel %vm882_vm9, %v877_v33, %v879_v46  ;;  %v931_v13 = vpop.permute.xlu0 %930  ;;  %vm1488_vm9 = vcmp.lt.s32.totalorder %v2493_v42, 45 }
 0x16a   : > { %v866_v17 = vmul.f32 %v862_v58, %v2727_v36  ;;  %v867_v12 = vmul.f32 %v863_v59, %v2732_v49  ;;  %v893_v18 = vmul.f32 %v892_v9, %v884_v63  ;;  %v894_v19 = vmul.f32 %v892_v9, %v883_v47 }
 0x16b   : > { %v887_v16 = vmul.f32 %v886_v23, %v884_v63  ;;  %v888_v27 = vmul.f32 %v886_v23, %v883_v47  ;;  %v959_v58 = vmul.f32 %v958_v31, %v2446_v39 }
 0x16c   : > { %v870_v21 = vrot.slane %v866_v17, 2  ;;  %v871_v22 = vrot.slane %v867_v12, 2  ;;  %v897_v24 = vrot.slane %v893_v18, 1  ;;  %v898_v25 = vrot.slane %v894_v19, 1 }
 0x16d   : > { %v985_v12 = vstv %s2893_s4  ;;  %s2992_s4 = sld [smem:[#allocation2 + $0x43]] }
 0x16e   : > { %v2861_v26 = vadd.f32 %v870_v21, %v2742_v40  ;;  %v2864_v11 = vadd.f32 %v871_v22, %v2744_v10  ;;  %1308 = vrot.lane.b32.xlu1 %v2444_v38, %s2279_s9  ;;  %1482 = vrot.lane.b32.xlu2 %v2243_v1, %s2280_s20  ;;  %v913_v40 = vstv %s2845_s21  ;;  %v901_v28 = vadd.f32 %v897_v24, %v887_v16  ;;  %s2910_s9 = sld [smem:[#allocation2 + $0x26]]  ;;  %s2285_s20 = smov 125  }
 0x16f   : > { %1335 = vrot.lane.b32.xlu0 %v2444_v38, %s2282_s26  ;;  %v902_v14 = vadd.f32 %v898_v25, %v888_v27  ;;  %v991_v21 = vstv %s2898_s5  ;;  %s2936_s21 = sld [smem:[#allocation2 + $0x5e]] }
 0x170   : > { %v906_v10 = vpop.permute.xlu1 %905  ;;  %v2878_v20 = vpop.permute.xlu2 %1006  ;;  %s3002_s5 = sld [smem:[#allocation2 + $0x19]] }
 0x171   : > { %v910_v32 = vsel %vm909_vm10, %v906_v10, %v2823_v30  ;;  %v911_v33 = vsel %vm909_vm10, %v904_v57, %v906_v10  ;;  %v976_v34 = vpop.permute.xlu0 %975  ;;  %v964_v30 = vstv %s2870_s25  ;;  %s2962_s25 = sld [smem:[#allocation2 + $0xb]]  ;;  %vm1337_vm10 = vcmp.lt.s32.totalorder %v2493_v42, 14 }
 0x172   : > { %v914_v35 = vmul.f32 %v913_v40, %v911_v33  ;;  %v915_v41 = vmul.f32 %v913_v40, %v910_v32  ;;  %v920_v43 = vmul.f32 %v919_v15, %v911_v33  ;;  %v921_v44 = vmul.f32 %v919_v15, %v910_v32 }
 0x173   : > { %v966_v2 = vmul.f32 %v964_v30, %v2444_v38  ;;  %v965_v3 = vmul.f32 %v964_v30, %v2446_v39 }
 0x174   : > { %v916_v45 = vadd.f32 %v914_v35, %v901_v28  ;;  %v917_v37 = vadd.f32 %v915_v41, %v902_v14  ;;  %v924_v48 = vrot.slane %v920_v43, 1  ;;  %v925_v51 = vrot.slane %v921_v44, 1 }
 0x175   : > { %v969_v17 = vrot.slane %v965_v3, 1  ;;  %v1012_v43 = vstv %s2910_s9  ;;  %v1018_v44 = vstv %s2915_s11  ;;  %s2289_s9 = smov 93   ;;  %s3018_s11 = sld [smem:[#allocation2 + $0x20]] }
 0x176   : > { %v928_v52 = vadd.f32 %v924_v48, %v916_v45  ;;  %v929_v29 = vadd.f32 %v925_v51, %v917_v37  ;;  %1513 = vrot.lane.b32.xlu1 %v2444_v38, %s2281_s22  ;;  %1333 = vrot.lane.b32.xlu2 %v2446_v39, %s2282_s26 }
 0x177   : > { %1538 = vrot.lane.b32.xlu0 %v2446_v39, %s2283_s29 }
 0x178   : > { %v933_v50 = vpop.permute.xlu1 %932  ;;  %v2896_v57 = vpop.permute.xlu2 %1033 }
 0x179   : > { %v937_v60 = vsel %vm936_vm11, %v933_v50, %v2835_v56  ;;  %v938_v61 = vsel %vm936_vm11, %v931_v13, %v933_v50  ;;  %v1003_v62 = vpop.permute.xlu0 %1002  ;;  %v970_v13 = vrot.slane %v966_v2, 1  ;;  %vm1364_vm11 = vcmp.lt.s32.totalorder %v2493_v42, 126 }
 0x17a   : > { %v941_v4 = vmul.f32 %v940_v54, %v938_v61  ;;  %v942_v5 = vmul.f32 %v940_v54, %v937_v60  ;;  %v947_v6 = vmul.f32 %v946_v55, %v938_v61  ;;  %v948_v7 = vmul.f32 %v946_v55, %v937_v60 }
 0x17c   : > { %v943_v59 = vadd.f32 %v941_v4, %v928_v52  ;;  %v944_v9 = vadd.f32 %v942_v5, %v929_v29  ;;  %v951_v46 = vrot.slane %v947_v6, 1  ;;  %v952_v56 = vrot.slane %v948_v7, 1 }
 0x17e   : > { %v955_v47 = vadd.f32 %v951_v46, %v943_v59  ;;  %v956_v63 = vadd.f32 %v952_v56, %v944_v9  ;;  %1509 = vrot.lane.b32.xlu1 %v2243_v1, %s2281_s22  ;;  %1331 = vrot.lane.b32.xlu2 %v2243_v1, %s2282_s26  ;;  %s2286_s22 = smov 110   ;;  %s2287_s26 = smov 109  }
 0x17f   : > { %1362 = vrot.lane.b32.xlu0 %v2243_v1, %s2284_s10 }
 0x180   : > { %v961_v18 = vadd.f32 %v959_v58, %v955_v47  ;;  %v962_v19 = vadd.f32 %v960_v8, %v956_v63  ;;  %v978_v22 = vpop.permute.xlu1 %977  ;;  %v2918_v23 = vpop.permute.xlu2 %1076 }
 0x181   : > { %v982_v24 = vsel %vm981_vm12, %v978_v22, %v2852_v53  ;;  %v983_v25 = vsel %vm981_vm12, %v976_v34, %v978_v22  ;;  %v1030_v16 = vpop.permute.xlu0 %1029  ;;  %vm1391_vm12 = vcmp.lt.s32.totalorder %v2493_v42, 110 }
 0x182   : > { %v973_v27 = vadd.f32 %v969_v17, %v961_v18  ;;  %v974_v40 = vadd.f32 %v970_v13, %v962_v19  ;;  %v986_v15 = vmul.f32 %v985_v12, %v983_v25  ;;  %v987_v10 = vmul.f32 %v985_v12, %v982_v24 }
 0x183   : > { %v992_v28 = vmul.f32 %v991_v21, %v983_v25  ;;  %v993_v14 = vmul.f32 %v991_v21, %v982_v24  ;;  %v1088_v19 = vstv %s2952_s18  ;;  %s2291_s18 = smov 77  }
 0x184   : > { %v988_v32 = vadd.f32 %v986_v15, %v973_v27  ;;  %v989_v33 = vadd.f32 %v987_v10, %v974_v40 }
 0x185   : > { %v996_v35 = vrot.slane %v992_v28, 1  ;;  %v997_v41 = vrot.slane %v993_v14, 1 }
 0x186   : > { %1540 = vrot.lane.b32.xlu1 %v2444_v38, %s2283_s29  ;;  %1360 = vrot.lane.b32.xlu2 %v2444_v38, %s2284_s10 }
 0x187   : > { %v1000_v53 = vadd.f32 %v996_v35, %v988_v32  ;;  %v1001_v34 = vadd.f32 %v997_v41, %v989_v33  ;;  %1565 = vrot.lane.b32.xlu0 %v2444_v38, %s2285_s20  ;;  %v1082_v32 = vstv %s2955_s24  ;;  %s3050_s24 = sld [smem:[#allocation2 + $0x2e]] }
 0x188   : > { %v1005_v45 = vpop.permute.xlu1 %1004  ;;  %v2938_v37 = vpop.permute.xlu2 %1103 }
 0x189   : > { %v1009_v48 = vsel %vm1008_vm13, %v1005_v45, %v2878_v20  ;;  %v1010_v51 = vsel %vm1008_vm13, %v1003_v62, %v1005_v45  ;;  %v1073_v52 = vpop.permute.xlu0 %1072  ;;  %v1039_v20 = vstv %s2930_s17  ;;  %v1045_v62 = vstv %s2936_s21  ;;  %s2290_s17 = smov 78   ;;  %s3034_s21 = sld [smem:[#allocation2 + $0x27]] }
 0x18a   : > { %v1013_v29 = vmul.f32 %v1012_v43, %v1010_v51  ;;  %v1014_v30 = vmul.f32 %v1012_v43, %v1009_v48  ;;  %v1019_v54 = vmul.f32 %v1018_v44, %v1010_v51  ;;  %v1020_v55 = vmul.f32 %v1018_v44, %v1009_v48 }
 0x18b   : > { %vm1418_vm13 = vcmp.lt.s32.totalorder %v2493_v42, 94 }
 0x18c   : > { %v1015_v31 = vadd.f32 %v1013_v29, %v1000_v53  ;;  %v1016_v50 = vadd.f32 %v1014_v30, %v1001_v34  ;;  %v1023_v60 = vrot.slane %v1019_v54, 1  ;;  %v1024_v61 = vrot.slane %v1020_v55, 1 }
 0x18d   : > { %v1115_v53 = vstv %s2966_s27  ;;  %s3068_s27 = sld [smem:[#allocation2 + $0x36]] }
 0x18e   : > { %v1027_v2 = vadd.f32 %v1023_v60, %v1015_v31  ;;  %v1028_v3 = vadd.f32 %v1024_v61, %v1016_v50  ;;  %1536 = vrot.lane.b32.xlu1 %v2243_v1, %s2283_s29  ;;  %1358 = vrot.lane.b32.xlu2 %v2446_v39, %s2284_s10  ;;  %s2288_s29 = smov 94   ;;  %s3008_s10 = sld [smem:[#allocation2 + $0x4a]] }
 0x18f   : > { %1389 = vrot.lane.b32.xlu0 %v2243_v1, %s2286_s22 }
 0x190   : > { %v1032_v4 = vpop.permute.xlu1 %1031  ;;  %v2950_v5 = vpop.permute.xlu2 %1130 }
 0x191   : > { %v1036_v6 = vsel %vm1035_vm14, %v1032_v4, %v2896_v57  ;;  %v1037_v7 = vsel %vm1035_vm14, %v1030_v16, %v1032_v4  ;;  %v1100_v8 = vpop.permute.xlu0 %1099  ;;  %vm1515_vm14 = vcmp.lt.s32.totalorder %v2493_v42, 29 }
 0x192   : > { %v1040_v58 = vmul.f32 %v1039_v20, %v1037_v7  ;;  %v1041_v59 = vmul.f32 %v1039_v20, %v1036_v6  ;;  %v1046_v9 = vmul.f32 %v1045_v62, %v1037_v7  ;;  %v1047_v46 = vmul.f32 %v1045_v62, %v1036_v6 }
 0x194   : > { %v1042_v56 = vadd.f32 %v1040_v58, %v1027_v2  ;;  %v1043_v47 = vadd.f32 %v1041_v59, %v1028_v3  ;;  %v1050_v63 = vrot.slane %v1046_v9, 1  ;;  %v1051_v13 = vrot.slane %v1047_v46, 1 }
 0x195   : > { %v1142_v3 = vstv %s2992_s4  ;;  %s3118_s4 = sld [smem:[#allocation2 + $0x13]] }
 0x196   : > { %v1054_v17 = vadd.f32 %v1050_v63, %v1042_v56  ;;  %v1055_v12 = vadd.f32 %v1051_v13, %v1043_v47  ;;  %1567 = vrot.lane.b32.xlu1 %v2243_v1, %s2285_s20  ;;  %1387 = vrot.lane.b32.xlu2 %v2444_v38, %s2286_s22 }
 0x197   : > { %1592 = vrot.lane.b32.xlu0 %v2444_v38, %s2287_s26 }
 0x198   : > { %v1058_v57 = vrot.slane %v1054_v17, 5  ;;  %v1059_v18 = vrot.slane %v1055_v12, 5  ;;  %v1075_v21 = vpop.permute.xlu1 %1074  ;;  %v2969_v22 = vpop.permute.xlu2 %1157  ;;  %v1169_v12 = vstv %s3008_s10  ;;  %s3129_s10 = sld [smem:[#allocation2 + $0x4b]] }
 0x199   : > { %v1079_v24 = vsel %vm1078_vm15, %v1075_v21, %v2918_v23  ;;  %v1080_v25 = vsel %vm1078_vm15, %v1073_v52, %v1075_v21  ;;  %v1127_v16 = vpop.permute.xlu0 %1126  ;;  %vm1542_vm15 = vcmp.lt.s32.totalorder %v2493_v42, 13 }
 0x19a   : > { %v1062_v27 = vmul.f32 %v1058_v57, %v2727_v36  ;;  %v1063_v40 = vmul.f32 %v1059_v18, %v2732_v49  ;;  %v1089_v15 = vmul.f32 %v1088_v19, %v1080_v25  ;;  %v1090_v10 = vmul.f32 %v1088_v19, %v1079_v24 }
 0x19b   : > { %v1083_v36 = vmul.f32 %v1082_v32, %v1080_v25  ;;  %v1084_v49 = vmul.f32 %v1082_v32, %v1079_v24 }
 0x19c   : > { %v1066_v28 = vrot.slane %v1062_v27, 3  ;;  %v1067_v14 = vrot.slane %v1063_v40, 3  ;;  %v1093_v33 = vrot.slane %v1089_v15, 1  ;;  %v1094_v35 = vrot.slane %v1090_v10, 1 }
 0x19e   : > { %v2976_v41 = vadd.f32 %v1066_v28, %v2861_v26  ;;  %v2979_v23 = vadd.f32 %v1067_v14, %v2864_v11  ;;  %1563 = vrot.lane.b32.xlu1 %v2446_v39, %s2285_s20  ;;  %1385 = vrot.lane.b32.xlu2 %v2446_v39, %s2286_s22  ;;  %v1109_v26 = vstv %s2962_s25  ;;  %v1097_v43 = vadd.f32 %v1093_v33, %v1083_v36  ;;  %s3024_s20 = sld [smem:[#allocation2 + $0x51]] }
 0x19f   : > { %1416 = vrot.lane.b32.xlu0 %v2243_v1, %s2288_s29  ;;  %v1098_v44 = vadd.f32 %v1094_v35, %v1084_v49  ;;  %s3038_s22 = sld [smem:[#allocation2 + $0x58]] }
 0x1a0   : > { %v1102_v11 = vpop.permute.xlu1 %1101  ;;  %v2994_v34 = vpop.permute.xlu2 %1184  ;;  %s3054_s25 = sld [smem:[#allocation2 + $0x5f]] }
 0x1a1   : > { %v1106_v45 = vsel %vm1105_vm1, %v1102_v11, %v2938_v37  ;;  %v1107_v48 = vsel %vm1105_vm1, %v1100_v8, %v1102_v11  ;;  %v1154_v51 = vpop.permute.xlu0 %1153  ;;  %v1136_v37 = vstv %s2986_s28  ;;  %s3071_s28 = sld [smem:[#allocation2 + $0x3d]]  ;;  %vm1445_vm1 = vcmp.lt.s32.totalorder %v2493_v42, 78 }
 0x1a2   : > { %v1110_v52 = vmul.f32 %v1109_v26, %v1107_v48  ;;  %v1111_v29 = vmul.f32 %v1109_v26, %v1106_v45  ;;  %v1116_v30 = vmul.f32 %v1115_v53, %v1107_v48  ;;  %v1117_v54 = vmul.f32 %v1115_v53, %v1106_v45 }
 0x1a4   : > { %v1112_v55 = vadd.f32 %v1110_v52, %v1097_v43  ;;  %v1113_v31 = vadd.f32 %v1111_v29, %v1098_v44  ;;  %v1120_v50 = vrot.slane %v1116_v30, 1  ;;  %v1121_v60 = vrot.slane %v1117_v54, 1 }
 0x1a5   : > { %v1196_v35 = vstv %s3024_s20  ;;  %s3150_s20 = sld [smem:[#allocation2 + $0x6]] }
 0x1a6   : > { %v1124_v61 = vadd.f32 %v1120_v50, %v1112_v55  ;;  %v1125_v2 = vadd.f32 %v1121_v60, %v1113_v31  ;;  %1594 = vrot.lane.b32.xlu1 %v2243_v1, %s2287_s26  ;;  %1414 = vrot.lane.b32.xlu2 %v2444_v38, %s2288_s29 }
 0x1a7   : > { %1619 = vrot.lane.b32.xlu0 %v2444_v38, %s2289_s9 }
 0x1a8   : > { %v1129_v20 = vpop.permute.xlu1 %1128  ;;  %v3010_v62 = vpop.permute.xlu2 %1211 }
 0x1a9   : > { %v1133_v4 = vsel %vm1132_vm2, %v1129_v20, %v2950_v5  ;;  %v1134_v6 = vsel %vm1132_vm2, %v1127_v16, %v1129_v20  ;;  %v1181_v7 = vpop.permute.xlu0 %1180  ;;  %v1163_v5 = vstv %s3002_s5  ;;  %s3120_s5 = sld [smem:[#allocation2 + $0x44]]  ;;  %vm1569_vm2 = vcmp.lt.s32.totalorder %v2493_v42, 125 }
 0x1aa   : > { %v1137_v8 = vmul.f32 %v1136_v37, %v1134_v6  ;;  %v1138_v58 = vmul.f32 %v1136_v37, %v1133_v4  ;;  %v1143_v59 = vmul.f32 %v1142_v3, %v1134_v6  ;;  %v1144_v9 = vmul.f32 %v1142_v3, %v1133_v4 }
 0x1ac   : > { %v1139_v46 = vadd.f32 %v1137_v8, %v1124_v61  ;;  %v1140_v56 = vadd.f32 %v1138_v58, %v1125_v2  ;;  %v1147_v47 = vrot.slane %v1143_v59, 1  ;;  %v1148_v63 = vrot.slane %v1144_v9, 1 }
 0x1ae   : > { %v1151_v13 = vadd.f32 %v1147_v47, %v1139_v46  ;;  %v1152_v17 = vadd.f32 %v1148_v63, %v1140_v56  ;;  %1590 = vrot.lane.b32.xlu1 %v2446_v39, %s2287_s26  ;;  %1412 = vrot.lane.b32.xlu2 %v2446_v39, %s2288_s29  ;;  %v1250_v46 = vstv %s3054_s25  ;;  %s3066_s26 = sld [smem:[#allocation2 + $0x5]] }
 0x1af   : > { %1443 = vrot.lane.b32.xlu0 %v2243_v1, %s2290_s17  ;;  %s3073_s29 = sld [smem:[#allocation2 + $0xc]] }
 0x1b0   : > { %v1156_v57 = vpop.permute.xlu1 %1155  ;;  %v3026_v18 = vpop.permute.xlu2 %1238  ;;  %s3167_s25 = sld [smem:[#allocation2 + $0x3e]] }
 0x1b1   : > { %v1160_v19 = vsel %vm1159_vm3, %v1156_v57, %v2969_v22  ;;  %v1161_v21 = vsel %vm1159_vm3, %v1154_v51, %v1156_v57  ;;  %v1208_v24 = vpop.permute.xlu0 %1207  ;;  %v1190_v22 = vstv %s3018_s11  ;;  %s3137_s11 = sld [smem:[#allocation2 + $0x21]]  ;;  %vm1596_vm3 = vcmp.lt.s32.totalorder %v2493_v42, 109 }
 0x1b2   : > { %v1164_v25 = vmul.f32 %v1163_v5, %v1161_v21  ;;  %v1165_v16 = vmul.f32 %v1163_v5, %v1160_v19  ;;  %v1170_v27 = vmul.f32 %v1169_v12, %v1161_v21  ;;  %v1171_v40 = vmul.f32 %v1169_v12, %v1160_v19 }
 0x1b4   : > { %v1166_v15 = vadd.f32 %v1164_v25, %v1151_v13  ;;  %v1167_v10 = vadd.f32 %v1165_v16, %v1152_v17  ;;  %v1174_v28 = vrot.slane %v1170_v27, 1  ;;  %v1175_v14 = vrot.slane %v1171_v40, 1 }
 0x1b5   : > { %v1293_v40 = vstv %s3068_s27  ;;  %s3177_s27 = sld [smem:[#allocation2 + $0x45]] }
 0x1b6   : > { %v1178_v32 = vadd.f32 %v1174_v28, %v1166_v15  ;;  %v1179_v33 = vadd.f32 %v1175_v14, %v1167_v10  ;;  %1621 = vrot.lane.b32.xlu1 %v2243_v1, %s2289_s9  ;;  %1441 = vrot.lane.b32.xlu2 %v2444_v38, %s2290_s17 }
 0x1b7   : > { %1646 = vrot.lane.b32.xlu0 %v2444_v38, %s2291_s18  ;;  %v1217_v38 = vstv %s3034_s21  ;;  %s3152_s21 = sld [smem:[#allocation2 + $0x37]] }
 0x1b8   : > { %v1183_v36 = vpop.permute.xlu1 %1182  ;;  %v3042_v49 = vpop.permute.xlu2 %1281 }
 0x1b9   : > { %v1187_v26 = vsel %vm1186_vm4, %v1183_v36, %v2994_v34  ;;  %v1188_v53 = vsel %vm1186_vm4, %v1181_v7, %v1183_v36  ;;  %v1235_v11 = vpop.permute.xlu0 %1234  ;;  %v1223_v34 = vstv %s3038_s22  ;;  %v3085_v36 = vld [vmem:[#allocation6 + $0x8] sm:$0x7f]  ;;  %s3158_s22 = sld [smem:[#allocation2 + $0x28]]  ;;  %vm1623_vm4 = vcmp.lt.s32.totalorder %v2493_v42, 93 }
 0x1ba   : > { %v1191_v43 = vmul.f32 %v1190_v22, %v1188_v53  ;;  %v1192_v44 = vmul.f32 %v1190_v22, %v1187_v26  ;;  %v1197_v45 = vmul.f32 %v1196_v35, %v1188_v53  ;;  %v1198_v48 = vmul.f32 %v1196_v35, %v1187_v26  ;;  %v3082_v22 = vld [vmem:[#allocation6] sm:$0x7f] }
 0x1bb   : > { %v1287_v53 = vstv %s3066_s26  ;;  %s3175_s26 = sld [smem:[#allocation2 + $0x14]] }
 0x1bc   : > { %v1193_v51 = vadd.f32 %v1191_v43, %v1178_v32  ;;  %v1194_v52 = vadd.f32 %v1192_v44, %v1179_v33  ;;  %v1201_v29 = vrot.slane %v1197_v45, 1  ;;  %v1202_v30 = vrot.slane %v1198_v48, 1 }
 0x1bd   : > { %v1320_v32 = vstv %s3071_s28  ;;  %s3187_s28 = sld [smem:[#allocation2 + $0x2f]] }
 0x1be   : > { %v1205_v54 = vadd.f32 %v1201_v29, %v1193_v51  ;;  %v1206_v55 = vadd.f32 %v1202_v30, %v1194_v52  ;;  %1617 = vrot.lane.b32.xlu1 %v2446_v39, %s2289_s9  ;;  %1439 = vrot.lane.b32.xlu2 %v2446_v39, %s2290_s17  ;;  %s3127_s9 = sld [smem:[#allocation2 + $0x1a]] }
 0x1bf   : > { %s3143_s17 = sld [smem:[#allocation2 + $0x52]] }
 0x1c0   : > { %v1210_v31 = vpop.permute.xlu1 %1209  ;;  %v3056_v50 = vpop.permute.xlu2 %1486 }
 0x1c1   : > { %v1214_v60 = vsel %vm1213_vm5, %v1210_v31, %v3010_v62  ;;  %v1215_v61 = vsel %vm1213_vm5, %v1208_v24, %v1210_v31  ;;  %v1278_v2 = vpop.permute.xlu0 %1277  ;;  %v1244_v62 = vstv %s3050_s24  ;;  %s3162_s24 = sld [smem:[#allocation2 + $0xd]]  ;;  %vm1650_vm5 = vcmp.lt.s32.totalorder %v2493_v42, 77 }
 0x1c2   : > { %v1218_v37 = vmul.f32 %v1217_v38, %v1215_v61  ;;  %v1219_v3 = vmul.f32 %v1217_v38, %v1214_v60  ;;  %v1224_v20 = vmul.f32 %v1223_v34, %v1215_v61  ;;  %v1225_v4 = vmul.f32 %v1223_v34, %v1214_v60 }
 0x1c4   : > { %v1220_v6 = vadd.f32 %v1218_v37, %v1205_v54  ;;  %v1221_v7 = vadd.f32 %v1219_v3, %v1206_v55  ;;  %v1228_v8 = vrot.slane %v1224_v20, 1  ;;  %v1229_v58 = vrot.slane %v1225_v4, 1 }
 0x1c6   : > { %v1232_v59 = vadd.f32 %v1228_v8, %v1220_v6  ;;  %v1233_v9 = vadd.f32 %v1229_v58, %v1221_v7  ;;  %1648 = vrot.lane.b32.xlu1 %v2243_v1, %s2291_s18  ;;  %1644 = vrot.lane.b32.xlu2 %v2446_v39, %s2291_s18  ;;  %s3160_s18 = sld [smem:[#allocation2 + $0x59]] }
 0x1c8   : > { %v1237_v56 = vpop.permute.xlu1 %1236  ;;  %v1483_v47 = vpop.permute.xlu2 %1482 }
 0x1c9   : > { %v1241_v63 = vsel %vm1240_vm6, %v1237_v56, %v3026_v18  ;;  %v1242_v13 = vsel %vm1240_vm6, %v1235_v11, %v1237_v56  ;;  %v1305_v17 = vpop.permute.xlu0 %1304  ;;  %v1314_v11 = vstv %s3073_s29  ;;  %s3193_s29 = sld [smem:[#allocation2 + $0x60]] }
 0x1ca   : > { %v1245_v1 = vmul.f32 %v1244_v62, %v1242_v13  ;;  %v1246_v5 = vmul.f32 %v1244_v62, %v1241_v63  ;;  %v1251_v12 = vmul.f32 %v1250_v46, %v1242_v13  ;;  %v1252_v57 = vmul.f32 %v1250_v46, %v1241_v63 }
 0x1cc   : > { %v1247_v39 = vadd.f32 %v1245_v1, %v1232_v59  ;;  %v1248_v19 = vadd.f32 %v1246_v5, %v1233_v9  ;;  %v1255_v21 = vrot.slane %v1251_v12, 1  ;;  %v1256_v24 = vrot.slane %v1252_v57, 1 }
 0x1ce   : > { %v1259_v25 = vadd.f32 %v1255_v21, %v1247_v39  ;;  %v1260_v16 = vadd.f32 %v1256_v24, %v1248_v19  ;;  %v1341_v39 = vstv %s3118_s4  ;;  %v1347_v19 = vstv %s3120_s5  ;;  %s3222_s4 = sld [smem:[#allocation2 + $0x1b]] }
 0x1cf   : > { %s3229_s5 = sld [smem:[#allocation2 + $0x4c]] }
 0x1d0   : > { %v1263_v18 = vrot.slane %v1259_v25, 4  ;;  %v1264_v27 = vrot.slane %v1260_v16, 4  ;;  %v1280_v15 = vpop.permute.xlu1 %1279  ;;  %v3077_v10 = vpop.permute.xlu2 %1333 }
 0x1d1   : > { %v1284_v28 = vsel %vm1283_vm7, %v1280_v15, %v3042_v49  ;;  %v1285_v14 = vsel %vm1283_vm7, %v1278_v2, %v1280_v15  ;;  %v1307_v33 = vpop.permute.xlu0 %1306  ;;  %v1374_v15 = vstv %s3129_s10  ;;  %s3252_s10 = sld [smem:[#allocation2 + $0x53]] }
 0x1d2   : > { %v1267_v35 = vmul.f32 %v3082_v22, %v1263_v18  ;;  %v1268_v26 = vmul.f32 %v3085_v36, %v1264_v27  ;;  %v1294_v43 = vmul.f32 %v1293_v40, %v1285_v14  ;;  %v1312_v44 = vsel %vm1310_vm8, %v1305_v17, %v1307_v33 }
 0x1d3   : > { %v1321_v49 = vmul.f32 %v1320_v32, %v1312_v44  ;;  %v1288_v51 = vmul.f32 %v1287_v53, %v1285_v14  ;;  %v1315_v29 = vmul.f32 %v1314_v11, %v1312_v44  ;;  %v1295_v3 = vmul.f32 %v1293_v40, %v1284_v28 }
 0x1d4   : > { %v1271_v45 = vrot.slane %v1267_v35, 4  ;;  %v1272_v48 = vrot.slane %v1268_v26, 4  ;;  %v1298_v52 = vrot.slane %v1294_v43, 1  ;;  %v1289_v4 = vmul.f32 %v1287_v53, %v1284_v28 }
 0x1d5   : > { %v1325_v38 = vrot.slane %v1321_v49, 1  ;;  %v1299_v20 = vrot.slane %v1295_v3, 1  ;;  %v1368_v40 = vstv %s3127_s9  ;;  %s3249_s9 = sld [smem:[#allocation2 + $0x22]] }
 0x1d6   : > { %v3093_v30 = vadd.f32 %v1271_v45, %v2976_v41  ;;  %v3096_v54 = vadd.f32 %v1272_v48, %v2979_v23  ;;  %v1302_v55 = vadd.f32 %v1298_v52, %v1288_v51 }
 0x1d7   : > { %v1303_v58 = vadd.f32 %v1299_v20, %v1289_v4  ;;  %v1422_v4 = vstv %s3158_s22  ;;  %s1963_s22 = sshll.u32 %s2333_s16, 3 }
 0x1d8   : > { %v1485_v34 = vpop.permute.xlu1 %1484  ;;  %v1332_v31 = vpop.permute.xlu2 %1331  ;;  %v1317_v60 = vadd.f32 %v1315_v29, %v1302_v55 }
 0x1d9   : > { %v3100_v61 = vsel %vm1488_vm9, %v1485_v34, %v3056_v50  ;;  %v3102_v2 = vsel %vm1488_vm9, %v1483_v47, %v1485_v34  ;;  %v3104_v37 = vpop.permute.xlu0 %1511  ;;  %v1339_v21 = vsel %vm1337_vm10, %v1332_v31, %v3077_v10  ;;  %v1498_v31 = vstv %s3152_s21  ;;  %s3282_s21 = sld [smem:[#allocation2 + $0x30]] }
 0x1da   : > { %v1329_v41 = vadd.f32 %v1325_v38, %v1317_v60  ;;  %v1342_v24 = vmul.f32 %v1341_v39, %v1339_v21  ;;  %v1348_v25 = vmul.f32 %v1347_v19, %v1339_v21 }
 0x1dc   : > { %v1344_v14 = vadd.f32 %v1342_v24, %v1329_v41  ;;  %v1492_v41 = vstv %s3150_s20  ;;  %s3274_s20 = sld [smem:[#allocation2 + $0x61]] }
 0x1e0   : > { %v1309_v23 = vpop.permute.xlu1 %1308  ;;  %v3106_v6 = vpop.permute.xlu2 %1360 }
 0x1e1   : > { %v1311_v7 = vsel %vm1310_vm8, %v1307_v33, %v1309_v23  ;;  %v1336_v8 = vpop.permute.xlu0 %1335 }
 0x1e2   : > { %v1316_v59 = vmul.f32 %v1314_v11, %v1311_v7  ;;  %v1322_v9 = vmul.f32 %v1320_v32, %v1311_v7  ;;  %v1352_v32 = vrot.slane %v1348_v25, 1  ;;  %v1338_v33 = vsel %vm1337_vm10, %v3077_v10, %v1336_v8 }
 0x1e3   : > { %v1395_v11 = vstv %s3137_s11  ;;  %v1343_v45 = vmul.f32 %v1341_v39, %v1338_v33  ;;  %v1349_v48 = vmul.f32 %v1347_v19, %v1338_v33  ;;  %v1401_v10 = vstv %s3143_s17  ;;  %s3264_s11 = sld [smem:[#allocation2 + $0x29]] }
 0x1e4   : > { %v1318_v50 = vadd.f32 %v1316_v59, %v1303_v58  ;;  %v1326_v62 = vrot.slane %v1322_v9, 1  ;;  %v1356_v53 = vadd.f32 %v1352_v32, %v1344_v14  ;;  %v1499_v58 = vmul.f32 %v1498_v31, %v3102_v2  ;;  %s3272_s17 = sld [smem:[#allocation2 + $0x5a]] }
 0x1e5   : > { %v1353_v3 = vrot.slane %v1349_v48, 1  ;;  %v1519_v59 = vstv %s3162_s24  ;;  %v1546_v19 = vstv %s3175_s26  ;;  %v1552_v14 = vstv %s3177_s27  ;;  %s217_s26 = scalar_lea.vmem [#allocation9], %s1856_s23  ;;  %s2185_s23 = scalar_lea.hbm %s3345_s3, 16 }
 0x1e6   : > { %v1330_v46 = vadd.f32 %v1326_v62, %v1318_v50  ;;  %v1493_v32 = vmul.f32 %v1492_v41, %v3102_v2  ;;  %v1494_v33 = vmul.f32 %v1492_v41, %v3100_v61  ;;  %v1449_v2 = vstv %s3187_s28  ;;  %s1748_s16 = sshll.u32 %s217_s26, 4  ;;  %s1735_s28 = scalar_lea.sflag [#allocation4], %s2416_s8  ;;  %s1749_s16 = int_to_ptr.vmem [resolvable:$true] %s1748_s16 }
 0x1e8   : > { %v3110_v56 = vpop.permute.xlu1 %1513  ;;  %v1359_v47 = vpop.permute.xlu2 %1358  ;;  %v1345_v60 = vadd.f32 %v1343_v45, %v1330_v46 }
 0x1e9   : > { %v3112_v63 = vpop.permute.xlu0 %1538  ;;  %v1366_v28 = vsel %vm1364_vm11, %v1359_v47, %v3106_v6  ;;  %v1500_v47 = vmul.f32 %v1498_v31, %v3100_v61 }
 0x1ea   : > { %v1369_v35 = vmul.f32 %v1368_v40, %v1366_v28  ;;  %v1375_v26 = vmul.f32 %v1374_v15, %v1366_v28 }
 0x1ec   : > { %v1371_v52 = vadd.f32 %v1369_v35, %v1356_v53  ;;  %v1379_v29 = vrot.slane %v1375_v26, 1  ;;  %v1503_v35 = vrot.slane %v1499_v58, 1  ;;  %v1504_v53 = vrot.slane %v1500_v47, 1 }
 0x1ee   : > { %v1383_v20 = vadd.f32 %v1379_v29, %v1371_v52  ;;  %v1455_v29 = vstv %s3193_s29  ;;  %v1507_v61 = vadd.f32 %v1503_v35, %v1493_v32 }
 0x1f0   : > { %v3114_v13 = vpop.permute.xlu1 %1509  ;;  %v3116_v17 = vpop.permute.xlu2 %1387 }
 0x1f1   : > { %v1363_v1 = vpop.permute.xlu0 %1362 }
 0x1f2   : > { %v1365_v55 = vsel %vm1364_vm11, %v3106_v6, %v1363_v1  ;;  %v1428_v6 = vstv %s3160_s18  ;;  %v1357_v1 = vadd.f32 %v1353_v3, %v1345_v60 }
 0x1f3   : > { %v1370_v23 = vmul.f32 %v1368_v40, %v1365_v55  ;;  %v1376_v7 = vmul.f32 %v1374_v15, %v1365_v55  ;;  %v1517_v40 = vsel %vm1515_vm14, %v3114_v13, %v3104_v37 }
 0x1f4   : > { %v1520_v13 = vmul.f32 %v1519_v59, %v1517_v40 }
 0x1f5   : > { %v1372_v15 = vadd.f32 %v1370_v23, %v1357_v1  ;;  %v1380_v28 = vrot.slane %v1376_v7, 1 }
 0x1f6   : > { %v1522_v7 = vadd.f32 %v1520_v13, %v1507_v61 }
 0x1f7   : > { %v1384_v52 = vadd.f32 %v1380_v28, %v1372_v15 }
 0x1f8   : > { %v3122_v5 = vpop.permute.xlu1 %1540  ;;  %v1386_v12 = vpop.permute.xlu2 %1385 }
 0x1f9   : > { %v3124_v57 = vpop.permute.xlu0 %1565  ;;  %v1393_v49 = vsel %vm1391_vm12, %v1386_v12, %v3116_v17  ;;  %v1525_v12 = vstv %s3167_s25  ;;  %s1746_s25 = scalar_lea.hbm %s3345_s3, %s1963_s22 }
 0x1fa   : > { %v1396_v38 = vmul.f32 %v1395_v11, %v1393_v49  ;;  %v1402_v34 = vmul.f32 %v1401_v10, %v1393_v49  ;;  %v1526_v49 = vmul.f32 %v1525_v12, %v1517_v40  ;;  %s1750_s27 = sshll.u32 %s1746_s25, 4  ;;  %s1751_s27 = int_to_ptr.hbm [resolvable:$true] %s1750_s27 }
 0x1fb   : > { %s2179_s29 = sshra.s32 %s1751_s27, 4  ;;  %s2180_s29 = int_to_ptr.hbm [resolvable:$true] %s2179_s29 }
 0x1fc   : > { %v1398_v9 = vadd.f32 %v1396_v38, %v1383_v20  ;;  %v1406_v50 = vrot.slane %v1402_v34, 1  ;;  %p2186_p9 = scmp.lt.s32.totalorder %s2180_s29, %s3345_s3 }
 0x1fe   : > { %v1410_v26 = vadd.f32 %v1406_v50, %v1398_v9 }
 0x200   : > { %v3139_v16 = vpop.permute.xlu1 %1536  ;;  %v3141_v18 = vpop.permute.xlu2 %1414 }
 0x201   : > { %v1390_v27 = vpop.permute.xlu0 %1389  ;;  %v1544_v41 = vsel %vm1542_vm15, %v3139_v16, %v3112_v63 }
 0x202   : > { %v1392_v21 = vsel %vm1391_vm12, %v3116_v17, %v1390_v27  ;;  %v1516_v17 = vsel %vm1515_vm14, %v3104_v37, %v3110_v56 }
 0x203   : > { %v1397_v27 = vmul.f32 %v1395_v11, %v1392_v21  ;;  %v1521_v55 = vmul.f32 %v1519_v59, %v1516_v17  ;;  %v1527_v38 = vmul.f32 %v1525_v12, %v1516_v17  ;;  %v1543_v12 = vsel %vm1542_vm15, %v3112_v63, %v3122_v5 }
 0x204   : > { %v1548_v15 = vmul.f32 %v1546_v19, %v1543_v12  ;;  %v1554_v28 = vmul.f32 %v1552_v14, %v1543_v12  ;;  %v1573_v63 = vstv %s3222_s4  ;;  %s2181_s4 = scalar_lea.hbm %s2180_s29, 8 }
 0x205   : > { %v1399_v34 = vadd.f32 %v1397_v27, %v1384_v52  ;;  %v1531_v50 = vrot.slane %v1527_v38, 1  ;;  %p2182_p1 = scmp.ne.s32.totalorder %s2180_s29, %s2181_s4  ;;  %p2187_p2 = scmp.lt.s32.totalorder %s2185_s23, %s2181_s4 }
 0x206   : > { %v1558_v52 = vrot.slane %v1554_v28, 1 }
 0x207   : > { %p2183_p4 = pnand %p2182_p1, %p2378_p3  ;;  %p2188_p10 = por %p2187_p2, %p2186_p9 }
 0x208   : > { %v3165_v43 = vpop.permute.xlu1 %1567  ;;  %v1413_v44 = vpop.permute.xlu2 %1412 }
 0x209   : > { %v3173_v51 = vpop.permute.xlu0 %1592  ;;  %v1420_v8 = vsel %vm1418_vm13, %v1413_v44, %v3141_v18  ;;  %v1403_v44 = vmul.f32 %v1401_v10, %v1392_v21  ;;  %v1508_v10 = vadd.f32 %v1504_v53, %v1494_v33  ;;  %v1553_v21 = vmul.f32 %v1552_v14, %v1544_v41  ;;  %p2184_p8 = pneg %p2183_p4 }
 0x20a   : > { %v1423_v24 = vmul.f32 %v1422_v4, %v1420_v8  ;;  %v1429_v25 = vmul.f32 %v1428_v6, %v1420_v8  ;;  %v1530_v8 = vrot.slane %v1526_v49, 1  ;;  %v1579_v53 = vstv %s3229_s5 }
 0x20b   : > { %v1407_v31 = vrot.slane %v1403_v44, 1  ;;  %v1523_v9 = vadd.f32 %v1521_v55, %v1508_v10  ;;  %p2189_p11 = pnand %p2188_p10, %p2184_p8 }
 0x20c   : > { %v1425_v45 = vadd.f32 %v1423_v24, %v1410_v26  ;;  %v1433_v48 = vrot.slane %v1429_v25, 1  ;;  %v1534_v25 = vadd.f32 %v1530_v8, %v1522_v7  ;;  %v1557_v26 = vrot.slane %v1553_v21, 1 }
 0x20d   : > { %v1411_v16 = vadd.f32 %v1407_v31, %v1399_v34  ;;  %v1535_v33 = vadd.f32 %v1531_v50, %v1523_v9  ;;  %v1600_v31 = vstv %s3249_s9  ;;  %v1627_v21 = vstv %s3264_s11 }
 0x20f   : > { %v1550_v49 = vadd.f32 %v1548_v15, %v1535_v33  ;;  %v1654_v33 = vstv %s3282_s21 }
 0x210   : > { %v3197_v62 = vpop.permute.xlu1 %1563  ;;  %v3199_v46 = vpop.permute.xlu2 %1441 }
 0x211   : > { %v1417_v39 = vpop.permute.xlu0 %1416  ;;  %v1562_v34 = vadd.f32 %v1558_v52, %v1550_v49 }
 0x212   : > { %v1419_v37 = vsel %vm1418_vm13, %v3141_v18, %v1417_v39  ;;  %v1437_v18 = vadd.f32 %v1433_v48, %v1425_v45  ;;  %v1547_v39 = vmul.f32 %v1546_v19, %v1544_v41 }
 0x213   : > { %v1424_v58 = vmul.f32 %v1422_v4, %v1419_v37  ;;  %v1430_v59 = vmul.f32 %v1428_v6, %v1419_v37  ;;  %v1571_v4 = vsel %vm1569_vm2, %v3197_v62, %v3124_v57  ;;  %v1570_v62 = vsel %vm1569_vm2, %v3124_v57, %v3165_v43 }
 0x214   : > { %v1549_v35 = vadd.f32 %v1547_v39, %v1534_v25  ;;  %v1574_v27 = vmul.f32 %v1573_v63, %v1571_v4  ;;  %v1580_v14 = vmul.f32 %v1579_v53, %v1571_v4  ;;  %v1575_v38 = vmul.f32 %v1573_v63, %v1570_v62 }
 0x215   : > { %v1426_v6 = vadd.f32 %v1424_v58, %v1411_v16  ;;  %v1434_v40 = vrot.slane %v1430_v59, 1  ;;  %v1581_v37 = vmul.f32 %v1579_v53, %v1570_v62  ;;  %v1633_v25 = vstv %s3272_s17 }
 0x216   : > { %v1561_v55 = vadd.f32 %v1557_v26, %v1549_v35  ;;  %v1577_v7 = vadd.f32 %v1575_v38, %v1562_v34  ;;  %v1660_v4 = vstv %s3274_s20 }
 0x217   : > { %v1438_v13 = vadd.f32 %v1434_v40, %v1426_v6  ;;  %v1585_v8 = vrot.slane %v1581_v37, 1 }
 0x218   : > { %v3227_v56 = vpop.permute.xlu1 %1594  ;;  %v1440_v11 = vpop.permute.xlu2 %1439 }
 0x219   : > { %v1447_v60 = vsel %vm1445_vm1, %v1440_v11, %v3199_v46  ;;  %v3234_v3 = vpop.permute.xlu0 %1619  ;;  %v1584_v11 = vrot.slane %v1580_v14, 1  ;;  %v1589_v39 = vadd.f32 %v1585_v8, %v1577_v7 }
 0x21a   : > { %v1450_v20 = vmul.f32 %v1449_v2, %v1447_v60  ;;  %v1456_v23 = vmul.f32 %v1455_v29, %v1447_v60  ;;  %v1606_v60 = vstv %s3252_s10 }
 0x21c   : > { %v1452_v47 = vadd.f32 %v1450_v20, %v1437_v18  ;;  %v1460_v1 = vrot.slane %v1456_v23, 1 }
 0x21e   : > { %v1464_v24 = vadd.f32 %v1460_v1, %v1452_v47 }
 0x220   : > { %v1468_v5 = vrot.slane %v1464_v24, 3  ;;  %v1591_v32 = vpop.permute.xlu1 %1590  ;;  %v1645_v47 = vpop.permute.xlu2 %1644 }
 0x221   : > { %v1444_v17 = vpop.permute.xlu0 %1443 }
 0x222   : > { %v1472_v44 = vmul.f32 %v3082_v22, %v1468_v5  ;;  %v1446_v19 = vsel %vm1445_vm1, %v3199_v46, %v1444_v17 }
 0x223   : > { %v1451_v45 = vmul.f32 %v1449_v2, %v1446_v19  ;;  %v1457_v48 = vmul.f32 %v1455_v29, %v1446_v19  ;;  %v1598_v2 = vsel %vm1596_vm3, %v1591_v32, %v3173_v51  ;;  %v1576_v29 = vadd.f32 %v1574_v27, %v1561_v55 }
 0x224   : > { %v1476_v61 = vrot.slane %v1472_v44, 5  ;;  %v1601_v18 = vmul.f32 %v1600_v31, %v1598_v2  ;;  %v1607_v20 = vmul.f32 %v1606_v60, %v1598_v2 }
 0x225   : > { %v1453_v57 = vadd.f32 %v1451_v45, %v1438_v13  ;;  %v1461_v43 = vrot.slane %v1457_v48, 1  ;;  %v1588_v58 = vadd.f32 %v1584_v11, %v1576_v29 }
 0x226   : > { %v3267_v46 = vadd.f32 %v1476_v61, %v3093_v30  ;;  %v1597_v30 = vsel %vm1596_vm3, %v3173_v51, %v3227_v56  ;;  %v1611_v1 = vrot.slane %v1607_v20, 1 }
 0x227   : > { %v1465_v10 = vadd.f32 %v1461_v43, %v1453_v57  ;;  %v1602_v9 = vmul.f32 %v1600_v31, %v1597_v30  ;;  %v1608_v50 = vmul.f32 %v1606_v60, %v1597_v30  ;;  %v1603_v56 = vadd.f32 %v1601_v18, %v1588_v58 }
 0x228   : > { %v1622_v41 = vpop.permute.xlu1 %1621 }
 0x229   : > { %v1469_v23 = vrot.slane %v1465_v10, 3  ;;  %v1647_v51 = vpop.permute.xlu0 %1646  ;;  %v1624_v16 = vsel %vm1623_vm4, %v3234_v3, %v1622_v41  ;;  %v1604_v40 = vadd.f32 %v1602_v9, %v1589_v39  ;;  %v1612_v15 = vrot.slane %v1608_v50, 1 }
 0x22a   : > { %v1652_v6 = vsel %vm1650_vm5, %v1645_v47, %v1647_v51  ;;  %v1615_v63 = vadd.f32 %v1611_v1, %v1603_v56  ;;  %v1629_v5 = vmul.f32 %v1627_v21, %v1624_v16  ;;  %v1635_v35 = vmul.f32 %v1633_v25, %v1624_v16 }
 0x22b   : > { %v1473_v59 = vmul.f32 %v3085_v36, %v1469_v23  ;;  %v1661_v17 = vmul.f32 %v1660_v4, %v1652_v6  ;;  %v1655_v44 = vmul.f32 %v1654_v33, %v1652_v6 }
 0x22c   : > { %v1639_v14 = vrot.slane %v1635_v35, 1 }
 0x22d   : > { %v1477_v12 = vrot.slane %v1473_v59, 5  ;;  %v1665_v45 = vrot.slane %v1661_v17, 1 }
 0x22f   : > { %v1481_v24 = vadd.f32 %v1477_v12, %v3096_v54  ;;  %v1616_v54 = vadd.f32 %v1612_v15, %v1604_v40 }
 0x230   : > { %v1618_v28 = vpop.permute.xlu1 %1617 }
 0x231   : > { %v1625_v32 = vsel %vm1623_vm4, %v1618_v28, %v3234_v3  ;;  %v1631_v19 = vadd.f32 %v1629_v5, %v1616_v54 }
 0x232   : > { %v1628_v26 = vmul.f32 %v1627_v21, %v1625_v32  ;;  %v1634_v53 = vmul.f32 %v1633_v25, %v1625_v32 }
 0x233   : > { %v1643_v61 = vadd.f32 %v1639_v14, %v1631_v19 }
 0x234   : > { %v1630_v62 = vadd.f32 %v1628_v26, %v1615_v63  ;;  %v1638_v27 = vrot.slane %v1634_v53, 1 }
 0x236   : > { %v1642_v13 = vadd.f32 %v1638_v27, %v1630_v62 }
 0x238   : > { %v1657_v48 = vadd.f32 %v1655_v44, %v1642_v13  ;;  %v1649_v49 = vpop.permute.xlu1 %1648 }
 0x239   : > { %v1651_v52 = vsel %vm1650_vm5, %v1647_v51, %v1649_v49 }
 0x23a   : > { %v1669_v3 = vadd.f32 %v1665_v45, %v1657_v48  ;;  %v1656_v55 = vmul.f32 %v1654_v33, %v1651_v52  ;;  %v1662_v57 = vmul.f32 %v1660_v4, %v1651_v52 }
 0x23c   : > { %v1673_v43 = vrot.slane %v1669_v3, 2  ;;  %v1658_v38 = vadd.f32 %v1656_v55, %v1643_v61  ;;  %v1666_v37 = vrot.slane %v1662_v57, 1 }
 0x23e   : > { %v1677_v2 = vmul.f32 %v3082_v22, %v1673_v43  ;;  %v1670_v29 = vadd.f32 %v1666_v37, %v1658_v38 }
 0x240   : > { %v1681_v11 = vrot.slane %v1677_v2, 6  ;;  %v1674_v10 = vrot.slane %v1670_v29, 2 }
 0x242   : > { %v1685_v34 = vadd.f32 %v1681_v11, %v3267_v46  ;;  %v1678_v31 = vmul.f32 %v3085_v36, %v1674_v10 }
 0x244   : > { %v1955_v60 = vmul.f32 -1.442695, %v1685_v34  ;;  %v1682_v41 = vrot.slane %v1678_v31, 6 }
 0x246   : > { %2080 = vpow2.f32 %v1955_v60  ;;  %v1686_v42 = vadd.f32 %v1682_v41, %v1481_v24 }
 0x248   : > { %v1956_v30 = vmul.f32 -1.442695, %v1686_v42 }
 0x24a   : > { %2082 = vpow2.f32 %v1956_v30 }
 0x24c   : > { %v2081_v18 = vpop.eup %2080 }
 0x24d   : > { %v1693_v20 = vadd.f32 1.0, %v2081_v18 }
 0x24f   : > { %2084 = vrcp.f32 %v1693_v20  ;;  %vm1700_vm7 = vweird.f32 %v1693_v20  ;;  %v1706_v47 = vand.u32 2147483648, %v1693_v20  ;;  %v1704_v56 = vand.u32 2147483647, %v1693_v20 }
 0x250   : > { %v2083_v23 = vpop.eup %2082 }
 0x251   : > { %v1694_v7 = vadd.f32 1.0, %v2083_v23  ;;  %v1707_v16 = vor.u32 1.1754944e-38, %v1706_v47  ;;  %vm1705_vm12 = vcmp.eq.f32.partialorder %v1704_v56, 8.507059e+37 }
 0x253   : > { %2086 = vrcp.f32 %v1694_v7  ;;  %v1721_v51 = vand.u32 2147483648, %v1694_v7  ;;  %v1719_v12 = vand.u32 2147483647, %v1694_v7  ;;  %vm1715_vm10 = vweird.f32 %v1694_v7 }
 0x255   : > { %v2085_v22 = vpop.eup %2084  ;;  %v1722_v24 = vor.u32 1.1754944e-38, %v1721_v51  ;;  %vm1720_vm13 = vcmp.eq.f32.partialorder %v1719_v12, 8.507059e+37 }
 0x256   : > { %v1696_v8 = vmul.f32 %v2085_v22, %v1693_v20  ;;  %vm1701_vm6 = vweird.f32 %v2085_v22 }
 0x257   : > { %vm1702_vm9 = vmor %vm1700_vm7, %vm1701_vm6 }
 0x258   : > { %v1697_v58 = vsub.f32 1.0, %v1696_v8 }
 0x259   : > { %v2087_v59 = vpop.eup %2086 }
 0x25a   : > { %v1698_v9 = vmul.f32 %v2085_v22, %v1697_v58  ;;  %v1711_v46 = vmul.f32 %v2087_v59, %v1694_v7  ;;  %vm1716_vm8 = vweird.f32 %v2087_v59 }
 0x25b   : > { %vm1717_vm11 = vmor %vm1715_vm10, %vm1716_vm8 }
 0x25c   : > { %v1699_v36 = vadd.f32 %v2085_v22, %v1698_v9  ;;  %v1712_v50 = vsub.f32 1.0, %v1711_v46 }
 0x25e   : > { %v1713_v1 = vmul.f32 %v2087_v59, %v1712_v50  ;;  %v1703_v39 = vsel %vm1702_vm9, %v2085_v22, %v1699_v36 }
 0x25f   : > { %v1708_v4 = vsel %vm1705_vm12, %v1707_v16, %v1703_v39 }
 0x260   : > { %v1714_v21 = vadd.f32 %v2087_v59, %v1713_v1  ;;  %v1725_v15 = vperm.slane %v1708_v4, 0 }
 0x262   : > { %v1718_v25 = vsel %vm1717_vm11, %v2087_v59, %v1714_v21 }
 0x263   : > { %v1723_v6 = vsel %vm1720_vm13, %v1722_v24, %v1718_v25 }
 0x264   : > { %v1726_v40 = vperm.slane %v1723_v6, 0 }
 0x266   : > { %v1729_v28 = vrot.slane %v1726_v40, 4 }
 0x268   : > { %v1730_v63 = vsel %vm225_vm0, %v1725_v15, %v1729_v28 }
 0x269   : > { %v1732_v5 = vmul.f32 %v1730_v63, %v2426_v0 }
 0x26b   : > { %1733 = vst [vmem:[%s217_s26] sm:$0xff] %v1732_v5 }
 0x26c   : > { %2192 = shalt.err (!%p2189_p11)
}
 0x26d   : > { %1974 = dma.vmem_to_hbm [thread:$0]  (%p2378_p3), %s1749_s16, 128, %s1751_s27, %s1735_s28  }
 0x26e PF: > { %s1762_s8 = sand.u32 1, %s2227_s12   ;;  %p3351_p12 = scmp.ge.s32.totalorder %s2239_s15, 2 }
 0x26f   : > { %s1763_s17 = scalar_lea.sflag [#allocation4], %s1762_s8 }
 0x270   : > { %p1988_p13 = pnand %p3351_p12, %p2347_p6 }
 0x272   : > { %p1989_p0 = pneg %p1988_p13 }
 0x274   : > { %2222 = dma.done.wait (%p1989_p0), %s1763_s17, 128  }
 0x275   : > { %2224 = vsyncadd (%p1989_p0), %s1763_s17, 4294967168  ;;  %p18_p5 = scmp.ge.s32.totalorder %s2368_s30, 4   ;;  %s3352_s12 = smov %s2231_s13 }
 0x276   : > { %s3353_s13 = smov %s2235_s14  ;;  %s3354_s14 = smov %s2384_s7 }
 0x277   : > { %s3355_s15 = smov %s2368_s30  ;;  %20 = sbr.rel (!%p18_p5) target bundleno = 7 (0x7), region = 87 }
 0x27c   :  { %1769 = vsyncpa [#allocation3], 1 }
 0x27d   :  { %1771 = vsyncpa [#allocation3 + $0x1], 1 }
 0x27e   :  { %1772 = vsyncpa [#allocation8], 1 }
 0x27f   :  { %1774 = vsyncpa [#allocation8 + $0x1], 1 }
 0x280   :  { %1775 = vsyncpa [#allocation4], 1 }
 0x281   :  { %1777 = vsyncpa [#allocation4 + $0x1], 1 }
 0x282   :  { %1778 = vsyncpa [#allocation5], 1 }
 0x283   :  { %1780 = vsyncpa [#allocation5 + $0x1], 1 }

</bundles_post_ra>
